<compile_context>
chip_gen: v7x
topology: tpu7x:2x2x1
jax: 0.10.0
libtpu: 0.0.40
codegen_flags: <defaults>
</compile_context>

<pallas_src>
import functools

import jax
import jax.numpy as jnp
from jax.experimental import pallas as pl
from jax.experimental.pallas import tpu as pltpu

EMBED_DIM = 64
NUM_LAYER = 2
LEAKY_SLOPE = 0.01   # nn.LeakyReLU default
PERCENT = 0.4

_VMEM_LIMIT = 48 * 1024 * 1024   # safe on v5e/v6e (128 MiB) and v7x (64 MiB)


def _full_spec(x):
    """Whole-array (grid-invariant, VMEM-resident) BlockSpec."""
    nd = x.ndim
    return pl.BlockSpec(x.shape, lambda r: (0,) * nd)


def _compiler_params():
    return pltpu.CompilerParams(dimension_semantics=("parallel",),
                                vmem_limit_bytes=_VMEM_LIMIT)


# ---------------------------------------------------------------------------
# Kernel 1: one GCN layer, row-tiled.
#   h_new  = LeakyReLU((A_blk @ H) @ W + b)        (bf16, feeds next layer)
#   h_norm = F.normalize(h_new, p=2, dim=1)        (f32, feeds combine)
# ---------------------------------------------------------------------------
def _gcn_layer_kernel(adj_ref, h_ref, w_ref, b_ref, hnew_ref, hnorm_ref):
    ah = jnp.dot(adj_ref[...], h_ref[...], preferred_element_type=jnp.float32)
    y = jnp.dot(ah.astype(jnp.bfloat16), w_ref[...],
                preferred_element_type=jnp.float32) + b_ref[...]
    h = jnp.where(y >= 0, y, LEAKY_SLOPE * y)                       # LeakyReLU
    inv = jax.lax.rsqrt(jnp.maximum(
        jnp.sum(h * h, axis=-1, keepdims=True), 1e-24))             # EUP rsqrt
    hnew_ref[...] = h.astype(hnew_ref.dtype)
    hnorm_ref[...] = h * inv


def gcn_layer(adj_bf, h_bf, w_bf, b):
    n = adj_bf.shape[0]
    d = EMBED_DIM
    tr = n if n <= 512 else 256
    grid = (pl.cdiv(n, tr),)
    return pl.pallas_call(
        _gcn_layer_kernel,
        grid=grid,
        in_specs=[pl.BlockSpec((tr, n), lambda r: (r, 0)),      # adjacency rows stream
                  pl.BlockSpec((n, d), lambda r: (0, 0)),       # H resident
                  pl.BlockSpec((d, d), lambda r: (0, 0)),
                  pl.BlockSpec((1, d), lambda r: (0, 0))],
        out_specs=(pl.BlockSpec((tr, d), lambda r: (r, 0)),
                   pl.BlockSpec((tr, d), lambda r: (r, 0))),
        out_shape=(jax.ShapeDtypeStruct((n, d), jnp.bfloat16),
                   jax.ShapeDtypeStruct((n, d), jnp.float32)),
        compiler_params=_compiler_params(),
    )(adj_bf, h_bf, w_bf, b)


# ---------------------------------------------------------------------------
# Kernel 2: combine layers / graphs, zero row 0.
#   out = scale * sum_g mean([H0, n(H1_g), ..., n(HL_g)]),  row 0 zeroed
# ---------------------------------------------------------------------------
def _combine_kernel(h0_ref, *rest, scale, denom, num_graphs):
    norm_refs = rest[:-1]
    out_ref = rest[-1]
    total = h0_ref[...] * float(num_graphs)
    for nr in norm_refs:
        total = total + nr[...]
    total = total * (scale / denom)
    gidx = (pl.program_id(0) * h0_ref.shape[0]
            + jax.lax.broadcasted_iota(jnp.int32, total.shape, 0))
    out_ref[...] = jnp.where(gidx == 0, 0.0, total)                 # embedding[0] = 0


def graph_global(graphs, node_embed, scale):
    """graphs: list of (adj, [(w, b) per layer]) -> combined global embedding."""
    n, d = node_embed.shape
    tr = n if n <= 512 else 256
    h0_bf = node_embed.astype(jnp.bfloat16)

    norms = []
    for adj, layers in graphs:
        adj_bf = adj.astype(jnp.bfloat16)
        h = h0_bf
        for w, b in layers:
            h, h_norm = gcn_layer(adj_bf, h, w.astype(jnp.bfloat16), b)
            norms.append(h_norm)

    kernel = functools.partial(_combine_kernel, scale=float(scale),
                               denom=float(len(graphs[0][1]) + 1),
                               num_graphs=len(graphs))
    grid = (pl.cdiv(n, tr),)
    return pl.pallas_call(
        kernel,
        grid=grid,
        in_specs=[pl.BlockSpec((tr, d), lambda r: (r, 0))] * (1 + len(norms)),
        out_specs=pl.BlockSpec((tr, d), lambda r: (r, 0)),
        out_shape=jax.ShapeDtypeStruct((n, d), jnp.float32),
        compiler_params=_compiler_params(),
    )(node_embed, *norms)


# ---------------------------------------------------------------------------
# Kernel 3: fused get_embeds_u + get_embeds_v + final score (row-tiled grid)
# ---------------------------------------------------------------------------
def _col_max(cols):
    m = cols[0]
    for c in cols[1:]:
        m = jnp.maximum(m, c)
    return m


def _softmax_cols(cols):
    """Softmax across a list of (rows, 1) columns (per row, over the list)."""
    m = _col_max(cols)
    exps = [jnp.exp(c - m) for c in cols]
    s = exps[0]
    for e in exps[1:]:
        s = s + e
    inv = pl.reciprocal(s, approx=True)                             # EUP divide
    return [e * inv for e in exps]


def _select_k_largest(cols, k):
    """Deterministic per-row selection of the k largest of `cols`.

    Returns k selections; each is a list of (rows, 1) 0/1 weights (one per input
    column, exactly one set per row).  Pure VPU elementwise work.
    """
    taken = [jnp.zeros_like(c) for c in cols]
    selections = []
    for _ in range(k):
        masked = [cols[i] - taken[i] * 1e30 for i in range(len(cols))]
        m = _col_max(masked)
        found = jnp.zeros_like(m)
        hots = []
        for i in range(len(cols)):
            hit = jnp.where((masked[i] >= m) & (found < 0.5), 1.0, 0.0)
            hots.append(hit)
            found = found + hit
            taken[i] = taken[i] + hit
        selections.append(hots)
    return selections


def _embeds_score_kernel(s_ref, euv_ref, rel_ref, enb_ref,
                         wl_ref, bl_ref, wt_ref, ra_nb_ref,
                         w1s_ref, w1n_ref, b1_ref,
                         w5s_ref, w5a_ref, b5_ref,
                         w2_ref, b2_ref, out_ref,
                         *, n_neigh, n_friend, k1, k2):
    wl = wl_ref[...]
    bl = bl_ref[...]
    w2 = w2_ref[...]
    b2 = b2_ref[...]
    ra_nb = ra_nb_ref[...]
    w1s = w1s_ref[...]
    w1n = w1n_ref[...]
    b1 = b1_ref[...]
    w5s = w5s_ref[...]
    w5a = w5a_ref[...]
    b5 = b5_ref[...]

    combined = []
    for br in (0, 1):                       # 0 = user branch, 1 = item branch
        self_f = s_ref[br]                  # (tm, 64) f32
        tgt_f = s_ref[1 - br]
        # query = linear([self ; target]) : ONE (tm,128)@(128,64) MXU matmul
        cat_q = jnp.concatenate([self_f, tgt_f], axis=-1).astype(jnp.bfloat16)
        query = jnp.dot(cat_q, wl, preferred_element_type=jnp.float32) + bl

        # ---------------- interaction branch ----------------
        # TODO(synk): torch.multinomial sampling replaced by deterministic
        # smallest-distance selection (same ranking as top-k of softmax(-||q-e||)).
        euv_b = euv_ref[br].astype(jnp.float32)      # (tm, Nn, 64)
        rel_b = rel_ref[br]                          # (tm, Nn) precomputed e_r @ ra_rel
        neg, nb_logit, euv_cols = [], [], []
        for n in range(n_neigh):
            e = euv_b[:, n, :]
            euv_cols.append(e)
            diff = query - e
            neg.append(-jnp.sum(diff * diff, axis=-1, keepdims=True))
            nb_logit.append(jnp.sum(e * ra_nb, axis=-1, keepdims=True)
                            + rel_b[:, n:n + 1])
        sels = _select_k_largest(neg, k1)
        logit_cols = []
        for hots in sels:                            # scalar-column work only
            lc = jnp.zeros_like(neg[0])
            for n in range(n_neigh):
                lc = lc + hots[n] * nb_logit[n]
            logit_cols.append(lc)
        probs = _softmax_cols(logit_cols)
        agg_1 = jnp.zeros_like(query)
        for n in range(n_neigh):
            wn = jnp.zeros_like(neg[0])
            for k in range(k1):
                wn = wn + probs[k] * sels[k][n]
            agg_1 = agg_1 + wn * euv_cols[n]

        # ---------------- social branch ----------------
        wt_b = wt_ref[br]                            # (64,64) bf16 branch transform
        enb_b = enb_ref[br]                          # (tm, Nf, 64) bf16
        att1_self = jnp.sum(self_f * w1s, axis=-1, keepdims=True)
        neg1, f_logit, enb_cols = [], [], []
        for n in range(n_friend):
            e_bf = enb_b[:, n, :]
            et = jnp.dot(e_bf, wt_b, preferred_element_type=jnp.float32)
            diff = query - et
            neg1.append(-jnp.sum(diff * diff, axis=-1, keepdims=True))
            e = e_bf.astype(jnp.float32)
            enb_cols.append(e)
            f_logit.append(jnp.sum(e * w1n, axis=-1, keepdims=True))
        sels1 = _select_k_largest(neg1, k2)
        logit1 = []
        for hots in sels1:
            x = att1_self + b1
            for n in range(n_friend):
                x = x + hots[n] * f_logit[n]
            logit1.append(jnp.maximum(x, 0.0))                       # ReLU(att1(.))
        probs1 = _softmax_cols(logit1)
        agg_2 = jnp.zeros_like(query)
        for n in range(n_friend):
            wn = jnp.zeros_like(neg1[0])
            for k in range(k2):
                wn = wn + probs1[k] * sels1[k][n]
            agg_2 = agg_2 + wn * enb_cols[n]

        # ---------------- fuse the two aggregations (att5) ----------------
        att5_self = jnp.sum(self_f * w5s, axis=-1, keepdims=True)
        l5 = [jnp.maximum(att5_self + jnp.sum(a * w5a, axis=-1, keepdims=True) + b5,
                          0.0)
              for a in (agg_1, agg_2)]
        p5 = _softmax_cols(l5)
        agg_b = p5[0] * agg_1 + p5[1] * agg_2

        # linear2([self ; agg_b]) : ONE (tm,128)@(128,64) MXU matmul + ReLU
        cat_c = jnp.concatenate([self_f, agg_b], axis=-1).astype(jnp.bfloat16)
        comb = jnp.maximum(
            jnp.dot(cat_c, w2, preferred_element_type=jnp.float32) + b2, 0.0)
        combined.append(comb)

    # score = diag(embeds_u @ embeds_v.T) : per-row lane reduction.
    out_ref[...] = jnp.sum(combined[0] * combined[1], axis=-1, keepdims=True)


def fused_embeds_scores(params, user, candidate, user_global, item_global,
                        user_neigh, user_neigh_r, user_friends,
                        item_neigh, item_neigh_r, item_friends):
    b = user.shape[0]
    d = EMBED_DIM
    n_neigh = user_neigh.shape[1]
    n_friend = user_friends.shape[1]
    assert item_neigh.shape[1] == n_neigh and item_friends.shape[1] == n_friend
    k1 = max(1, int(PERCENT * n_neigh))
    k2 = max(1, int(PERCENT * n_friend))

    ug_bf = user_global.astype(jnp.bfloat16)
    ig_bf = item_global.astype(jnp.bfloat16)

    # Branch-major stacking: index 0 = user branch (get_embeds_u),
    # index 1 = item branch (get_embeds_v).  Gathers stay in HLO.
    self2 = jnp.stack([user_global[user], item_global[candidate]], 0)      # (2,B,d)
    euv2 = jnp.stack([ig_bf[user_neigh[user]],
                      ug_bf[item_neigh[candidate]]], 0)                    # (2,B,Nn,d) bf16
    enb2 = jnp.stack([ug_bf[user_friends[user]],
                      ig_bf[item_friends[candidate]]], 0)                  # (2,B,Nf,d) bf16
    ra = params["relation_att"]                                            # (2d, 1)
    # Pre-reduce the relation half of relation_att: e_r @ ra[d:] is a per-label
    # scalar -> tiny (7,) table gather instead of a (2,B,Nn,64) slab in VMEM.
    rel_scores = (params["r2e"] @ ra[d:, :]).reshape(-1)                   # (7,)
    rel2 = jnp.stack([rel_scores[user_neigh_r[user]],
                      rel_scores[item_neigh_r[candidate]]], 0)             # (2,B,Nn)

    wl, bl = params["linear"]
    w2, b2 = params["linear2"]
    w1, b1 = params["att1"]
    w5, b5 = params["att5"]
    wt = jnp.stack([params["transform_user"],
                    params["transform_item"]], 0).astype(jnp.bfloat16)     # (2,d,d)

    tm = b if b <= 128 else 128
    grid = (pl.cdiv(b, tm),)

    args = [self2, euv2, rel2, enb2,
            wl.astype(jnp.bfloat16), bl,
            wt, ra[:d, :].T,
            w1[:d, :].T, w1[d:, :].T, b1,
            w5[:d, :].T, w5[d:, :].T, b5,
            w2.astype(jnp.bfloat16), b2]
    in_specs = [
        pl.BlockSpec((2, tm, d), lambda r: (0, r, 0)),
        pl.BlockSpec((2, tm, n_neigh, d), lambda r: (0, r, 0, 0)),
        pl.BlockSpec((2, tm, n_neigh), lambda r: (0, r, 0)),
        pl.BlockSpec((2, tm, n_friend, d), lambda r: (0, r, 0, 0)),
    ] + [_full_spec(a) for a in args[4:]]

    kernel = functools.partial(_embeds_score_kernel, n_neigh=n_neigh,
                               n_friend=n_friend, k1=k1, k2=k2)
    out = pl.pallas_call(
        kernel,
        grid=grid,
        in_specs=in_specs,
        out_specs=pl.BlockSpec((tm, 1), lambda r: (r, 0)),
        out_shape=jax.ShapeDtypeStruct((b, 1), jnp.float32),
        compiler_params=_compiler_params(),
    )(*args)
    return out[:, 0]


# --------------------------- parameters -------------------------------------
def _linear_params(key, din, dout):
    k1, k2 = jax.random.split(key)
    lim = 1.0 / jnp.sqrt(float(din))
    w = jax.random.uniform(k1, (din, dout), jnp.float32, -lim, lim)
    b = jax.random.uniform(k2, (1, dout), jnp.float32, -lim, lim)
    return w, b


def init_params(key, num_user, num_candidate):
    d = EMBED_DIM
    ks = jax.random.split(key, 16)
    params = {
        "u2e": jax.random.normal(ks[0], (num_user + 1, d), jnp.float32),
        "v2e": jax.random.normal(ks[1], (num_candidate + 1, d), jnp.float32),
        "r2e": jax.random.normal(ks[2], (7, d), jnp.float32),
        "relation_att": jax.random.normal(ks[3], (2 * d, 1), jnp.float32),
        "transform_user": jax.random.normal(ks[4], (d, d), jnp.float32),
        "transform_item": jax.random.normal(ks[5], (d, d), jnp.float32),
        "linear": _linear_params(ks[6], 2 * d, d),
        "linear1": _linear_params(ks[7], 2 * d, d),   # present in module, unused in forward
        "linear2": _linear_params(ks[8], 2 * d, d),
        "att1": _linear_params(ks[9], 2 * d, 1),
        "att5": _linear_params(ks[10], 2 * d, 1),
    }
    for name, kk in (("user_soc_gnn", 11), ("item_soc_gnn", 12), ("user_sim_gnn", 13)):
        sub = jax.random.split(ks[kk], NUM_LAYER)
        params[name] = [_linear_params(sub[l], d, d) for l in range(NUM_LAYER)]
    return params


# --------------------------- forward -----------------------------------------
def forward(params, user, candidate,
            user_soc_adj, item_soc_adj, user_sim_adj,
            user_neigh, user_neigh_r, user_friends,
            item_neigh, item_neigh_r, item_friends):
    # ndata['id'] == arange(N+1): the u2e/v2e lookup is the full embedding table.
    # TODO(synk): the DGL Aggregator is realised as a GCN layer
    #             H' = LeakyReLU((A_norm @ H) @ W + b).
    user_global = graph_global(
        [(user_soc_adj, params["user_soc_gnn"]),
         (user_sim_adj, params["user_sim_gnn"])],
        params["u2e"], scale=0.5)                      # 0.5*(soc + sim), row 0 zeroed
    item_global = graph_global(
        [(item_soc_adj, params["item_soc_gnn"])],
        params["v2e"], scale=1.0)

    return fused_embeds_scores(params, user, candidate, user_global, item_global,
                               user_neigh, user_neigh_r, user_friends,
                               item_neigh, item_neigh_r, item_friends)


# --------------------------- main ---------------------------------------------
if __name__ == "__main__":
    key = jax.random.PRNGKey(0)
    num_user, num_candidate = 8, 8
    batch = 4
    n_neigh, n_friend = 5, 5

    pk, dk = jax.random.split(key)
    params = init_params(pk, num_user, num_candidate)

    ks = jax.random.split(dk, 8)
    # synthetic Sampler: every user/item has exactly n_neigh interaction neighbors
    # (with rating labels in [1,6]) and n_friend social neighbors.
    user_neigh = jax.random.randint(ks[0], (num_user + 1, n_neigh), 1, num_candidate + 1)
    user_neigh_r = jax.random.randint(ks[1], (num_user + 1, n_neigh), 1, 7)
    user_friends = jax.random.randint(ks[2], (num_user + 1, n_friend), 1, num_user + 1)
    item_neigh = jax.random.randint(ks[3], (num_candidate + 1, n_neigh), 1, num_user + 1)
    item_neigh_r = jax.random.randint(ks[4], (num_candidate + 1, n_neigh), 1, 7)
    item_friends = jax.random.randint(ks[5], (num_candidate + 1, n_friend), 1, num_candidate + 1)

    def ring_adj(n):
        idx = jnp.arange(n)
        a = jnp.zeros((n, n), jnp.float32)
        a = a.at[idx, idx].set(1.0)
        a = a.at[idx, (idx + 1) % n].set(1.0)
        a = a.at[idx, (idx - 1) % n].set(1.0)
        return a / jnp.sum(a, axis=1, keepdims=True)

    user_soc_adj = ring_adj(num_user + 1)
    user_sim_adj = ring_adj(num_user + 1)
    item_soc_adj = ring_adj(num_candidate + 1)

    user = jax.random.randint(ks[6], (batch,), 1, num_user + 1)
    candidate = jax.random.randint(ks[7], (batch,), 1, num_candidate + 1)

    scores = jax.jit(forward)(params, user, candidate,
                              user_soc_adj, item_soc_adj, user_sim_adj,
                              user_neigh, user_neigh_r, user_friends,
                              item_neigh, item_neigh_r, item_friends)
    jax.block_until_ready(scores)
    assert scores.shape == (batch,)
    print("KERNEL_OK")
</pallas_src>

<mosaic_0001>
module attributes {stable_mosaic.version = 11 : i64} {
  func.func @_gcn_layer_kernel(%arg0: i32, %arg1: memref<9x9xbf16, #tpu.memory_space<vmem>>, %arg2: memref<9x64xbf16, #tpu.memory_space<vmem>>, %arg3: memref<64x64xbf16, #tpu.memory_space<vmem>>, %arg4: memref<1x64xf32, #tpu.memory_space<vmem>>, %arg5: memref<9x64xbf16, #tpu.memory_space<vmem>>, %arg6: memref<9x64xf32, #tpu.memory_space<vmem>>) attributes {dimension_semantics = [#tpu.dimension_semantics<parallel>], iteration_bounds = array<i64: 1>, scalar_prefetch = 0 : i64, scratch_operands = 0 : i64, tpu.core_type = #tpu.core_type<tc>, window_params = [{transform_indices = @transform_0, window_bounds = array<i64: 9, 9>}, {pipeline_mode = #tpu.pipeline_mode<synchronous>, transform_indices = @transform_1, window_bounds = array<i64: 9, 64>}, {pipeline_mode = #tpu.pipeline_mode<synchronous>, transform_indices = @transform_2, window_bounds = array<i64: 64, 64>}, {pipeline_mode = #tpu.pipeline_mode<synchronous>, transform_indices = @transform_3, window_bounds = array<i64: 1, 64>}, {transform_indices = @transform_4, window_bounds = array<i64: 9, 64>}, {transform_indices = @transform_5, window_bounds = array<i64: 9, 64>}]} {
    %c0 = arith.constant 0 : index
    %c0_0 = arith.constant 0 : index
    %0 = vector.load %arg1[%c0, %c0_0] : memref<9x9xbf16, #tpu.memory_space<vmem>>, vector<9x9xbf16>
    %c0_1 = arith.constant 0 : index
    %c0_2 = arith.constant 0 : index
    %1 = vector.load %arg2[%c0_1, %c0_2] : memref<9x64xbf16, #tpu.memory_space<vmem>>, vector<9x64xbf16>
    %cst = arith.constant dense<0.000000e+00> : vector<9x64xf32>
    %2 = tpu.matmul %0, %1, %cst {dimension_numbers = #tpu.dot_dimension_numbers<[1], [0], [0], [1], [0, 0, 1, 1], [], []>} : vector<9x9xbf16>, vector<9x64xbf16>, vector<9x64xf32> -> vector<9x64xf32>
    %3 = arith.truncf %2 : vector<9x64xf32> to vector<9x64xbf16>
    %c0_3 = arith.constant 0 : index
    %c0_4 = arith.constant 0 : index
    %4 = vector.load %arg3[%c0_3, %c0_4] : memref<64x64xbf16, #tpu.memory_space<vmem>>, vector<64x64xbf16>
    %cst_5 = arith.constant dense<0.000000e+00> : vector<9x64xf32>
    %5 = tpu.matmul %3, %4, %cst_5 {dimension_numbers = #tpu.dot_dimension_numbers<[1], [0], [0], [1], [0, 0, 1, 1], [], []>} : vector<9x64xbf16>, vector<64x64xbf16>, vector<9x64xf32> -> vector<9x64xf32>
    %c0_6 = arith.constant 0 : index
    %c0_7 = arith.constant 0 : index
    %6 = vector.load %arg4[%c0_6, %c0_7] : memref<1x64xf32, #tpu.memory_space<vmem>>, vector<1x64xf32>
    %7 = vector.broadcast %6 : vector<1x64xf32> to vector<9x64xf32>
    %8 = arith.addf %5, %7 : vector<9x64xf32>
    %cst_8 = arith.constant 0.000000e+00 : f32
    %9 = vector.broadcast %cst_8 : f32 to vector<9x64xf32>
    %10 = arith.cmpf oge, %8, %9 : vector<9x64xf32>
    %cst_9 = arith.constant 0.00999999977 : f32
    %11 = vector.broadcast %cst_9 : f32 to vector<9x64xf32>
    %12 = arith.mulf %11, %8 : vector<9x64xf32>
    %13 = arith.select %10, %8, %12 : vector<9x64xi1>, vector<9x64xf32>
    %14 = arith.mulf %13, %13 : vector<9x64xf32>
    %cst_10 = arith.constant dense<0.000000e+00> : vector<9xf32>
    %15 = vector.multi_reduction <add>, %14, %cst_10 [1] : vector<9x64xf32> to vector<9xf32>
    %16 = vector.shape_cast %15 : vector<9xf32> to vector<9x1xf32>
    %cst_11 = arith.constant 1.000000e-24 : f32
    %17 = vector.broadcast %cst_11 : f32 to vector<9x1xf32>
    %18 = arith.maximumf %16, %17 : vector<9x1xf32>
    %19 = math.rsqrt %18 : vector<9x1xf32>
    %20 = arith.truncf %13 : vector<9x64xf32> to vector<9x64xbf16>
    %c0_12 = arith.constant 0 : index
    %c0_13 = arith.constant 0 : index
    %21 = vector.load %arg5[%c0_12, %c0_13] : memref<9x64xbf16, #tpu.memory_space<vmem>>, vector<9x64xbf16>
    tpu.vector_store %arg5[%c0_12, %c0_13], %20 {strides = array<i32>} : memref<9x64xbf16, #tpu.memory_space<vmem>>, vector<9x64xbf16>,
    %22 = vector.broadcast %19 : vector<9x1xf32> to vector<9x64xf32>
    %23 = arith.mulf %13, %22 : vector<9x64xf32>
    %c0_14 = arith.constant 0 : index
    %c0_15 = arith.constant 0 : index
    %24 = vector.load %arg6[%c0_14, %c0_15] : memref<9x64xf32, #tpu.memory_space<vmem>>, vector<9x64xf32>
    tpu.vector_store %arg6[%c0_14, %c0_15], %23 {strides = array<i32>} : memref<9x64xf32, #tpu.memory_space<vmem>>, vector<9x64xf32>,
    return
  }
  func.func @transform_0(%arg0: i32) -> (i32, i32) {
    %c0_i32 = arith.constant 0 : i32
    %c0_i32_0 = arith.constant 0 : i32
    return %arg0, %c0_i32 : i32, i32
  }
  func.func @transform_1(%arg0: i32) -> (i32, i32) {
    %c0_i32 = arith.constant 0 : i32
    %c0_i32_0 = arith.constant 0 : i32
    %c0_i32_1 = arith.constant 0 : i32
    return %c0_i32, %c0_i32_0 : i32, i32
  }
  func.func @transform_2(%arg0: i32) -> (i32, i32) {
    %c0_i32 = arith.constant 0 : i32
    %c0_i32_0 = arith.constant 0 : i32
    %c0_i32_1 = arith.constant 0 : i32
    return %c0_i32, %c0_i32_0 : i32, i32
  }
  func.func @transform_3(%arg0: i32) -> (i32, i32) {
    %c0_i32 = arith.constant 0 : i32
    %c0_i32_0 = arith.constant 0 : i32
    %c0_i32_1 = arith.constant 0 : i32
    return %c0_i32, %c0_i32_0 : i32, i32
  }
  func.func @transform_4(%arg0: i32) -> (i32, i32) {
    %c0_i32 = arith.constant 0 : i32
    %c0_i32_0 = arith.constant 0 : i32
    return %arg0, %c0_i32 : i32, i32
  }
  func.func @transform_5(%arg0: i32) -> (i32, i32) {
    %c0_i32 = arith.constant 0 : i32
    %c0_i32_0 = arith.constant 0 : i32
    return %arg0, %c0_i32 : i32, i32
  }
}

module attributes {stable_mosaic.version = 11 : i64} {
  func.func @_gcn_layer_kernel(%arg0: i32, %arg1: memref<9x9xbf16, #tpu.memory_space<vmem>>, %arg2: memref<9x64xbf16, #tpu.memory_space<vmem>>, %arg3: memref<64x64xbf16, #tpu.memory_space<vmem>>, %arg4: memref<1x64xf32, #tpu.memory_space<vmem>>, %arg5: memref<9x64xbf16, #tpu.memory_space<vmem>>, %arg6: memref<9x64xf32, #tpu.memory_space<vmem>>) attributes {dimension_semantics = [#tpu.dimension_semantics<parallel>], iteration_bounds = array<i64: 1>, scalar_prefetch = 0 : i64, scratch_operands = 0 : i64, tpu.core_type = #tpu.core_type<tc>, window_params = [{transform_indices = @transform_0, window_bounds = array<i64: 9, 9>}, {pipeline_mode = #tpu.pipeline_mode<synchronous>, transform_indices = @transform_1, window_bounds = array<i64: 9, 64>}, {pipeline_mode = #tpu.pipeline_mode<synchronous>, transform_indices = @transform_2, window_bounds = array<i64: 64, 64>}, {pipeline_mode = #tpu.pipeline_mode<synchronous>, transform_indices = @transform_3, window_bounds = array<i64: 1, 64>}, {transform_indices = @transform_4, window_bounds = array<i64: 9, 64>}, {transform_indices = @transform_5, window_bounds = array<i64: 9, 64>}]} {
    %c0 = arith.constant 0 : index
    %c0_0 = arith.constant 0 : index
    %0 = vector.load %arg1[%c0, %c0_0] : memref<9x9xbf16, #tpu.memory_space<vmem>>, vector<9x9xbf16>
    %c0_1 = arith.constant 0 : index
    %c0_2 = arith.constant 0 : index
    %1 = vector.load %arg2[%c0_1, %c0_2] : memref<9x64xbf16, #tpu.memory_space<vmem>>, vector<9x64xbf16>
    %cst = arith.constant dense<0.000000e+00> : vector<9x64xf32>
    %2 = tpu.matmul %0, %1, %cst {dimension_numbers = #tpu.dot_dimension_numbers<[1], [0], [0], [1], [0, 0, 1, 1], [], []>} : vector<9x9xbf16>, vector<9x64xbf16>, vector<9x64xf32> -> vector<9x64xf32>
    %3 = arith.truncf %2 : vector<9x64xf32> to vector<9x64xbf16>
    %c0_3 = arith.constant 0 : index
    %c0_4 = arith.constant 0 : index
    %4 = vector.load %arg3[%c0_3, %c0_4] : memref<64x64xbf16, #tpu.memory_space<vmem>>, vector<64x64xbf16>
    %cst_5 = arith.constant dense<0.000000e+00> : vector<9x64xf32>
    %5 = tpu.matmul %3, %4, %cst_5 {dimension_numbers = #tpu.dot_dimension_numbers<[1], [0], [0], [1], [0, 0, 1, 1], [], []>} : vector<9x64xbf16>, vector<64x64xbf16>, vector<9x64xf32> -> vector<9x64xf32>
    %c0_6 = arith.constant 0 : index
    %c0_7 = arith.constant 0 : index
    %6 = vector.load %arg4[%c0_6, %c0_7] : memref<1x64xf32, #tpu.memory_space<vmem>>, vector<1x64xf32>
    %7 = vector.broadcast %6 : vector<1x64xf32> to vector<9x64xf32>
    %8 = arith.addf %5, %7 : vector<9x64xf32>
    %cst_8 = arith.constant 0.000000e+00 : f32
    %9 = vector.broadcast %cst_8 : f32 to vector<9x64xf32>
    %10 = arith.cmpf oge, %8, %9 : vector<9x64xf32>
    %cst_9 = arith.constant 0.00999999977 : f32
    %11 = vector.broadcast %cst_9 : f32 to vector<9x64xf32>
    %12 = arith.mulf %11, %8 : vector<9x64xf32>
    %13 = arith.select %10, %8, %12 : vector<9x64xi1>, vector<9x64xf32>
    %14 = arith.mulf %13, %13 : vector<9x64xf32>
    %cst_10 = arith.constant dense<0.000000e+00> : vector<9xf32>
    %15 = vector.multi_reduction <add>, %14, %cst_10 [1] : vector<9x64xf32> to vector<9xf32>
    %16 = vector.shape_cast %15 : vector<9xf32> to vector<9x1xf32>
    %cst_11 = arith.constant 1.000000e-24 : f32
    %17 = vector.broadcast %cst_11 : f32 to vector<9x1xf32>
    %18 = arith.maximumf %16, %17 : vector<9x1xf32>
    %19 = math.rsqrt %18 : vector<9x1xf32>
    %20 = arith.truncf %13 : vector<9x64xf32> to vector<9x64xbf16>
    %c0_12 = arith.constant 0 : index
    %c0_13 = arith.constant 0 : index
    %21 = vector.load %arg5[%c0_12, %c0_13] : memref<9x64xbf16, #tpu.memory_space<vmem>>, vector<9x64xbf16>
    tpu.vector_store %arg5[%c0_12, %c0_13], %20 {strides = array<i32>} : memref<9x64xbf16, #tpu.memory_space<vmem>>, vector<9x64xbf16>,
    %22 = vector.broadcast %19 : vector<9x1xf32> to vector<9x64xf32>
    %23 = arith.mulf %13, %22 : vector<9x64xf32>
    %c0_14 = arith.constant 0 : index
    %c0_15 = arith.constant 0 : index
    %24 = vector.load %arg6[%c0_14, %c0_15] : memref<9x64xf32, #tpu.memory_space<vmem>>, vector<9x64xf32>
    tpu.vector_store %arg6[%c0_14, %c0_15], %23 {strides = array<i32>} : memref<9x64xf32, #tpu.memory_space<vmem>>, vector<9x64xf32>,
    return
  }
  func.func @transform_0(%arg0: i32) -> (i32, i32) {
    %c0_i32 = arith.constant 0 : i32
    %c0_i32_0 = arith.constant 0 : i32
    return %arg0, %c0_i32 : i32, i32
  }
  func.func @transform_1(%arg0: i32) -> (i32, i32) {
    %c0_i32 = arith.constant 0 : i32
    %c0_i32_0 = arith.constant 0 : i32
    %c0_i32_1 = arith.constant 0 : i32
    return %c0_i32, %c0_i32_0 : i32, i32
  }
  func.func @transform_2(%arg0: i32) -> (i32, i32) {
    %c0_i32 = arith.constant 0 : i32
    %c0_i32_0 = arith.constant 0 : i32
    %c0_i32_1 = arith.constant 0 : i32
    return %c0_i32, %c0_i32_0 : i32, i32
  }
  func.func @transform_3(%arg0: i32) -> (i32, i32) {
    %c0_i32 = arith.constant 0 : i32
    %c0_i32_0 = arith.constant 0 : i32
    %c0_i32_1 = arith.constant 0 : i32
    return %c0_i32, %c0_i32_0 : i32, i32
  }
  func.func @transform_4(%arg0: i32) -> (i32, i32) {
    %c0_i32 = arith.constant 0 : i32
    %c0_i32_0 = arith.constant 0 : i32
    return %arg0, %c0_i32 : i32, i32
  }
  func.func @transform_5(%arg0: i32) -> (i32, i32) {
    %c0_i32 = arith.constant 0 : i32
    %c0_i32_0 = arith.constant 0 : i32
    return %arg0, %c0_i32 : i32, i32
  }
}

module attributes {stable_mosaic.version = 11 : i64} {
  func.func @_combine_kernel(%arg0: i32, %arg1: memref<9x64xf32, #tpu.memory_space<vmem>>, %arg2: memref<9x64xf32, #tpu.memory_space<vmem>>, %arg3: memref<9x64xf32, #tpu.memory_space<vmem>>, %arg4: memref<9x64xf32, #tpu.memory_space<vmem>>, %arg5: memref<9x64xf32, #tpu.memory_space<vmem>>, %arg6: memref<9x64xf32, #tpu.memory_space<vmem>>) attributes {dimension_semantics = [#tpu.dimension_semantics<parallel>], iteration_bounds = array<i64: 1>, scalar_prefetch = 0 : i64, scratch_operands = 0 : i64, tpu.core_type = #tpu.core_type<tc>, window_params = [{transform_indices = @transform_0, window_bounds = array<i64: 9, 64>}, {transform_indices = @transform_1, window_bounds = array<i64: 9, 64>}, {transform_indices = @transform_2, window_bounds = array<i64: 9, 64>}, {transform_indices = @transform_3, window_bounds = array<i64: 9, 64>}, {transform_indices = @transform_4, window_bounds = array<i64: 9, 64>}, {transform_indices = @transform_5, window_bounds = array<i64: 9, 64>}]} {
    %c0 = arith.constant 0 : index
    %c0_0 = arith.constant 0 : index
    %0 = vector.load %arg1[%c0, %c0_0] : memref<9x64xf32, #tpu.memory_space<vmem>>, vector<9x64xf32>
    %cst = arith.constant 2.000000e+00 : f32
    %1 = vector.broadcast %cst : f32 to vector<9x64xf32>
    %2 = arith.mulf %0, %1 : vector<9x64xf32>
    %c0_1 = arith.constant 0 : index
    %c0_2 = arith.constant 0 : index
    %3 = vector.load %arg2[%c0_1, %c0_2] : memref<9x64xf32, #tpu.memory_space<vmem>>, vector<9x64xf32>
    %4 = arith.addf %2, %3 : vector<9x64xf32>
    %c0_3 = arith.constant 0 : index
    %c0_4 = arith.constant 0 : index
    %5 = vector.load %arg3[%c0_3, %c0_4] : memref<9x64xf32, #tpu.memory_space<vmem>>, vector<9x64xf32>
    %6 = arith.addf %4, %5 : vector<9x64xf32>
    %c0_5 = arith.constant 0 : index
    %c0_6 = arith.constant 0 : index
    %7 = vector.load %arg4[%c0_5, %c0_6] : memref<9x64xf32, #tpu.memory_space<vmem>>, vector<9x64xf32>
    %8 = arith.addf %6, %7 : vector<9x64xf32>
    %c0_7 = arith.constant 0 : index
    %c0_8 = arith.constant 0 : index
    %9 = vector.load %arg5[%c0_7, %c0_8] : memref<9x64xf32, #tpu.memory_space<vmem>>, vector<9x64xf32>
    %10 = arith.addf %8, %9 : vector<9x64xf32>
    %cst_9 = arith.constant 0.166666672 : f32
    %11 = vector.broadcast %cst_9 : f32 to vector<9x64xf32>
    %12 = arith.mulf %10, %11 : vector<9x64xf32>
    %c9_i32 = arith.constant 9 : i32
    %13 = arith.muli %arg0, %c9_i32 : i32
    %14 = tpu.iota {dimensions = array<i32: 0>} : vector<9x64xi32>
    %15 = vector.broadcast %13 : i32 to vector<9x64xi32>
    %16 = arith.addi %15, %14 : vector<9x64xi32>
    %c0_i32 = arith.constant 0 : i32
    %17 = vector.broadcast %c0_i32 : i32 to vector<9x64xi32>
    %18 = arith.cmpi eq, %16, %17 : vector<9x64xi32>
    %cst_10 = arith.constant 0.000000e+00 : f32
    %19 = vector.broadcast %cst_10 : f32 to vector<9x64xf32>
    %20 = arith.select %18, %19, %12 : vector<9x64xi1>, vector<9x64xf32>
    %c0_11 = arith.constant 0 : index
    %c0_12 = arith.constant 0 : index
    %21 = vector.load %arg6[%c0_11, %c0_12] : memref<9x64xf32, #tpu.memory_space<vmem>>, vector<9x64xf32>
    tpu.vector_store %arg6[%c0_11, %c0_12], %20 {strides = array<i32>} : memref<9x64xf32, #tpu.memory_space<vmem>>, vector<9x64xf32>,
    return
  }
  func.func @transform_0(%arg0: i32) -> (i32, i32) {
    %c0_i32 = arith.constant 0 : i32
    %c0_i32_0 = arith.constant 0 : i32
    return %arg0, %c0_i32 : i32, i32
  }
  func.func @transform_1(%arg0: i32) -> (i32, i32) {
    %c0_i32 = arith.constant 0 : i32
    %c0_i32_0 = arith.constant 0 : i32
    return %arg0, %c0_i32 : i32, i32
  }
  func.func @transform_2(%arg0: i32) -> (i32, i32) {
    %c0_i32 = arith.constant 0 : i32
    %c0_i32_0 = arith.constant 0 : i32
    return %arg0, %c0_i32 : i32, i32
  }
  func.func @transform_3(%arg0: i32) -> (i32, i32) {
    %c0_i32 = arith.constant 0 : i32
    %c0_i32_0 = arith.constant 0 : i32
    return %arg0, %c0_i32 : i32, i32
  }
  func.func @transform_4(%arg0: i32) -> (i32, i32) {
    %c0_i32 = arith.constant 0 : i32
    %c0_i32_0 = arith.constant 0 : i32
    return %arg0, %c0_i32 : i32, i32
  }
  func.func @transform_5(%arg0: i32) -> (i32, i32) {
    %c0_i32 = arith.constant 0 : i32
    %c0_i32_0 = arith.constant 0 : i32
    return %arg0, %c0_i32 : i32, i32
  }
}

module attributes {stable_mosaic.version = 11 : i64} {
  func.func @_combine_kernel(%arg0: i32, %arg1: memref<9x64xf32, #tpu.memory_space<vmem>>, %arg2: memref<9x64xf32, #tpu.memory_space<vmem>>, %arg3: memref<9x64xf32, #tpu.memory_space<vmem>>, %arg4: memref<9x64xf32, #tpu.memory_space<vmem>>) attributes {dimension_semantics = [#tpu.dimension_semantics<parallel>], iteration_bounds = array<i64: 1>, scalar_prefetch = 0 : i64, scratch_operands = 0 : i64, tpu.core_type = #tpu.core_type<tc>, window_params = [{transform_indices = @transform_0, window_bounds = array<i64: 9, 64>}, {transform_indices = @transform_1, window_bounds = array<i64: 9, 64>}, {transform_indices = @transform_2, window_bounds = array<i64: 9, 64>}, {transform_indices = @transform_3, window_bounds = array<i64: 9, 64>}]} {
    %c0 = arith.constant 0 : index
    %c0_0 = arith.constant 0 : index
    %0 = vector.load %arg1[%c0, %c0_0] : memref<9x64xf32, #tpu.memory_space<vmem>>, vector<9x64xf32>
    %cst = arith.constant 1.000000e+00 : f32
    %1 = vector.broadcast %cst : f32 to vector<9x64xf32>
    %2 = arith.mulf %0, %1 : vector<9x64xf32>
    %c0_1 = arith.constant 0 : index
    %c0_2 = arith.constant 0 : index
    %3 = vector.load %arg2[%c0_1, %c0_2] : memref<9x64xf32, #tpu.memory_space<vmem>>, vector<9x64xf32>
    %4 = arith.addf %2, %3 : vector<9x64xf32>
    %c0_3 = arith.constant 0 : index
    %c0_4 = arith.constant 0 : index
    %5 = vector.load %arg3[%c0_3, %c0_4] : memref<9x64xf32, #tpu.memory_space<vmem>>, vector<9x64xf32>
    %6 = arith.addf %4, %5 : vector<9x64xf32>
    %cst_5 = arith.constant 0.333333343 : f32
    %7 = vector.broadcast %cst_5 : f32 to vector<9x64xf32>
    %8 = arith.mulf %6, %7 : vector<9x64xf32>
    %c9_i32 = arith.constant 9 : i32
    %9 = arith.muli %arg0, %c9_i32 : i32
    %10 = tpu.iota {dimensions = array<i32: 0>} : vector<9x64xi32>
    %11 = vector.broadcast %9 : i32 to vector<9x64xi32>
    %12 = arith.addi %11, %10 : vector<9x64xi32>
    %c0_i32 = arith.constant 0 : i32
    %13 = vector.broadcast %c0_i32 : i32 to vector<9x64xi32>
    %14 = arith.cmpi eq, %12, %13 : vector<9x64xi32>
    %cst_6 = arith.constant 0.000000e+00 : f32
    %15 = vector.broadcast %cst_6 : f32 to vector<9x64xf32>
    %16 = arith.select %14, %15, %8 : vector<9x64xi1>, vector<9x64xf32>
    %c0_7 = arith.constant 0 : index
    %c0_8 = arith.constant 0 : index
    %17 = vector.load %arg4[%c0_7, %c0_8] : memref<9x64xf32, #tpu.memory_space<vmem>>, vector<9x64xf32>
    tpu.vector_store %arg4[%c0_7, %c0_8], %16 {strides = array<i32>} : memref<9x64xf32, #tpu.memory_space<vmem>>, vector<9x64xf32>,
    return
  }
  func.func @transform_0(%arg0: i32) -> (i32, i32) {
    %c0_i32 = arith.constant 0 : i32
    %c0_i32_0 = arith.constant 0 : i32
    return %arg0, %c0_i32 : i32, i32
  }
  func.func @transform_1(%arg0: i32) -> (i32, i32) {
    %c0_i32 = arith.constant 0 : i32
    %c0_i32_0 = arith.constant 0 : i32
    return %arg0, %c0_i32 : i32, i32
  }
  func.func @transform_2(%arg0: i32) -> (i32, i32) {
    %c0_i32 = arith.constant 0 : i32
    %c0_i32_0 = arith.constant 0 : i32
    return %arg0, %c0_i32 : i32, i32
  }
  func.func @transform_3(%arg0: i32) -> (i32, i32) {
    %c0_i32 = arith.constant 0 : i32
    %c0_i32_0 = arith.constant 0 : i32
    return %arg0, %c0_i32 : i32, i32
  }
}

module attributes {stable_mosaic.version = 11 : i64} {
  func.func @_embeds_score_kernel(%arg0: i32, %arg1: memref<2x4x64xf32, #tpu.memory_space<vmem>>, %arg2: memref<2x4x5x64xbf16, #tpu.memory_space<vmem>>, %arg3: memref<2x4x5xf32, #tpu.memory_space<vmem>>, %arg4: memref<2x4x5x64xbf16, #tpu.memory_space<vmem>>, %arg5: memref<128x64xbf16, #tpu.memory_space<vmem>>, %arg6: memref<1x64xf32, #tpu.memory_space<vmem>>, %arg7: memref<2x64x64xbf16, #tpu.memory_space<vmem>>, %arg8: memref<1x64xf32, #tpu.memory_space<vmem>>, %arg9: memref<1x64xf32, #tpu.memory_space<vmem>>, %arg10: memref<1x64xf32, #tpu.memory_space<vmem>>, %arg11: memref<1x1xf32, #tpu.memory_space<vmem>>, %arg12: memref<1x64xf32, #tpu.memory_space<vmem>>, %arg13: memref<1x64xf32, #tpu.memory_space<vmem>>, %arg14: memref<1x1xf32, #tpu.memory_space<vmem>>, %arg15: memref<128x64xbf16, #tpu.memory_space<vmem>>, %arg16: memref<1x64xf32, #tpu.memory_space<vmem>>, %arg17: memref<4x1xf32, #tpu.memory_space<vmem>>) attributes {dimension_semantics = [#tpu.dimension_semantics<parallel>], iteration_bounds = array<i64: 1>, scalar_prefetch = 0 : i64, scratch_operands = 0 : i64, tpu.core_type = #tpu.core_type<tc>, window_params = [{transform_indices = @transform_0, window_bounds = array<i64: 2, 4, 64>}, {transform_indices = @transform_1, window_bounds = array<i64: 2, 4, 5, 64>}, {transform_indices = @transform_2, window_bounds = array<i64: 2, 4, 5>}, {transform_indices = @transform_3, window_bounds = array<i64: 2, 4, 5, 64>}, {pipeline_mode = #tpu.pipeline_mode<synchronous>, transform_indices = @transform_4, window_bounds = array<i64: 128, 64>}, {pipeline_mode = #tpu.pipeline_mode<synchronous>, transform_indices = @transform_5, window_bounds = array<i64: 1, 64>}, {pipeline_mode = #tpu.pipeline_mode<synchronous>, transform_indices = @transform_6, window_bounds = array<i64: 2, 64, 64>}, {pipeline_mode = #tpu.pipeline_mode<synchronous>, transform_indices = @transform_7, window_bounds = array<i64: 1, 64>}, {pipeline_mode = #tpu.pipeline_mode<synchronous>, transform_indices = @transform_8, window_bounds = array<i64: 1, 64>}, {pipeline_mode = #tpu.pipeline_mode<synchronous>, transform_indices = @transform_9, window_bounds = array<i64: 1, 64>}, {pipeline_mode = #tpu.pipeline_mode<synchronous>, transform_indices = @transform_10, window_bounds = array<i64: 1, 1>}, {pipeline_mode = #tpu.pipeline_mode<synchronous>, transform_indices = @transform_11, window_bounds = array<i64: 1, 64>}, {pipeline_mode = #tpu.pipeline_mode<synchronous>, transform_indices = @transform_12, window_bounds = array<i64: 1, 64>}, {pipeline_mode = #tpu.pipeline_mode<synchronous>, transform_indices = @transform_13, window_bounds = array<i64: 1, 1>}, {pipeline_mode = #tpu.pipeline_mode<synchronous>, transform_indices = @transform_14, window_bounds = array<i64: 128, 64>}, {pipeline_mode = #tpu.pipeline_mode<synchronous>, transform_indices = @transform_15, window_bounds = array<i64: 1, 64>}, {transform_indices = @transform_16, window_bounds = array<i64: 4, 1>}]} {
    %c0 = arith.constant 0 : index
    %c0_0 = arith.constant 0 : index
    %0 = vector.load %arg5[%c0, %c0_0] : memref<128x64xbf16, #tpu.memory_space<vmem>>, vector<128x64xbf16>
    %c0_1 = arith.constant 0 : index
    %c0_2 = arith.constant 0 : index
    %1 = vector.load %arg6[%c0_1, %c0_2] : memref<1x64xf32, #tpu.memory_space<vmem>>, vector<1x64xf32>
    %c0_3 = arith.constant 0 : index
    %c0_4 = arith.constant 0 : index
    %2 = vector.load %arg15[%c0_3, %c0_4] : memref<128x64xbf16, #tpu.memory_space<vmem>>, vector<128x64xbf16>
    %c0_5 = arith.constant 0 : index
    %c0_6 = arith.constant 0 : index
    %3 = vector.load %arg16[%c0_5, %c0_6] : memref<1x64xf32, #tpu.memory_space<vmem>>, vector<1x64xf32>
    %c0_7 = arith.constant 0 : index
    %c0_8 = arith.constant 0 : index
    %4 = vector.load %arg8[%c0_7, %c0_8] : memref<1x64xf32, #tpu.memory_space<vmem>>, vector<1x64xf32>
    %c0_9 = arith.constant 0 : index
    %c0_10 = arith.constant 0 : index
    %5 = vector.load %arg9[%c0_9, %c0_10] : memref<1x64xf32, #tpu.memory_space<vmem>>, vector<1x64xf32>
    %c0_11 = arith.constant 0 : index
    %c0_12 = arith.constant 0 : index
    %6 = vector.load %arg10[%c0_11, %c0_12] : memref<1x64xf32, #tpu.memory_space<vmem>>, vector<1x64xf32>
    %c0_13 = arith.constant 0 : index
    %c0_14 = arith.constant 0 : index
    %7 = vector.load %arg11[%c0_13, %c0_14] : memref<1x1xf32, #tpu.memory_space<vmem>>, vector<1x1xf32>
    %c0_15 = arith.constant 0 : index
    %c0_16 = arith.constant 0 : index
    %8 = vector.load %arg12[%c0_15, %c0_16] : memref<1x64xf32, #tpu.memory_space<vmem>>, vector<1x64xf32>
    %c0_17 = arith.constant 0 : index
    %c0_18 = arith.constant 0 : index
    %9 = vector.load %arg13[%c0_17, %c0_18] : memref<1x64xf32, #tpu.memory_space<vmem>>, vector<1x64xf32>
    %c0_19 = arith.constant 0 : index
    %c0_20 = arith.constant 0 : index
    %10 = vector.load %arg14[%c0_19, %c0_20] : memref<1x1xf32, #tpu.memory_space<vmem>>, vector<1x1xf32>
    %c0_21 = arith.constant 0 : index
    %c0_22 = arith.constant 0 : index
    %c0_23 = arith.constant 0 : index
    %11 = vector.load %arg1[%c0_21, %c0_22, %c0_23] : memref<2x4x64xf32, #tpu.memory_space<vmem>>, vector<1x4x64xf32>
    %12 = vector.shape_cast %11 : vector<1x4x64xf32> to vector<4x64xf32>
    %c1 = arith.constant 1 : index
    %c0_24 = arith.constant 0 : index
    %c0_25 = arith.constant 0 : index
    %13 = vector.load %arg1[%c1, %c0_24, %c0_25] : memref<2x4x64xf32, #tpu.memory_space<vmem>>, vector<1x4x64xf32>
    %14 = vector.shape_cast %13 : vector<1x4x64xf32> to vector<4x64xf32>
    %15 = tpu.concatenate %12, %14 in 1 : vector<4x64xf32>, vector<4x64xf32> -> vector<4x128xf32>
    %16 = arith.truncf %15 : vector<4x128xf32> to vector<4x128xbf16>
    %cst = arith.constant dense<0.000000e+00> : vector<4x64xf32>
    %17 = tpu.matmul %16, %0, %cst {dimension_numbers = #tpu.dot_dimension_numbers<[1], [0], [0], [1], [0, 0, 1, 1], [], []>} : vector<4x128xbf16>, vector<128x64xbf16>, vector<4x64xf32> -> vector<4x64xf32>
    %18 = vector.broadcast %1 : vector<1x64xf32> to vector<4x64xf32>
    %19 = arith.addf %17, %18 : vector<4x64xf32>
    %c0_26 = arith.constant 0 : index
    %c0_27 = arith.constant 0 : index
    %c0_28 = arith.constant 0 : index
    %c0_29 = arith.constant 0 : index
    %20 = vector.load %arg2[%c0_26, %c0_27, %c0_28, %c0_29] : memref<2x4x5x64xbf16, #tpu.memory_space<vmem>>, vector<1x4x5x64xbf16>
    %21 = vector.shape_cast %20 : vector<1x4x5x64xbf16> to vector<4x5x64xbf16>
    %22 = arith.extf %21 : vector<4x5x64xbf16> to vector<4x5x64xf32>
    %c0_30 = arith.constant 0 : index
    %c0_31 = arith.constant 0 : index
    %c0_32 = arith.constant 0 : index
    %23 = vector.load %arg3[%c0_30, %c0_31, %c0_32] : memref<2x4x5xf32, #tpu.memory_space<vmem>>, vector<1x4x5xf32>
    %24 = vector.shape_cast %23 : vector<1x4x5xf32> to vector<4x5xf32>
    %25 = vector.extract_strided_slice %22 {offsets = [0, 0, 0], sizes = [4, 1, 64], strides = [1, 1, 1]} : vector<4x5x64xf32> to vector<4x1x64xf32>
    %26 = vector.shape_cast %25 : vector<4x1x64xf32> to vector<4x64xf32>
    %27 = arith.subf %19, %26 : vector<4x64xf32>
    %28 = arith.mulf %27, %27 : vector<4x64xf32>
    %cst_33 = arith.constant dense<0.000000e+00> : vector<4xf32>
    %29 = vector.multi_reduction <add>, %28, %cst_33 [1] : vector<4x64xf32> to vector<4xf32>
    %30 = vector.shape_cast %29 : vector<4xf32> to vector<4x1xf32>
    %cst_34 = arith.constant 0.000000e+00 : f32
    %31 = vector.broadcast %cst_34 : f32 to vector<4x1xf32>
    %32 = arith.subf %31, %30 : vector<4x1xf32>
    %33 = vector.broadcast %4 : vector<1x64xf32> to vector<4x64xf32>
    %34 = arith.mulf %26, %33 : vector<4x64xf32>
    %cst_35 = arith.constant dense<0.000000e+00> : vector<4xf32>
    %35 = vector.multi_reduction <add>, %34, %cst_35 [1] : vector<4x64xf32> to vector<4xf32>
    %36 = vector.shape_cast %35 : vector<4xf32> to vector<4x1xf32>
    %37 = vector.extract_strided_slice %24 {offsets = [0, 0], sizes = [4, 1], strides = [1, 1]} : vector<4x5xf32> to vector<4x1xf32>
    %38 = arith.addf %36, %37 : vector<4x1xf32>
    %39 = vector.extract_strided_slice %22 {offsets = [0, 1, 0], sizes = [4, 1, 64], strides = [1, 1, 1]} : vector<4x5x64xf32> to vector<4x1x64xf32>
    %40 = vector.shape_cast %39 : vector<4x1x64xf32> to vector<4x64xf32>
    %41 = arith.subf %19, %40 : vector<4x64xf32>
    %42 = arith.mulf %41, %41 : vector<4x64xf32>
    %cst_36 = arith.constant dense<0.000000e+00> : vector<4xf32>
    %43 = vector.multi_reduction <add>, %42, %cst_36 [1] : vector<4x64xf32> to vector<4xf32>
    %44 = vector.shape_cast %43 : vector<4xf32> to vector<4x1xf32>
    %cst_37 = arith.constant 0.000000e+00 : f32
    %45 = vector.broadcast %cst_37 : f32 to vector<4x1xf32>
    %46 = arith.subf %45, %44 : vector<4x1xf32>
    %47 = vector.broadcast %4 : vector<1x64xf32> to vector<4x64xf32>
    %48 = arith.mulf %40, %47 : vector<4x64xf32>
    %cst_38 = arith.constant dense<0.000000e+00> : vector<4xf32>
    %49 = vector.multi_reduction <add>, %48, %cst_38 [1] : vector<4x64xf32> to vector<4xf32>
    %50 = vector.shape_cast %49 : vector<4xf32> to vector<4x1xf32>
    %51 = vector.extract_strided_slice %24 {offsets = [0, 1], sizes = [4, 1], strides = [1, 1]} : vector<4x5xf32> to vector<4x1xf32>
    %52 = arith.addf %50, %51 : vector<4x1xf32>
    %53 = vector.extract_strided_slice %22 {offsets = [0, 2, 0], sizes = [4, 1, 64], strides = [1, 1, 1]} : vector<4x5x64xf32> to vector<4x1x64xf32>
    %54 = vector.shape_cast %53 : vector<4x1x64xf32> to vector<4x64xf32>
    %55 = arith.subf %19, %54 : vector<4x64xf32>
    %56 = arith.mulf %55, %55 : vector<4x64xf32>
    %cst_39 = arith.constant dense<0.000000e+00> : vector<4xf32>
    %57 = vector.multi_reduction <add>, %56, %cst_39 [1] : vector<4x64xf32> to vector<4xf32>
    %58 = vector.shape_cast %57 : vector<4xf32> to vector<4x1xf32>
    %cst_40 = arith.constant 0.000000e+00 : f32
    %59 = vector.broadcast %cst_40 : f32 to vector<4x1xf32>
    %60 = arith.subf %59, %58 : vector<4x1xf32>
    %61 = vector.broadcast %4 : vector<1x64xf32> to vector<4x64xf32>
    %62 = arith.mulf %54, %61 : vector<4x64xf32>
    %cst_41 = arith.constant dense<0.000000e+00> : vector<4xf32>
    %63 = vector.multi_reduction <add>, %62, %cst_41 [1] : vector<4x64xf32> to vector<4xf32>
    %64 = vector.shape_cast %63 : vector<4xf32> to vector<4x1xf32>
    %65 = vector.extract_strided_slice %24 {offsets = [0, 2], sizes = [4, 1], strides = [1, 1]} : vector<4x5xf32> to vector<4x1xf32>
    %66 = arith.addf %64, %65 : vector<4x1xf32>
    %67 = vector.extract_strided_slice %22 {offsets = [0, 3, 0], sizes = [4, 1, 64], strides = [1, 1, 1]} : vector<4x5x64xf32> to vector<4x1x64xf32>
    %68 = vector.shape_cast %67 : vector<4x1x64xf32> to vector<4x64xf32>
    %69 = arith.subf %19, %68 : vector<4x64xf32>
    %70 = arith.mulf %69, %69 : vector<4x64xf32>
    %cst_42 = arith.constant dense<0.000000e+00> : vector<4xf32>
    %71 = vector.multi_reduction <add>, %70, %cst_42 [1] : vector<4x64xf32> to vector<4xf32>
    %72 = vector.shape_cast %71 : vector<4xf32> to vector<4x1xf32>
    %cst_43 = arith.constant 0.000000e+00 : f32
    %73 = vector.broadcast %cst_43 : f32 to vector<4x1xf32>
    %74 = arith.subf %73, %72 : vector<4x1xf32>
    %75 = vector.broadcast %4 : vector<1x64xf32> to vector<4x64xf32>
    %76 = arith.mulf %68, %75 : vector<4x64xf32>
    %cst_44 = arith.constant dense<0.000000e+00> : vector<4xf32>
    %77 = vector.multi_reduction <add>, %76, %cst_44 [1] : vector<4x64xf32> to vector<4xf32>
    %78 = vector.shape_cast %77 : vector<4xf32> to vector<4x1xf32>
    %79 = vector.extract_strided_slice %24 {offsets = [0, 3], sizes = [4, 1], strides = [1, 1]} : vector<4x5xf32> to vector<4x1xf32>
    %80 = arith.addf %78, %79 : vector<4x1xf32>
    %81 = vector.extract_strided_slice %22 {offsets = [0, 4, 0], sizes = [4, 1, 64], strides = [1, 1, 1]} : vector<4x5x64xf32> to vector<4x1x64xf32>
    %82 = vector.shape_cast %81 : vector<4x1x64xf32> to vector<4x64xf32>
    %83 = arith.subf %19, %82 : vector<4x64xf32>
    %84 = arith.mulf %83, %83 : vector<4x64xf32>
    %cst_45 = arith.constant dense<0.000000e+00> : vector<4xf32>
    %85 = vector.multi_reduction <add>, %84, %cst_45 [1] : vector<4x64xf32> to vector<4xf32>
    %86 = vector.shape_cast %85 : vector<4xf32> to vector<4x1xf32>
    %cst_46 = arith.constant 0.000000e+00 : f32
    %87 = vector.broadcast %cst_46 : f32 to vector<4x1xf32>
    %88 = arith.subf %87, %86 : vector<4x1xf32>
    %89 = vector.broadcast %4 : vector<1x64xf32> to vector<4x64xf32>
    %90 = arith.mulf %82, %89 : vector<4x64xf32>
    %cst_47 = arith.constant dense<0.000000e+00> : vector<4xf32>
    %91 = vector.multi_reduction <add>, %90, %cst_47 [1] : vector<4x64xf32> to vector<4xf32>
    %92 = vector.shape_cast %91 : vector<4xf32> to vector<4x1xf32>
    %93 = vector.extract_strided_slice %24 {offsets = [0, 4], sizes = [4, 1], strides = [1, 1]} : vector<4x5xf32> to vector<4x1xf32>
    %94 = arith.addf %92, %93 : vector<4x1xf32>
    %cst_48 = arith.constant 0.000000e+00 : f32
    %95 = vector.broadcast %cst_48 : f32 to vector<4x1xf32>
    %cst_49 = arith.constant 0.000000e+00 : f32
    %96 = vector.broadcast %cst_49 : f32 to vector<4x1xf32>
    %cst_50 = arith.constant 0.000000e+00 : f32
    %97 = vector.broadcast %cst_50 : f32 to vector<4x1xf32>
    %cst_51 = arith.constant 0.000000e+00 : f32
    %98 = vector.broadcast %cst_51 : f32 to vector<4x1xf32>
    %cst_52 = arith.constant 0.000000e+00 : f32
    %99 = vector.broadcast %cst_52 : f32 to vector<4x1xf32>
    %cst_53 = arith.constant 1.000000e+30 : f32
    %100 = vector.broadcast %cst_53 : f32 to vector<4x1xf32>
    %101 = arith.mulf %95, %100 : vector<4x1xf32>
    %102 = arith.subf %32, %101 : vector<4x1xf32>
    %cst_54 = arith.constant 1.000000e+30 : f32
    %103 = vector.broadcast %cst_54 : f32 to vector<4x1xf32>
    %104 = arith.mulf %96, %103 : vector<4x1xf32>
    %105 = arith.subf %46, %104 : vector<4x1xf32>
    %cst_55 = arith.constant 1.000000e+30 : f32
    %106 = vector.broadcast %cst_55 : f32 to vector<4x1xf32>
    %107 = arith.mulf %97, %106 : vector<4x1xf32>
    %108 = arith.subf %60, %107 : vector<4x1xf32>
    %cst_56 = arith.constant 1.000000e+30 : f32
    %109 = vector.broadcast %cst_56 : f32 to vector<4x1xf32>
    %110 = arith.mulf %98, %109 : vector<4x1xf32>
    %111 = arith.subf %74, %110 : vector<4x1xf32>
    %cst_57 = arith.constant 1.000000e+30 : f32
    %112 = vector.broadcast %cst_57 : f32 to vector<4x1xf32>
    %113 = arith.mulf %99, %112 : vector<4x1xf32>
    %114 = arith.subf %88, %113 : vector<4x1xf32>
    %115 = arith.maximumf %102, %105 : vector<4x1xf32>
    %116 = arith.maximumf %115, %108 : vector<4x1xf32>
    %117 = arith.maximumf %116, %111 : vector<4x1xf32>
    %118 = arith.maximumf %117, %114 : vector<4x1xf32>
    %cst_58 = arith.constant 0.000000e+00 : f32
    %119 = vector.broadcast %cst_58 : f32 to vector<4x1xf32>
    %120 = arith.cmpf oge, %102, %118 : vector<4x1xf32>
    %cst_59 = arith.constant 5.000000e-01 : f32
    %121 = vector.broadcast %cst_59 : f32 to vector<4x1xf32>
    %122 = arith.cmpf olt, %119, %121 : vector<4x1xf32>
    %123 = arith.andi %120, %122 : vector<4x1xi1>
    %cst_60 = arith.constant 1.000000e+00 : f32
    %cst_61 = arith.constant 0.000000e+00 : f32
    %124 = vector.broadcast %cst_60 : f32 to vector<4x1xf32>
    %125 = vector.broadcast %cst_61 : f32 to vector<4x1xf32>
    %126 = arith.select %123, %124, %125 : vector<4x1xi1>, vector<4x1xf32>
    %127 = arith.addf %119, %126 : vector<4x1xf32>
    %128 = arith.addf %95, %126 : vector<4x1xf32>
    %129 = arith.cmpf oge, %105, %118 : vector<4x1xf32>
    %cst_62 = arith.constant 5.000000e-01 : f32
    %130 = vector.broadcast %cst_62 : f32 to vector<4x1xf32>
    %131 = arith.cmpf olt, %127, %130 : vector<4x1xf32>
    %132 = arith.andi %129, %131 : vector<4x1xi1>
    %cst_63 = arith.constant 1.000000e+00 : f32
    %cst_64 = arith.constant 0.000000e+00 : f32
    %133 = vector.broadcast %cst_63 : f32 to vector<4x1xf32>
    %134 = vector.broadcast %cst_64 : f32 to vector<4x1xf32>
    %135 = arith.select %132, %133, %134 : vector<4x1xi1>, vector<4x1xf32>
    %136 = arith.addf %127, %135 : vector<4x1xf32>
    %137 = arith.addf %96, %135 : vector<4x1xf32>
    %138 = arith.cmpf oge, %108, %118 : vector<4x1xf32>
    %cst_65 = arith.constant 5.000000e-01 : f32
    %139 = vector.broadcast %cst_65 : f32 to vector<4x1xf32>
    %140 = arith.cmpf olt, %136, %139 : vector<4x1xf32>
    %141 = arith.andi %138, %140 : vector<4x1xi1>
    %cst_66 = arith.constant 1.000000e+00 : f32
    %cst_67 = arith.constant 0.000000e+00 : f32
    %142 = vector.broadcast %cst_66 : f32 to vector<4x1xf32>
    %143 = vector.broadcast %cst_67 : f32 to vector<4x1xf32>
    %144 = arith.select %141, %142, %143 : vector<4x1xi1>, vector<4x1xf32>
    %145 = arith.addf %136, %144 : vector<4x1xf32>
    %146 = arith.addf %97, %144 : vector<4x1xf32>
    %147 = arith.cmpf oge, %111, %118 : vector<4x1xf32>
    %cst_68 = arith.constant 5.000000e-01 : f32
    %148 = vector.broadcast %cst_68 : f32 to vector<4x1xf32>
    %149 = arith.cmpf olt, %145, %148 : vector<4x1xf32>
    %150 = arith.andi %147, %149 : vector<4x1xi1>
    %cst_69 = arith.constant 1.000000e+00 : f32
    %cst_70 = arith.constant 0.000000e+00 : f32
    %151 = vector.broadcast %cst_69 : f32 to vector<4x1xf32>
    %152 = vector.broadcast %cst_70 : f32 to vector<4x1xf32>
    %153 = arith.select %150, %151, %152 : vector<4x1xi1>, vector<4x1xf32>
    %154 = arith.addf %145, %153 : vector<4x1xf32>
    %155 = arith.addf %98, %153 : vector<4x1xf32>
    %156 = arith.cmpf oge, %114, %118 : vector<4x1xf32>
    %cst_71 = arith.constant 5.000000e-01 : f32
    %157 = vector.broadcast %cst_71 : f32 to vector<4x1xf32>
    %158 = arith.cmpf olt, %154, %157 : vector<4x1xf32>
    %159 = arith.andi %156, %158 : vector<4x1xi1>
    %cst_72 = arith.constant 1.000000e+00 : f32
    %cst_73 = arith.constant 0.000000e+00 : f32
    %160 = vector.broadcast %cst_72 : f32 to vector<4x1xf32>
    %161 = vector.broadcast %cst_73 : f32 to vector<4x1xf32>
    %162 = arith.select %159, %160, %161 : vector<4x1xi1>, vector<4x1xf32>
    %163 = arith.addf %99, %162 : vector<4x1xf32>
    %cst_74 = arith.constant 1.000000e+30 : f32
    %164 = vector.broadcast %cst_74 : f32 to vector<4x1xf32>
    %165 = arith.mulf %128, %164 : vector<4x1xf32>
    %166 = arith.subf %32, %165 : vector<4x1xf32>
    %cst_75 = arith.constant 1.000000e+30 : f32
    %167 = vector.broadcast %cst_75 : f32 to vector<4x1xf32>
    %168 = arith.mulf %137, %167 : vector<4x1xf32>
    %169 = arith.subf %46, %168 : vector<4x1xf32>
    %cst_76 = arith.constant 1.000000e+30 : f32
    %170 = vector.broadcast %cst_76 : f32 to vector<4x1xf32>
    %171 = arith.mulf %146, %170 : vector<4x1xf32>
    %172 = arith.subf %60, %171 : vector<4x1xf32>
    %cst_77 = arith.constant 1.000000e+30 : f32
    %173 = vector.broadcast %cst_77 : f32 to vector<4x1xf32>
    %174 = arith.mulf %155, %173 : vector<4x1xf32>
    %175 = arith.subf %74, %174 : vector<4x1xf32>
    %cst_78 = arith.constant 1.000000e+30 : f32
    %176 = vector.broadcast %cst_78 : f32 to vector<4x1xf32>
    %177 = arith.mulf %163, %176 : vector<4x1xf32>
    %178 = arith.subf %88, %177 : vector<4x1xf32>
    %179 = arith.maximumf %166, %169 : vector<4x1xf32>
    %180 = arith.maximumf %179, %172 : vector<4x1xf32>
    %181 = arith.maximumf %180, %175 : vector<4x1xf32>
    %182 = arith.maximumf %181, %178 : vector<4x1xf32>
    %cst_79 = arith.constant 0.000000e+00 : f32
    %183 = vector.broadcast %cst_79 : f32 to vector<4x1xf32>
    %184 = arith.cmpf oge, %166, %182 : vector<4x1xf32>
    %cst_80 = arith.constant 5.000000e-01 : f32
    %185 = vector.broadcast %cst_80 : f32 to vector<4x1xf32>
    %186 = arith.cmpf olt, %183, %185 : vector<4x1xf32>
    %187 = arith.andi %184, %186 : vector<4x1xi1>
    %cst_81 = arith.constant 1.000000e+00 : f32
    %cst_82 = arith.constant 0.000000e+00 : f32
    %188 = vector.broadcast %cst_81 : f32 to vector<4x1xf32>
    %189 = vector.broadcast %cst_82 : f32 to vector<4x1xf32>
    %190 = arith.select %187, %188, %189 : vector<4x1xi1>, vector<4x1xf32>
    %191 = arith.addf %183, %190 : vector<4x1xf32>
    %192 = arith.cmpf oge, %169, %182 : vector<4x1xf32>
    %cst_83 = arith.constant 5.000000e-01 : f32
    %193 = vector.broadcast %cst_83 : f32 to vector<4x1xf32>
    %194 = arith.cmpf olt, %191, %193 : vector<4x1xf32>
    %195 = arith.andi %192, %194 : vector<4x1xi1>
    %cst_84 = arith.constant 1.000000e+00 : f32
    %cst_85 = arith.constant 0.000000e+00 : f32
    %196 = vector.broadcast %cst_84 : f32 to vector<4x1xf32>
    %197 = vector.broadcast %cst_85 : f32 to vector<4x1xf32>
    %198 = arith.select %195, %196, %197 : vector<4x1xi1>, vector<4x1xf32>
    %199 = arith.addf %191, %198 : vector<4x1xf32>
    %200 = arith.cmpf oge, %172, %182 : vector<4x1xf32>
    %cst_86 = arith.constant 5.000000e-01 : f32
    %201 = vector.broadcast %cst_86 : f32 to vector<4x1xf32>
    %202 = arith.cmpf olt, %199, %201 : vector<4x1xf32>
    %203 = arith.andi %200, %202 : vector<4x1xi1>
    %cst_87 = arith.constant 1.000000e+00 : f32
    %cst_88 = arith.constant 0.000000e+00 : f32
    %204 = vector.broadcast %cst_87 : f32 to vector<4x1xf32>
    %205 = vector.broadcast %cst_88 : f32 to vector<4x1xf32>
    %206 = arith.select %203, %204, %205 : vector<4x1xi1>, vector<4x1xf32>
    %207 = arith.addf %199, %206 : vector<4x1xf32>
    %208 = arith.cmpf oge, %175, %182 : vector<4x1xf32>
    %cst_89 = arith.constant 5.000000e-01 : f32
    %209 = vector.broadcast %cst_89 : f32 to vector<4x1xf32>
    %210 = arith.cmpf olt, %207, %209 : vector<4x1xf32>
    %211 = arith.andi %208, %210 : vector<4x1xi1>
    %cst_90 = arith.constant 1.000000e+00 : f32
    %cst_91 = arith.constant 0.000000e+00 : f32
    %212 = vector.broadcast %cst_90 : f32 to vector<4x1xf32>
    %213 = vector.broadcast %cst_91 : f32 to vector<4x1xf32>
    %214 = arith.select %211, %212, %213 : vector<4x1xi1>, vector<4x1xf32>
    %215 = arith.addf %207, %214 : vector<4x1xf32>
    %216 = arith.cmpf oge, %178, %182 : vector<4x1xf32>
    %cst_92 = arith.constant 5.000000e-01 : f32
    %217 = vector.broadcast %cst_92 : f32 to vector<4x1xf32>
    %218 = arith.cmpf olt, %215, %217 : vector<4x1xf32>
    %219 = arith.andi %216, %218 : vector<4x1xi1>
    %cst_93 = arith.constant 1.000000e+00 : f32
    %cst_94 = arith.constant 0.000000e+00 : f32
    %220 = vector.broadcast %cst_93 : f32 to vector<4x1xf32>
    %221 = vector.broadcast %cst_94 : f32 to vector<4x1xf32>
    %222 = arith.select %219, %220, %221 : vector<4x1xi1>, vector<4x1xf32>
    %cst_95 = arith.constant 0.000000e+00 : f32
    %223 = vector.broadcast %cst_95 : f32 to vector<4x1xf32>
    %224 = arith.mulf %126, %38 : vector<4x1xf32>
    %225 = arith.addf %223, %224 : vector<4x1xf32>
    %226 = arith.mulf %135, %52 : vector<4x1xf32>
    %227 = arith.addf %225, %226 : vector<4x1xf32>
    %228 = arith.mulf %144, %66 : vector<4x1xf32>
    %229 = arith.addf %227, %228 : vector<4x1xf32>
    %230 = arith.mulf %153, %80 : vector<4x1xf32>
    %231 = arith.addf %229, %230 : vector<4x1xf32>
    %232 = arith.mulf %162, %94 : vector<4x1xf32>
    %233 = arith.addf %231, %232 : vector<4x1xf32>
    %cst_96 = arith.constant 0.000000e+00 : f32
    %234 = vector.broadcast %cst_96 : f32 to vector<4x1xf32>
    %235 = arith.mulf %190, %38 : vector<4x1xf32>
    %236 = arith.addf %234, %235 : vector<4x1xf32>
    %237 = arith.mulf %198, %52 : vector<4x1xf32>
    %238 = arith.addf %236, %237 : vector<4x1xf32>
    %239 = arith.mulf %206, %66 : vector<4x1xf32>
    %240 = arith.addf %238, %239 : vector<4x1xf32>
    %241 = arith.mulf %214, %80 : vector<4x1xf32>
    %242 = arith.addf %240, %241 : vector<4x1xf32>
    %243 = arith.mulf %222, %94 : vector<4x1xf32>
    %244 = arith.addf %242, %243 : vector<4x1xf32>
    %245 = arith.maximumf %233, %244 : vector<4x1xf32>
    %246 = arith.subf %233, %245 : vector<4x1xf32>
    %247 = math.exp %246 : vector<4x1xf32>
    %248 = arith.subf %244, %245 : vector<4x1xf32>
    %249 = math.exp %248 : vector<4x1xf32>
    %250 = arith.addf %247, %249 : vector<4x1xf32>
    %251 = tpu.reciprocal %250 {approx = true} : vector<4x1xf32> -> vector<4x1xf32>
    %252 = arith.mulf %247, %251 : vector<4x1xf32>
    %253 = arith.mulf %249, %251 : vector<4x1xf32>
    %cst_97 = arith.constant 0.000000e+00 : f32
    %254 = vector.broadcast %cst_97 : f32 to vector<4x64xf32>
    %cst_98 = arith.constant 0.000000e+00 : f32
    %255 = vector.broadcast %cst_98 : f32 to vector<4x1xf32>
    %256 = arith.mulf %252, %126 : vector<4x1xf32>
    %257 = arith.addf %255, %256 : vector<4x1xf32>
    %258 = arith.mulf %253, %190 : vector<4x1xf32>
    %259 = arith.addf %257, %258 : vector<4x1xf32>
    %260 = vector.broadcast %259 : vector<4x1xf32> to vector<4x64xf32>
    %261 = arith.mulf %260, %26 : vector<4x64xf32>
    %262 = arith.addf %254, %261 : vector<4x64xf32>
    %cst_99 = arith.constant 0.000000e+00 : f32
    %263 = vector.broadcast %cst_99 : f32 to vector<4x1xf32>
    %264 = arith.mulf %252, %135 : vector<4x1xf32>
    %265 = arith.addf %263, %264 : vector<4x1xf32>
    %266 = arith.mulf %253, %198 : vector<4x1xf32>
    %267 = arith.addf %265, %266 : vector<4x1xf32>
    %268 = vector.broadcast %267 : vector<4x1xf32> to vector<4x64xf32>
    %269 = arith.mulf %268, %40 : vector<4x64xf32>
    %270 = arith.addf %262, %269 : vector<4x64xf32>
    %cst_100 = arith.constant 0.000000e+00 : f32
    %271 = vector.broadcast %cst_100 : f32 to vector<4x1xf32>
    %272 = arith.mulf %252, %144 : vector<4x1xf32>
    %273 = arith.addf %271, %272 : vector<4x1xf32>
    %274 = arith.mulf %253, %206 : vector<4x1xf32>
    %275 = arith.addf %273, %274 : vector<4x1xf32>
    %276 = vector.broadcast %275 : vector<4x1xf32> to vector<4x64xf32>
    %277 = arith.mulf %276, %54 : vector<4x64xf32>
    %278 = arith.addf %270, %277 : vector<4x64xf32>
    %cst_101 = arith.constant 0.000000e+00 : f32
    %279 = vector.broadcast %cst_101 : f32 to vector<4x1xf32>
    %280 = arith.mulf %252, %153 : vector<4x1xf32>
    %281 = arith.addf %279, %280 : vector<4x1xf32>
    %282 = arith.mulf %253, %214 : vector<4x1xf32>
    %283 = arith.addf %281, %282 : vector<4x1xf32>
    %284 = vector.broadcast %283 : vector<4x1xf32> to vector<4x64xf32>
    %285 = arith.mulf %284, %68 : vector<4x64xf32>
    %286 = arith.addf %278, %285 : vector<4x64xf32>
    %cst_102 = arith.constant 0.000000e+00 : f32
    %287 = vector.broadcast %cst_102 : f32 to vector<4x1xf32>
    %288 = arith.mulf %252, %162 : vector<4x1xf32>
    %289 = arith.addf %287, %288 : vector<4x1xf32>
    %290 = arith.mulf %253, %222 : vector<4x1xf32>
    %291 = arith.addf %289, %290 : vector<4x1xf32>
    %292 = vector.broadcast %291 : vector<4x1xf32> to vector<4x64xf32>
    %293 = arith.mulf %292, %82 : vector<4x64xf32>
    %294 = arith.addf %286, %293 : vector<4x64xf32>
    %c0_103 = arith.constant 0 : index
    %c0_104 = arith.constant 0 : index
    %c0_105 = arith.constant 0 : index
    %295 = vector.load %arg7[%c0_103, %c0_104, %c0_105] : memref<2x64x64xbf16, #tpu.memory_space<vmem>>, vector<1x64x64xbf16>
    %296 = vector.shape_cast %295 : vector<1x64x64xbf16> to vector<64x64xbf16>
    %c0_106 = arith.constant 0 : index
    %c0_107 = arith.constant 0 : index
    %c0_108 = arith.constant 0 : index
    %c0_109 = arith.constant 0 : index
    %297 = vector.load %arg4[%c0_106, %c0_107, %c0_108, %c0_109] : memref<2x4x5x64xbf16, #tpu.memory_space<vmem>>, vector<1x4x5x64xbf16>
    %298 = vector.shape_cast %297 : vector<1x4x5x64xbf16> to vector<4x5x64xbf16>
    %299 = vector.broadcast %5 : vector<1x64xf32> to vector<4x64xf32>
    %300 = arith.mulf %12, %299 : vector<4x64xf32>
    %cst_110 = arith.constant dense<0.000000e+00> : vector<4xf32>
    %301 = vector.multi_reduction <add>, %300, %cst_110 [1] : vector<4x64xf32> to vector<4xf32>
    %302 = vector.shape_cast %301 : vector<4xf32> to vector<4x1xf32>
    %303 = vector.extract_strided_slice %298 {offsets = [0, 0, 0], sizes = [4, 1, 64], strides = [1, 1, 1]} : vector<4x5x64xbf16> to vector<4x1x64xbf16>
    %304 = vector.shape_cast %303 : vector<4x1x64xbf16> to vector<4x64xbf16>
    %cst_111 = arith.constant dense<0.000000e+00> : vector<4x64xf32>
    %305 = tpu.matmul %304, %296, %cst_111 {dimension_numbers = #tpu.dot_dimension_numbers<[1], [0], [0], [1], [0, 0, 1, 1], [], []>} : vector<4x64xbf16>, vector<64x64xbf16>, vector<4x64xf32> -> vector<4x64xf32>
    %306 = arith.subf %19, %305 : vector<4x64xf32>
    %307 = arith.mulf %306, %306 : vector<4x64xf32>
    %cst_112 = arith.constant dense<0.000000e+00> : vector<4xf32>
    %308 = vector.multi_reduction <add>, %307, %cst_112 [1] : vector<4x64xf32> to vector<4xf32>
    %309 = vector.shape_cast %308 : vector<4xf32> to vector<4x1xf32>
    %cst_113 = arith.constant 0.000000e+00 : f32
    %310 = vector.broadcast %cst_113 : f32 to vector<4x1xf32>
    %311 = arith.subf %310, %309 : vector<4x1xf32>
    %312 = arith.extf %304 : vector<4x64xbf16> to vector<4x64xf32>
    %313 = vector.broadcast %6 : vector<1x64xf32> to vector<4x64xf32>
    %314 = arith.mulf %312, %313 : vector<4x64xf32>
    %cst_114 = arith.constant dense<0.000000e+00> : vector<4xf32>
    %315 = vector.multi_reduction <add>, %314, %cst_114 [1] : vector<4x64xf32> to vector<4xf32>
    %316 = vector.shape_cast %315 : vector<4xf32> to vector<4x1xf32>
    %317 = vector.extract_strided_slice %298 {offsets = [0, 1, 0], sizes = [4, 1, 64], strides = [1, 1, 1]} : vector<4x5x64xbf16> to vector<4x1x64xbf16>
    %318 = vector.shape_cast %317 : vector<4x1x64xbf16> to vector<4x64xbf16>
    %cst_115 = arith.constant dense<0.000000e+00> : vector<4x64xf32>
    %319 = tpu.matmul %318, %296, %cst_115 {dimension_numbers = #tpu.dot_dimension_numbers<[1], [0], [0], [1], [0, 0, 1, 1], [], []>} : vector<4x64xbf16>, vector<64x64xbf16>, vector<4x64xf32> -> vector<4x64xf32>
    %320 = arith.subf %19, %319 : vector<4x64xf32>
    %321 = arith.mulf %320, %320 : vector<4x64xf32>
    %cst_116 = arith.constant dense<0.000000e+00> : vector<4xf32>
    %322 = vector.multi_reduction <add>, %321, %cst_116 [1] : vector<4x64xf32> to vector<4xf32>
    %323 = vector.shape_cast %322 : vector<4xf32> to vector<4x1xf32>
    %cst_117 = arith.constant 0.000000e+00 : f32
    %324 = vector.broadcast %cst_117 : f32 to vector<4x1xf32>
    %325 = arith.subf %324, %323 : vector<4x1xf32>
    %326 = arith.extf %318 : vector<4x64xbf16> to vector<4x64xf32>
    %327 = vector.broadcast %6 : vector<1x64xf32> to vector<4x64xf32>
    %328 = arith.mulf %326, %327 : vector<4x64xf32>
    %cst_118 = arith.constant dense<0.000000e+00> : vector<4xf32>
    %329 = vector.multi_reduction <add>, %328, %cst_118 [1] : vector<4x64xf32> to vector<4xf32>
    %330 = vector.shape_cast %329 : vector<4xf32> to vector<4x1xf32>
    %331 = vector.extract_strided_slice %298 {offsets = [0, 2, 0], sizes = [4, 1, 64], strides = [1, 1, 1]} : vector<4x5x64xbf16> to vector<4x1x64xbf16>
    %332 = vector.shape_cast %331 : vector<4x1x64xbf16> to vector<4x64xbf16>
    %cst_119 = arith.constant dense<0.000000e+00> : vector<4x64xf32>
    %333 = tpu.matmul %332, %296, %cst_119 {dimension_numbers = #tpu.dot_dimension_numbers<[1], [0], [0], [1], [0, 0, 1, 1], [], []>} : vector<4x64xbf16>, vector<64x64xbf16>, vector<4x64xf32> -> vector<4x64xf32>
    %334 = arith.subf %19, %333 : vector<4x64xf32>
    %335 = arith.mulf %334, %334 : vector<4x64xf32>
    %cst_120 = arith.constant dense<0.000000e+00> : vector<4xf32>
    %336 = vector.multi_reduction <add>, %335, %cst_120 [1] : vector<4x64xf32> to vector<4xf32>
    %337 = vector.shape_cast %336 : vector<4xf32> to vector<4x1xf32>
    %cst_121 = arith.constant 0.000000e+00 : f32
    %338 = vector.broadcast %cst_121 : f32 to vector<4x1xf32>
    %339 = arith.subf %338, %337 : vector<4x1xf32>
    %340 = arith.extf %332 : vector<4x64xbf16> to vector<4x64xf32>
    %341 = vector.broadcast %6 : vector<1x64xf32> to vector<4x64xf32>
    %342 = arith.mulf %340, %341 : vector<4x64xf32>
    %cst_122 = arith.constant dense<0.000000e+00> : vector<4xf32>
    %343 = vector.multi_reduction <add>, %342, %cst_122 [1] : vector<4x64xf32> to vector<4xf32>
    %344 = vector.shape_cast %343 : vector<4xf32> to vector<4x1xf32>
    %345 = vector.extract_strided_slice %298 {offsets = [0, 3, 0], sizes = [4, 1, 64], strides = [1, 1, 1]} : vector<4x5x64xbf16> to vector<4x1x64xbf16>
    %346 = vector.shape_cast %345 : vector<4x1x64xbf16> to vector<4x64xbf16>
    %cst_123 = arith.constant dense<0.000000e+00> : vector<4x64xf32>
    %347 = tpu.matmul %346, %296, %cst_123 {dimension_numbers = #tpu.dot_dimension_numbers<[1], [0], [0], [1], [0, 0, 1, 1], [], []>} : vector<4x64xbf16>, vector<64x64xbf16>, vector<4x64xf32> -> vector<4x64xf32>
    %348 = arith.subf %19, %347 : vector<4x64xf32>
    %349 = arith.mulf %348, %348 : vector<4x64xf32>
    %cst_124 = arith.constant dense<0.000000e+00> : vector<4xf32>
    %350 = vector.multi_reduction <add>, %349, %cst_124 [1] : vector<4x64xf32> to vector<4xf32>
    %351 = vector.shape_cast %350 : vector<4xf32> to vector<4x1xf32>
    %cst_125 = arith.constant 0.000000e+00 : f32
    %352 = vector.broadcast %cst_125 : f32 to vector<4x1xf32>
    %353 = arith.subf %352, %351 : vector<4x1xf32>
    %354 = arith.extf %346 : vector<4x64xbf16> to vector<4x64xf32>
    %355 = vector.broadcast %6 : vector<1x64xf32> to vector<4x64xf32>
    %356 = arith.mulf %354, %355 : vector<4x64xf32>
    %cst_126 = arith.constant dense<0.000000e+00> : vector<4xf32>
    %357 = vector.multi_reduction <add>, %356, %cst_126 [1] : vector<4x64xf32> to vector<4xf32>
    %358 = vector.shape_cast %357 : vector<4xf32> to vector<4x1xf32>
    %359 = vector.extract_strided_slice %298 {offsets = [0, 4, 0], sizes = [4, 1, 64], strides = [1, 1, 1]} : vector<4x5x64xbf16> to vector<4x1x64xbf16>
    %360 = vector.shape_cast %359 : vector<4x1x64xbf16> to vector<4x64xbf16>
    %cst_127 = arith.constant dense<0.000000e+00> : vector<4x64xf32>
    %361 = tpu.matmul %360, %296, %cst_127 {dimension_numbers = #tpu.dot_dimension_numbers<[1], [0], [0], [1], [0, 0, 1, 1], [], []>} : vector<4x64xbf16>, vector<64x64xbf16>, vector<4x64xf32> -> vector<4x64xf32>
    %362 = arith.subf %19, %361 : vector<4x64xf32>
    %363 = arith.mulf %362, %362 : vector<4x64xf32>
    %cst_128 = arith.constant dense<0.000000e+00> : vector<4xf32>
    %364 = vector.multi_reduction <add>, %363, %cst_128 [1] : vector<4x64xf32> to vector<4xf32>
    %365 = vector.shape_cast %364 : vector<4xf32> to vector<4x1xf32>
    %cst_129 = arith.constant 0.000000e+00 : f32
    %366 = vector.broadcast %cst_129 : f32 to vector<4x1xf32>
    %367 = arith.subf %366, %365 : vector<4x1xf32>
    %368 = arith.extf %360 : vector<4x64xbf16> to vector<4x64xf32>
    %369 = vector.broadcast %6 : vector<1x64xf32> to vector<4x64xf32>
    %370 = arith.mulf %368, %369 : vector<4x64xf32>
    %cst_130 = arith.constant dense<0.000000e+00> : vector<4xf32>
    %371 = vector.multi_reduction <add>, %370, %cst_130 [1] : vector<4x64xf32> to vector<4xf32>
    %372 = vector.shape_cast %371 : vector<4xf32> to vector<4x1xf32>
    %cst_131 = arith.constant 0.000000e+00 : f32
    %373 = vector.broadcast %cst_131 : f32 to vector<4x1xf32>
    %cst_132 = arith.constant 0.000000e+00 : f32
    %374 = vector.broadcast %cst_132 : f32 to vector<4x1xf32>
    %cst_133 = arith.constant 0.000000e+00 : f32
    %375 = vector.broadcast %cst_133 : f32 to vector<4x1xf32>
    %cst_134 = arith.constant 0.000000e+00 : f32
    %376 = vector.broadcast %cst_134 : f32 to vector<4x1xf32>
    %cst_135 = arith.constant 0.000000e+00 : f32
    %377 = vector.broadcast %cst_135 : f32 to vector<4x1xf32>
    %cst_136 = arith.constant 1.000000e+30 : f32
    %378 = vector.broadcast %cst_136 : f32 to vector<4x1xf32>
    %379 = arith.mulf %373, %378 : vector<4x1xf32>
    %380 = arith.subf %311, %379 : vector<4x1xf32>
    %cst_137 = arith.constant 1.000000e+30 : f32
    %381 = vector.broadcast %cst_137 : f32 to vector<4x1xf32>
    %382 = arith.mulf %374, %381 : vector<4x1xf32>
    %383 = arith.subf %325, %382 : vector<4x1xf32>
    %cst_138 = arith.constant 1.000000e+30 : f32
    %384 = vector.broadcast %cst_138 : f32 to vector<4x1xf32>
    %385 = arith.mulf %375, %384 : vector<4x1xf32>
    %386 = arith.subf %339, %385 : vector<4x1xf32>
    %cst_139 = arith.constant 1.000000e+30 : f32
    %387 = vector.broadcast %cst_139 : f32 to vector<4x1xf32>
    %388 = arith.mulf %376, %387 : vector<4x1xf32>
    %389 = arith.subf %353, %388 : vector<4x1xf32>
    %cst_140 = arith.constant 1.000000e+30 : f32
    %390 = vector.broadcast %cst_140 : f32 to vector<4x1xf32>
    %391 = arith.mulf %377, %390 : vector<4x1xf32>
    %392 = arith.subf %367, %391 : vector<4x1xf32>
    %393 = arith.maximumf %380, %383 : vector<4x1xf32>
    %394 = arith.maximumf %393, %386 : vector<4x1xf32>
    %395 = arith.maximumf %394, %389 : vector<4x1xf32>
    %396 = arith.maximumf %395, %392 : vector<4x1xf32>
    %cst_141 = arith.constant 0.000000e+00 : f32
    %397 = vector.broadcast %cst_141 : f32 to vector<4x1xf32>
    %398 = arith.cmpf oge, %380, %396 : vector<4x1xf32>
    %cst_142 = arith.constant 5.000000e-01 : f32
    %399 = vector.broadcast %cst_142 : f32 to vector<4x1xf32>
    %400 = arith.cmpf olt, %397, %399 : vector<4x1xf32>
    %401 = arith.andi %398, %400 : vector<4x1xi1>
    %cst_143 = arith.constant 1.000000e+00 : f32
    %cst_144 = arith.constant 0.000000e+00 : f32
    %402 = vector.broadcast %cst_143 : f32 to vector<4x1xf32>
    %403 = vector.broadcast %cst_144 : f32 to vector<4x1xf32>
    %404 = arith.select %401, %402, %403 : vector<4x1xi1>, vector<4x1xf32>
    %405 = arith.addf %397, %404 : vector<4x1xf32>
    %406 = arith.addf %373, %404 : vector<4x1xf32>
    %407 = arith.cmpf oge, %383, %396 : vector<4x1xf32>
    %cst_145 = arith.constant 5.000000e-01 : f32
    %408 = vector.broadcast %cst_145 : f32 to vector<4x1xf32>
    %409 = arith.cmpf olt, %405, %408 : vector<4x1xf32>
    %410 = arith.andi %407, %409 : vector<4x1xi1>
    %cst_146 = arith.constant 1.000000e+00 : f32
    %cst_147 = arith.constant 0.000000e+00 : f32
    %411 = vector.broadcast %cst_146 : f32 to vector<4x1xf32>
    %412 = vector.broadcast %cst_147 : f32 to vector<4x1xf32>
    %413 = arith.select %410, %411, %412 : vector<4x1xi1>, vector<4x1xf32>
    %414 = arith.addf %405, %413 : vector<4x1xf32>
    %415 = arith.addf %374, %413 : vector<4x1xf32>
    %416 = arith.cmpf oge, %386, %396 : vector<4x1xf32>
    %cst_148 = arith.constant 5.000000e-01 : f32
    %417 = vector.broadcast %cst_148 : f32 to vector<4x1xf32>
    %418 = arith.cmpf olt, %414, %417 : vector<4x1xf32>
    %419 = arith.andi %416, %418 : vector<4x1xi1>
    %cst_149 = arith.constant 1.000000e+00 : f32
    %cst_150 = arith.constant 0.000000e+00 : f32
    %420 = vector.broadcast %cst_149 : f32 to vector<4x1xf32>
    %421 = vector.broadcast %cst_150 : f32 to vector<4x1xf32>
    %422 = arith.select %419, %420, %421 : vector<4x1xi1>, vector<4x1xf32>
    %423 = arith.addf %414, %422 : vector<4x1xf32>
    %424 = arith.addf %375, %422 : vector<4x1xf32>
    %425 = arith.cmpf oge, %389, %396 : vector<4x1xf32>
    %cst_151 = arith.constant 5.000000e-01 : f32
    %426 = vector.broadcast %cst_151 : f32 to vector<4x1xf32>
    %427 = arith.cmpf olt, %423, %426 : vector<4x1xf32>
    %428 = arith.andi %425, %427 : vector<4x1xi1>
    %cst_152 = arith.constant 1.000000e+00 : f32
    %cst_153 = arith.constant 0.000000e+00 : f32
    %429 = vector.broadcast %cst_152 : f32 to vector<4x1xf32>
    %430 = vector.broadcast %cst_153 : f32 to vector<4x1xf32>
    %431 = arith.select %428, %429, %430 : vector<4x1xi1>, vector<4x1xf32>
    %432 = arith.addf %423, %431 : vector<4x1xf32>
    %433 = arith.addf %376, %431 : vector<4x1xf32>
    %434 = arith.cmpf oge, %392, %396 : vector<4x1xf32>
    %cst_154 = arith.constant 5.000000e-01 : f32
    %435 = vector.broadcast %cst_154 : f32 to vector<4x1xf32>
    %436 = arith.cmpf olt, %432, %435 : vector<4x1xf32>
    %437 = arith.andi %434, %436 : vector<4x1xi1>
    %cst_155 = arith.constant 1.000000e+00 : f32
    %cst_156 = arith.constant 0.000000e+00 : f32
    %438 = vector.broadcast %cst_155 : f32 to vector<4x1xf32>
    %439 = vector.broadcast %cst_156 : f32 to vector<4x1xf32>
    %440 = arith.select %437, %438, %439 : vector<4x1xi1>, vector<4x1xf32>
    %441 = arith.addf %377, %440 : vector<4x1xf32>
    %cst_157 = arith.constant 1.000000e+30 : f32
    %442 = vector.broadcast %cst_157 : f32 to vector<4x1xf32>
    %443 = arith.mulf %406, %442 : vector<4x1xf32>
    %444 = arith.subf %311, %443 : vector<4x1xf32>
    %cst_158 = arith.constant 1.000000e+30 : f32
    %445 = vector.broadcast %cst_158 : f32 to vector<4x1xf32>
    %446 = arith.mulf %415, %445 : vector<4x1xf32>
    %447 = arith.subf %325, %446 : vector<4x1xf32>
    %cst_159 = arith.constant 1.000000e+30 : f32
    %448 = vector.broadcast %cst_159 : f32 to vector<4x1xf32>
    %449 = arith.mulf %424, %448 : vector<4x1xf32>
    %450 = arith.subf %339, %449 : vector<4x1xf32>
    %cst_160 = arith.constant 1.000000e+30 : f32
    %451 = vector.broadcast %cst_160 : f32 to vector<4x1xf32>
    %452 = arith.mulf %433, %451 : vector<4x1xf32>
    %453 = arith.subf %353, %452 : vector<4x1xf32>
    %cst_161 = arith.constant 1.000000e+30 : f32
    %454 = vector.broadcast %cst_161 : f32 to vector<4x1xf32>
    %455 = arith.mulf %441, %454 : vector<4x1xf32>
    %456 = arith.subf %367, %455 : vector<4x1xf32>
    %457 = arith.maximumf %444, %447 : vector<4x1xf32>
    %458 = arith.maximumf %457, %450 : vector<4x1xf32>
    %459 = arith.maximumf %458, %453 : vector<4x1xf32>
    %460 = arith.maximumf %459, %456 : vector<4x1xf32>
    %cst_162 = arith.constant 0.000000e+00 : f32
    %461 = vector.broadcast %cst_162 : f32 to vector<4x1xf32>
    %462 = arith.cmpf oge, %444, %460 : vector<4x1xf32>
    %cst_163 = arith.constant 5.000000e-01 : f32
    %463 = vector.broadcast %cst_163 : f32 to vector<4x1xf32>
    %464 = arith.cmpf olt, %461, %463 : vector<4x1xf32>
    %465 = arith.andi %462, %464 : vector<4x1xi1>
    %cst_164 = arith.constant 1.000000e+00 : f32
    %cst_165 = arith.constant 0.000000e+00 : f32
    %466 = vector.broadcast %cst_164 : f32 to vector<4x1xf32>
    %467 = vector.broadcast %cst_165 : f32 to vector<4x1xf32>
    %468 = arith.select %465, %466, %467 : vector<4x1xi1>, vector<4x1xf32>
    %469 = arith.addf %461, %468 : vector<4x1xf32>
    %470 = arith.cmpf oge, %447, %460 : vector<4x1xf32>
    %cst_166 = arith.constant 5.000000e-01 : f32
    %471 = vector.broadcast %cst_166 : f32 to vector<4x1xf32>
    %472 = arith.cmpf olt, %469, %471 : vector<4x1xf32>
    %473 = arith.andi %470, %472 : vector<4x1xi1>
    %cst_167 = arith.constant 1.000000e+00 : f32
    %cst_168 = arith.constant 0.000000e+00 : f32
    %474 = vector.broadcast %cst_167 : f32 to vector<4x1xf32>
    %475 = vector.broadcast %cst_168 : f32 to vector<4x1xf32>
    %476 = arith.select %473, %474, %475 : vector<4x1xi1>, vector<4x1xf32>
    %477 = arith.addf %469, %476 : vector<4x1xf32>
    %478 = arith.cmpf oge, %450, %460 : vector<4x1xf32>
    %cst_169 = arith.constant 5.000000e-01 : f32
    %479 = vector.broadcast %cst_169 : f32 to vector<4x1xf32>
    %480 = arith.cmpf olt, %477, %479 : vector<4x1xf32>
    %481 = arith.andi %478, %480 : vector<4x1xi1>
    %cst_170 = arith.constant 1.000000e+00 : f32
    %cst_171 = arith.constant 0.000000e+00 : f32
    %482 = vector.broadcast %cst_170 : f32 to vector<4x1xf32>
    %483 = vector.broadcast %cst_171 : f32 to vector<4x1xf32>
    %484 = arith.select %481, %482, %483 : vector<4x1xi1>, vector<4x1xf32>
    %485 = arith.addf %477, %484 : vector<4x1xf32>
    %486 = arith.cmpf oge, %453, %460 : vector<4x1xf32>
    %cst_172 = arith.constant 5.000000e-01 : f32
    %487 = vector.broadcast %cst_172 : f32 to vector<4x1xf32>
    %488 = arith.cmpf olt, %485, %487 : vector<4x1xf32>
    %489 = arith.andi %486, %488 : vector<4x1xi1>
    %cst_173 = arith.constant 1.000000e+00 : f32
    %cst_174 = arith.constant 0.000000e+00 : f32
    %490 = vector.broadcast %cst_173 : f32 to vector<4x1xf32>
    %491 = vector.broadcast %cst_174 : f32 to vector<4x1xf32>
    %492 = arith.select %489, %490, %491 : vector<4x1xi1>, vector<4x1xf32>
    %493 = arith.addf %485, %492 : vector<4x1xf32>
    %494 = arith.cmpf oge, %456, %460 : vector<4x1xf32>
    %cst_175 = arith.constant 5.000000e-01 : f32
    %495 = vector.broadcast %cst_175 : f32 to vector<4x1xf32>
    %496 = arith.cmpf olt, %493, %495 : vector<4x1xf32>
    %497 = arith.andi %494, %496 : vector<4x1xi1>
    %cst_176 = arith.constant 1.000000e+00 : f32
    %cst_177 = arith.constant 0.000000e+00 : f32
    %498 = vector.broadcast %cst_176 : f32 to vector<4x1xf32>
    %499 = vector.broadcast %cst_177 : f32 to vector<4x1xf32>
    %500 = arith.select %497, %498, %499 : vector<4x1xi1>, vector<4x1xf32>
    %501 = vector.broadcast %7 : vector<1x1xf32> to vector<4x1xf32>
    %502 = arith.addf %302, %501 : vector<4x1xf32>
    %503 = arith.mulf %404, %316 : vector<4x1xf32>
    %504 = arith.addf %502, %503 : vector<4x1xf32>
    %505 = arith.mulf %413, %330 : vector<4x1xf32>
    %506 = arith.addf %504, %505 : vector<4x1xf32>
    %507 = arith.mulf %422, %344 : vector<4x1xf32>
    %508 = arith.addf %506, %507 : vector<4x1xf32>
    %509 = arith.mulf %431, %358 : vector<4x1xf32>
    %510 = arith.addf %508, %509 : vector<4x1xf32>
    %511 = arith.mulf %440, %372 : vector<4x1xf32>
    %512 = arith.addf %510, %511 : vector<4x1xf32>
    %cst_178 = arith.constant 0.000000e+00 : f32
    %513 = vector.broadcast %cst_178 : f32 to vector<4x1xf32>
    %514 = arith.maximumf %512, %513 : vector<4x1xf32>
    %515 = vector.broadcast %7 : vector<1x1xf32> to vector<4x1xf32>
    %516 = arith.addf %302, %515 : vector<4x1xf32>
    %517 = arith.mulf %468, %316 : vector<4x1xf32>
    %518 = arith.addf %516, %517 : vector<4x1xf32>
    %519 = arith.mulf %476, %330 : vector<4x1xf32>
    %520 = arith.addf %518, %519 : vector<4x1xf32>
    %521 = arith.mulf %484, %344 : vector<4x1xf32>
    %522 = arith.addf %520, %521 : vector<4x1xf32>
    %523 = arith.mulf %492, %358 : vector<4x1xf32>
    %524 = arith.addf %522, %523 : vector<4x1xf32>
    %525 = arith.mulf %500, %372 : vector<4x1xf32>
    %526 = arith.addf %524, %525 : vector<4x1xf32>
    %cst_179 = arith.constant 0.000000e+00 : f32
    %527 = vector.broadcast %cst_179 : f32 to vector<4x1xf32>
    %528 = arith.maximumf %526, %527 : vector<4x1xf32>
    %529 = arith.maximumf %514, %528 : vector<4x1xf32>
    %530 = arith.subf %514, %529 : vector<4x1xf32>
    %531 = math.exp %530 : vector<4x1xf32>
    %532 = arith.subf %528, %529 : vector<4x1xf32>
    %533 = math.exp %532 : vector<4x1xf32>
    %534 = arith.addf %531, %533 : vector<4x1xf32>
    %535 = tpu.reciprocal %534 {approx = true} : vector<4x1xf32> -> vector<4x1xf32>
    %536 = arith.mulf %531, %535 : vector<4x1xf32>
    %537 = arith.mulf %533, %535 : vector<4x1xf32>
    %cst_180 = arith.constant 0.000000e+00 : f32
    %538 = vector.broadcast %cst_180 : f32 to vector<4x64xf32>
    %cst_181 = arith.constant 0.000000e+00 : f32
    %539 = vector.broadcast %cst_181 : f32 to vector<4x1xf32>
    %540 = arith.mulf %536, %404 : vector<4x1xf32>
    %541 = arith.addf %539, %540 : vector<4x1xf32>
    %542 = arith.mulf %537, %468 : vector<4x1xf32>
    %543 = arith.addf %541, %542 : vector<4x1xf32>
    %544 = vector.broadcast %543 : vector<4x1xf32> to vector<4x64xf32>
    %545 = arith.mulf %544, %312 : vector<4x64xf32>
    %546 = arith.addf %538, %545 : vector<4x64xf32>
    %cst_182 = arith.constant 0.000000e+00 : f32
    %547 = vector.broadcast %cst_182 : f32 to vector<4x1xf32>
    %548 = arith.mulf %536, %413 : vector<4x1xf32>
    %549 = arith.addf %547, %548 : vector<4x1xf32>
    %550 = arith.mulf %537, %476 : vector<4x1xf32>
    %551 = arith.addf %549, %550 : vector<4x1xf32>
    %552 = vector.broadcast %551 : vector<4x1xf32> to vector<4x64xf32>
    %553 = arith.mulf %552, %326 : vector<4x64xf32>
    %554 = arith.addf %546, %553 : vector<4x64xf32>
    %cst_183 = arith.constant 0.000000e+00 : f32
    %555 = vector.broadcast %cst_183 : f32 to vector<4x1xf32>
    %556 = arith.mulf %536, %422 : vector<4x1xf32>
    %557 = arith.addf %555, %556 : vector<4x1xf32>
    %558 = arith.mulf %537, %484 : vector<4x1xf32>
    %559 = arith.addf %557, %558 : vector<4x1xf32>
    %560 = vector.broadcast %559 : vector<4x1xf32> to vector<4x64xf32>
    %561 = arith.mulf %560, %340 : vector<4x64xf32>
    %562 = arith.addf %554, %561 : vector<4x64xf32>
    %cst_184 = arith.constant 0.000000e+00 : f32
    %563 = vector.broadcast %cst_184 : f32 to vector<4x1xf32>
    %564 = arith.mulf %536, %431 : vector<4x1xf32>
    %565 = arith.addf %563, %564 : vector<4x1xf32>
    %566 = arith.mulf %537, %492 : vector<4x1xf32>
    %567 = arith.addf %565, %566 : vector<4x1xf32>
    %568 = vector.broadcast %567 : vector<4x1xf32> to vector<4x64xf32>
    %569 = arith.mulf %568, %354 : vector<4x64xf32>
    %570 = arith.addf %562, %569 : vector<4x64xf32>
    %cst_185 = arith.constant 0.000000e+00 : f32
    %571 = vector.broadcast %cst_185 : f32 to vector<4x1xf32>
    %572 = arith.mulf %536, %440 : vector<4x1xf32>
    %573 = arith.addf %571, %572 : vector<4x1xf32>
    %574 = arith.mulf %537, %500 : vector<4x1xf32>
    %575 = arith.addf %573, %574 : vector<4x1xf32>
    %576 = vector.broadcast %575 : vector<4x1xf32> to vector<4x64xf32>
    %577 = arith.mulf %576, %368 : vector<4x64xf32>
    %578 = arith.addf %570, %577 : vector<4x64xf32>
    %579 = vector.broadcast %8 : vector<1x64xf32> to vector<4x64xf32>
    %580 = arith.mulf %12, %579 : vector<4x64xf32>
    %cst_186 = arith.constant dense<0.000000e+00> : vector<4xf32>
    %581 = vector.multi_reduction <add>, %580, %cst_186 [1] : vector<4x64xf32> to vector<4xf32>
    %582 = vector.shape_cast %581 : vector<4xf32> to vector<4x1xf32>
    %583 = vector.broadcast %9 : vector<1x64xf32> to vector<4x64xf32>
    %584 = arith.mulf %294, %583 : vector<4x64xf32>
    %cst_187 = arith.constant dense<0.000000e+00> : vector<4xf32>
    %585 = vector.multi_reduction <add>, %584, %cst_187 [1] : vector<4x64xf32> to vector<4xf32>
    %586 = vector.shape_cast %585 : vector<4xf32> to vector<4x1xf32>
    %587 = arith.addf %582, %586 : vector<4x1xf32>
    %588 = vector.broadcast %10 : vector<1x1xf32> to vector<4x1xf32>
    %589 = arith.addf %587, %588 : vector<4x1xf32>
    %cst_188 = arith.constant 0.000000e+00 : f32
    %590 = vector.broadcast %cst_188 : f32 to vector<4x1xf32>
    %591 = arith.maximumf %589, %590 : vector<4x1xf32>
    %592 = vector.broadcast %9 : vector<1x64xf32> to vector<4x64xf32>
    %593 = arith.mulf %578, %592 : vector<4x64xf32>
    %cst_189 = arith.constant dense<0.000000e+00> : vector<4xf32>
    %594 = vector.multi_reduction <add>, %593, %cst_189 [1] : vector<4x64xf32> to vector<4xf32>
    %595 = vector.shape_cast %594 : vector<4xf32> to vector<4x1xf32>
    %596 = arith.addf %582, %595 : vector<4x1xf32>
    %597 = vector.broadcast %10 : vector<1x1xf32> to vector<4x1xf32>
    %598 = arith.addf %596, %597 : vector<4x1xf32>
    %cst_190 = arith.constant 0.000000e+00 : f32
    %599 = vector.broadcast %cst_190 : f32 to vector<4x1xf32>
    %600 = arith.maximumf %598, %599 : vector<4x1xf32>
    %601 = arith.maximumf %591, %600 : vector<4x1xf32>
    %602 = arith.subf %591, %601 : vector<4x1xf32>
    %603 = math.exp %602 : vector<4x1xf32>
    %604 = arith.subf %600, %601 : vector<4x1xf32>
    %605 = math.exp %604 : vector<4x1xf32>
    %606 = arith.addf %603, %605 : vector<4x1xf32>
    %607 = tpu.reciprocal %606 {approx = true} : vector<4x1xf32> -> vector<4x1xf32>
    %608 = arith.mulf %603, %607 : vector<4x1xf32>
    %609 = arith.mulf %605, %607 : vector<4x1xf32>
    %610 = vector.broadcast %608 : vector<4x1xf32> to vector<4x64xf32>
    %611 = arith.mulf %610, %294 : vector<4x64xf32>
    %612 = vector.broadcast %609 : vector<4x1xf32> to vector<4x64xf32>
    %613 = arith.mulf %612, %578 : vector<4x64xf32>
    %614 = arith.addf %611, %613 : vector<4x64xf32>
    %615 = tpu.concatenate %12, %614 in 1 : vector<4x64xf32>, vector<4x64xf32> -> vector<4x128xf32>
    %616 = arith.truncf %615 : vector<4x128xf32> to vector<4x128xbf16>
    %cst_191 = arith.constant dense<0.000000e+00> : vector<4x64xf32>
    %617 = tpu.matmul %616, %2, %cst_191 {dimension_numbers = #tpu.dot_dimension_numbers<[1], [0], [0], [1], [0, 0, 1, 1], [], []>} : vector<4x128xbf16>, vector<128x64xbf16>, vector<4x64xf32> -> vector<4x64xf32>
    %618 = vector.broadcast %3 : vector<1x64xf32> to vector<4x64xf32>
    %619 = arith.addf %617, %618 : vector<4x64xf32>
    %cst_192 = arith.constant 0.000000e+00 : f32
    %620 = vector.broadcast %cst_192 : f32 to vector<4x64xf32>
    %621 = arith.maximumf %619, %620 : vector<4x64xf32>
    %c1_193 = arith.constant 1 : index
    %c0_194 = arith.constant 0 : index
    %c0_195 = arith.constant 0 : index
    %622 = vector.load %arg1[%c1_193, %c0_194, %c0_195] : memref<2x4x64xf32, #tpu.memory_space<vmem>>, vector<1x4x64xf32>
    %623 = vector.shape_cast %622 : vector<1x4x64xf32> to vector<4x64xf32>
    %c0_196 = arith.constant 0 : index
    %c0_197 = arith.constant 0 : index
    %c0_198 = arith.constant 0 : index
    %624 = vector.load %arg1[%c0_196, %c0_197, %c0_198] : memref<2x4x64xf32, #tpu.memory_space<vmem>>, vector<1x4x64xf32>
    %625 = vector.shape_cast %624 : vector<1x4x64xf32> to vector<4x64xf32>
    %626 = tpu.concatenate %623, %625 in 1 : vector<4x64xf32>, vector<4x64xf32> -> vector<4x128xf32>
    %627 = arith.truncf %626 : vector<4x128xf32> to vector<4x128xbf16>
    %cst_199 = arith.constant dense<0.000000e+00> : vector<4x64xf32>
    %628 = tpu.matmul %627, %0, %cst_199 {dimension_numbers = #tpu.dot_dimension_numbers<[1], [0], [0], [1], [0, 0, 1, 1], [], []>} : vector<4x128xbf16>, vector<128x64xbf16>, vector<4x64xf32> -> vector<4x64xf32>
    %629 = vector.broadcast %1 : vector<1x64xf32> to vector<4x64xf32>
    %630 = arith.addf %628, %629 : vector<4x64xf32>
    %c1_200 = arith.constant 1 : index
    %c0_201 = arith.constant 0 : index
    %c0_202 = arith.constant 0 : index
    %c0_203 = arith.constant 0 : index
    %631 = vector.load %arg2[%c1_200, %c0_201, %c0_202, %c0_203] : memref<2x4x5x64xbf16, #tpu.memory_space<vmem>>, vector<1x4x5x64xbf16>
    %632 = vector.shape_cast %631 : vector<1x4x5x64xbf16> to vector<4x5x64xbf16>
    %633 = arith.extf %632 : vector<4x5x64xbf16> to vector<4x5x64xf32>
    %c1_204 = arith.constant 1 : index
    %c0_205 = arith.constant 0 : index
    %c0_206 = arith.constant 0 : index
    %634 = vector.load %arg3[%c1_204, %c0_205, %c0_206] : memref<2x4x5xf32, #tpu.memory_space<vmem>>, vector<1x4x5xf32>
    %635 = vector.shape_cast %634 : vector<1x4x5xf32> to vector<4x5xf32>
    %636 = vector.extract_strided_slice %633 {offsets = [0, 0, 0], sizes = [4, 1, 64], strides = [1, 1, 1]} : vector<4x5x64xf32> to vector<4x1x64xf32>
    %637 = vector.shape_cast %636 : vector<4x1x64xf32> to vector<4x64xf32>
    %638 = arith.subf %630, %637 : vector<4x64xf32>
    %639 = arith.mulf %638, %638 : vector<4x64xf32>
    %cst_207 = arith.constant dense<0.000000e+00> : vector<4xf32>
    %640 = vector.multi_reduction <add>, %639, %cst_207 [1] : vector<4x64xf32> to vector<4xf32>
    %641 = vector.shape_cast %640 : vector<4xf32> to vector<4x1xf32>
    %cst_208 = arith.constant 0.000000e+00 : f32
    %642 = vector.broadcast %cst_208 : f32 to vector<4x1xf32>
    %643 = arith.subf %642, %641 : vector<4x1xf32>
    %644 = vector.broadcast %4 : vector<1x64xf32> to vector<4x64xf32>
    %645 = arith.mulf %637, %644 : vector<4x64xf32>
    %cst_209 = arith.constant dense<0.000000e+00> : vector<4xf32>
    %646 = vector.multi_reduction <add>, %645, %cst_209 [1] : vector<4x64xf32> to vector<4xf32>
    %647 = vector.shape_cast %646 : vector<4xf32> to vector<4x1xf32>
    %648 = vector.extract_strided_slice %635 {offsets = [0, 0], sizes = [4, 1], strides = [1, 1]} : vector<4x5xf32> to vector<4x1xf32>
    %649 = arith.addf %647, %648 : vector<4x1xf32>
    %650 = vector.extract_strided_slice %633 {offsets = [0, 1, 0], sizes = [4, 1, 64], strides = [1, 1, 1]} : vector<4x5x64xf32> to vector<4x1x64xf32>
    %651 = vector.shape_cast %650 : vector<4x1x64xf32> to vector<4x64xf32>
    %652 = arith.subf %630, %651 : vector<4x64xf32>
    %653 = arith.mulf %652, %652 : vector<4x64xf32>
    %cst_210 = arith.constant dense<0.000000e+00> : vector<4xf32>
    %654 = vector.multi_reduction <add>, %653, %cst_210 [1] : vector<4x64xf32> to vector<4xf32>
    %655 = vector.shape_cast %654 : vector<4xf32> to vector<4x1xf32>
    %cst_211 = arith.constant 0.000000e+00 : f32
    %656 = vector.broadcast %cst_211 : f32 to vector<4x1xf32>
    %657 = arith.subf %656, %655 : vector<4x1xf32>
    %658 = vector.broadcast %4 : vector<1x64xf32> to vector<4x64xf32>
    %659 = arith.mulf %651, %658 : vector<4x64xf32>
    %cst_212 = arith.constant dense<0.000000e+00> : vector<4xf32>
    %660 = vector.multi_reduction <add>, %659, %cst_212 [1] : vector<4x64xf32> to vector<4xf32>
    %661 = vector.shape_cast %660 : vector<4xf32> to vector<4x1xf32>
    %662 = vector.extract_strided_slice %635 {offsets = [0, 1], sizes = [4, 1], strides = [1, 1]} : vector<4x5xf32> to vector<4x1xf32>
    %663 = arith.addf %661, %662 : vector<4x1xf32>
    %664 = vector.extract_strided_slice %633 {offsets = [0, 2, 0], sizes = [4, 1, 64], strides = [1, 1, 1]} : vector<4x5x64xf32> to vector<4x1x64xf32>
    %665 = vector.shape_cast %664 : vector<4x1x64xf32> to vector<4x64xf32>
    %666 = arith.subf %630, %665 : vector<4x64xf32>
    %667 = arith.mulf %666, %666 : vector<4x64xf32>
    %cst_213 = arith.constant dense<0.000000e+00> : vector<4xf32>
    %668 = vector.multi_reduction <add>, %667, %cst_213 [1] : vector<4x64xf32> to vector<4xf32>
    %669 = vector.shape_cast %668 : vector<4xf32> to vector<4x1xf32>
    %cst_214 = arith.constant 0.000000e+00 : f32
    %670 = vector.broadcast %cst_214 : f32 to vector<4x1xf32>
    %671 = arith.subf %670, %669 : vector<4x1xf32>
    %672 = vector.broadcast %4 : vector<1x64xf32> to vector<4x64xf32>
    %673 = arith.mulf %665, %672 : vector<4x64xf32>
    %cst_215 = arith.constant dense<0.000000e+00> : vector<4xf32>
    %674 = vector.multi_reduction <add>, %673, %cst_215 [1] : vector<4x64xf32> to vector<4xf32>
    %675 = vector.shape_cast %674 : vector<4xf32> to vector<4x1xf32>
    %676 = vector.extract_strided_slice %635 {offsets = [0, 2], sizes = [4, 1], strides = [1, 1]} : vector<4x5xf32> to vector<4x1xf32>
    %677 = arith.addf %675, %676 : vector<4x1xf32>
    %678 = vector.extract_strided_slice %633 {offsets = [0, 3, 0], sizes = [4, 1, 64], strides = [1, 1, 1]} : vector<4x5x64xf32> to vector<4x1x64xf32>
    %679 = vector.shape_cast %678 : vector<4x1x64xf32> to vector<4x64xf32>
    %680 = arith.subf %630, %679 : vector<4x64xf32>
    %681 = arith.mulf %680, %680 : vector<4x64xf32>
    %cst_216 = arith.constant dense<0.000000e+00> : vector<4xf32>
    %682 = vector.multi_reduction <add>, %681, %cst_216 [1] : vector<4x64xf32> to vector<4xf32>
    %683 = vector.shape_cast %682 : vector<4xf32> to vector<4x1xf32>
    %cst_217 = arith.constant 0.000000e+00 : f32
    %684 = vector.broadcast %cst_217 : f32 to vector<4x1xf32>
    %685 = arith.subf %684, %683 : vector<4x1xf32>
    %686 = vector.broadcast %4 : vector<1x64xf32> to vector<4x64xf32>
    %687 = arith.mulf %679, %686 : vector<4x64xf32>
    %cst_218 = arith.constant dense<0.000000e+00> : vector<4xf32>
    %688 = vector.multi_reduction <add>, %687, %cst_218 [1] : vector<4x64xf32> to vector<4xf32>
    %689 = vector.shape_cast %688 : vector<4xf32> to vector<4x1xf32>
    %690 = vector.extract_strided_slice %635 {offsets = [0, 3], sizes = [4, 1], strides = [1, 1]} : vector<4x5xf32> to vector<4x1xf32>
    %691 = arith.addf %689, %690 : vector<4x1xf32>
    %692 = vector.extract_strided_slice %633 {offsets = [0, 4, 0], sizes = [4, 1, 64], strides = [1, 1, 1]} : vector<4x5x64xf32> to vector<4x1x64xf32>
    %693 = vector.shape_cast %692 : vector<4x1x64xf32> to vector<4x64xf32>
    %694 = arith.subf %630, %693 : vector<4x64xf32>
    %695 = arith.mulf %694, %694 : vector<4x64xf32>
    %cst_219 = arith.constant dense<0.000000e+00> : vector<4xf32>
    %696 = vector.multi_reduction <add>, %695, %cst_219 [1] : vector<4x64xf32> to vector<4xf32>
    %697 = vector.shape_cast %696 : vector<4xf32> to vector<4x1xf32>
    %cst_220 = arith.constant 0.000000e+00 : f32
    %698 = vector.broadcast %cst_220 : f32 to vector<4x1xf32>
    %699 = arith.subf %698, %697 : vector<4x1xf32>
    %700 = vector.broadcast %4 : vector<1x64xf32> to vector<4x64xf32>
    %701 = arith.mulf %693, %700 : vector<4x64xf32>
    %cst_221 = arith.constant dense<0.000000e+00> : vector<4xf32>
    %702 = vector.multi_reduction <add>, %701, %cst_221 [1] : vector<4x64xf32> to vector<4xf32>
    %703 = vector.shape_cast %702 : vector<4xf32> to vector<4x1xf32>
    %704 = vector.extract_strided_slice %635 {offsets = [0, 4], sizes = [4, 1], strides = [1, 1]} : vector<4x5xf32> to vector<4x1xf32>
    %705 = arith.addf %703, %704 : vector<4x1xf32>
    %cst_222 = arith.constant 0.000000e+00 : f32
    %706 = vector.broadcast %cst_222 : f32 to vector<4x1xf32>
    %cst_223 = arith.constant 0.000000e+00 : f32
    %707 = vector.broadcast %cst_223 : f32 to vector<4x1xf32>
    %cst_224 = arith.constant 0.000000e+00 : f32
    %708 = vector.broadcast %cst_224 : f32 to vector<4x1xf32>
    %cst_225 = arith.constant 0.000000e+00 : f32
    %709 = vector.broadcast %cst_225 : f32 to vector<4x1xf32>
    %cst_226 = arith.constant 0.000000e+00 : f32
    %710 = vector.broadcast %cst_226 : f32 to vector<4x1xf32>
    %cst_227 = arith.constant 1.000000e+30 : f32
    %711 = vector.broadcast %cst_227 : f32 to vector<4x1xf32>
    %712 = arith.mulf %706, %711 : vector<4x1xf32>
    %713 = arith.subf %643, %712 : vector<4x1xf32>
    %cst_228 = arith.constant 1.000000e+30 : f32
    %714 = vector.broadcast %cst_228 : f32 to vector<4x1xf32>
    %715 = arith.mulf %707, %714 : vector<4x1xf32>
    %716 = arith.subf %657, %715 : vector<4x1xf32>
    %cst_229 = arith.constant 1.000000e+30 : f32
    %717 = vector.broadcast %cst_229 : f32 to vector<4x1xf32>
    %718 = arith.mulf %708, %717 : vector<4x1xf32>
    %719 = arith.subf %671, %718 : vector<4x1xf32>
    %cst_230 = arith.constant 1.000000e+30 : f32
    %720 = vector.broadcast %cst_230 : f32 to vector<4x1xf32>
    %721 = arith.mulf %709, %720 : vector<4x1xf32>
    %722 = arith.subf %685, %721 : vector<4x1xf32>
    %cst_231 = arith.constant 1.000000e+30 : f32
    %723 = vector.broadcast %cst_231 : f32 to vector<4x1xf32>
    %724 = arith.mulf %710, %723 : vector<4x1xf32>
    %725 = arith.subf %699, %724 : vector<4x1xf32>
    %726 = arith.maximumf %713, %716 : vector<4x1xf32>
    %727 = arith.maximumf %726, %719 : vector<4x1xf32>
    %728 = arith.maximumf %727, %722 : vector<4x1xf32>
    %729 = arith.maximumf %728, %725 : vector<4x1xf32>
    %cst_232 = arith.constant 0.000000e+00 : f32
    %730 = vector.broadcast %cst_232 : f32 to vector<4x1xf32>
    %731 = arith.cmpf oge, %713, %729 : vector<4x1xf32>
    %cst_233 = arith.constant 5.000000e-01 : f32
    %732 = vector.broadcast %cst_233 : f32 to vector<4x1xf32>
    %733 = arith.cmpf olt, %730, %732 : vector<4x1xf32>
    %734 = arith.andi %731, %733 : vector<4x1xi1>
    %cst_234 = arith.constant 1.000000e+00 : f32
    %cst_235 = arith.constant 0.000000e+00 : f32
    %735 = vector.broadcast %cst_234 : f32 to vector<4x1xf32>
    %736 = vector.broadcast %cst_235 : f32 to vector<4x1xf32>
    %737 = arith.select %734, %735, %736 : vector<4x1xi1>, vector<4x1xf32>
    %738 = arith.addf %730, %737 : vector<4x1xf32>
    %739 = arith.addf %706, %737 : vector<4x1xf32>
    %740 = arith.cmpf oge, %716, %729 : vector<4x1xf32>
    %cst_236 = arith.constant 5.000000e-01 : f32
    %741 = vector.broadcast %cst_236 : f32 to vector<4x1xf32>
    %742 = arith.cmpf olt, %738, %741 : vector<4x1xf32>
    %743 = arith.andi %740, %742 : vector<4x1xi1>
    %cst_237 = arith.constant 1.000000e+00 : f32
    %cst_238 = arith.constant 0.000000e+00 : f32
    %744 = vector.broadcast %cst_237 : f32 to vector<4x1xf32>
    %745 = vector.broadcast %cst_238 : f32 to vector<4x1xf32>
    %746 = arith.select %743, %744, %745 : vector<4x1xi1>, vector<4x1xf32>
    %747 = arith.addf %738, %746 : vector<4x1xf32>
    %748 = arith.addf %707, %746 : vector<4x1xf32>
    %749 = arith.cmpf oge, %719, %729 : vector<4x1xf32>
    %cst_239 = arith.constant 5.000000e-01 : f32
    %750 = vector.broadcast %cst_239 : f32 to vector<4x1xf32>
    %751 = arith.cmpf olt, %747, %750 : vector<4x1xf32>
    %752 = arith.andi %749, %751 : vector<4x1xi1>
    %cst_240 = arith.constant 1.000000e+00 : f32
    %cst_241 = arith.constant 0.000000e+00 : f32
    %753 = vector.broadcast %cst_240 : f32 to vector<4x1xf32>
    %754 = vector.broadcast %cst_241 : f32 to vector<4x1xf32>
    %755 = arith.select %752, %753, %754 : vector<4x1xi1>, vector<4x1xf32>
    %756 = arith.addf %747, %755 : vector<4x1xf32>
    %757 = arith.addf %708, %755 : vector<4x1xf32>
    %758 = arith.cmpf oge, %722, %729 : vector<4x1xf32>
    %cst_242 = arith.constant 5.000000e-01 : f32
    %759 = vector.broadcast %cst_242 : f32 to vector<4x1xf32>
    %760 = arith.cmpf olt, %756, %759 : vector<4x1xf32>
    %761 = arith.andi %758, %760 : vector<4x1xi1>
    %cst_243 = arith.constant 1.000000e+00 : f32
    %cst_244 = arith.constant 0.000000e+00 : f32
    %762 = vector.broadcast %cst_243 : f32 to vector<4x1xf32>
    %763 = vector.broadcast %cst_244 : f32 to vector<4x1xf32>
    %764 = arith.select %761, %762, %763 : vector<4x1xi1>, vector<4x1xf32>
    %765 = arith.addf %756, %764 : vector<4x1xf32>
    %766 = arith.addf %709, %764 : vector<4x1xf32>
    %767 = arith.cmpf oge, %725, %729 : vector<4x1xf32>
    %cst_245 = arith.constant 5.000000e-01 : f32
    %768 = vector.broadcast %cst_245 : f32 to vector<4x1xf32>
    %769 = arith.cmpf olt, %765, %768 : vector<4x1xf32>
    %770 = arith.andi %767, %769 : vector<4x1xi1>
    %cst_246 = arith.constant 1.000000e+00 : f32
    %cst_247 = arith.constant 0.000000e+00 : f32
    %771 = vector.broadcast %cst_246 : f32 to vector<4x1xf32>
    %772 = vector.broadcast %cst_247 : f32 to vector<4x1xf32>
    %773 = arith.select %770, %771, %772 : vector<4x1xi1>, vector<4x1xf32>
    %774 = arith.addf %710, %773 : vector<4x1xf32>
    %cst_248 = arith.constant 1.000000e+30 : f32
    %775 = vector.broadcast %cst_248 : f32 to vector<4x1xf32>
    %776 = arith.mulf %739, %775 : vector<4x1xf32>
    %777 = arith.subf %643, %776 : vector<4x1xf32>
    %cst_249 = arith.constant 1.000000e+30 : f32
    %778 = vector.broadcast %cst_249 : f32 to vector<4x1xf32>
    %779 = arith.mulf %748, %778 : vector<4x1xf32>
    %780 = arith.subf %657, %779 : vector<4x1xf32>
    %cst_250 = arith.constant 1.000000e+30 : f32
    %781 = vector.broadcast %cst_250 : f32 to vector<4x1xf32>
    %782 = arith.mulf %757, %781 : vector<4x1xf32>
    %783 = arith.subf %671, %782 : vector<4x1xf32>
    %cst_251 = arith.constant 1.000000e+30 : f32
    %784 = vector.broadcast %cst_251 : f32 to vector<4x1xf32>
    %785 = arith.mulf %766, %784 : vector<4x1xf32>
    %786 = arith.subf %685, %785 : vector<4x1xf32>
    %cst_252 = arith.constant 1.000000e+30 : f32
    %787 = vector.broadcast %cst_252 : f32 to vector<4x1xf32>
    %788 = arith.mulf %774, %787 : vector<4x1xf32>
    %789 = arith.subf %699, %788 : vector<4x1xf32>
    %790 = arith.maximumf %777, %780 : vector<4x1xf32>
    %791 = arith.maximumf %790, %783 : vector<4x1xf32>
    %792 = arith.maximumf %791, %786 : vector<4x1xf32>
    %793 = arith.maximumf %792, %789 : vector<4x1xf32>
    %cst_253 = arith.constant 0.000000e+00 : f32
    %794 = vector.broadcast %cst_253 : f32 to vector<4x1xf32>
    %795 = arith.cmpf oge, %777, %793 : vector<4x1xf32>
    %cst_254 = arith.constant 5.000000e-01 : f32
    %796 = vector.broadcast %cst_254 : f32 to vector<4x1xf32>
    %797 = arith.cmpf olt, %794, %796 : vector<4x1xf32>
    %798 = arith.andi %795, %797 : vector<4x1xi1>
    %cst_255 = arith.constant 1.000000e+00 : f32
    %cst_256 = arith.constant 0.000000e+00 : f32
    %799 = vector.broadcast %cst_255 : f32 to vector<4x1xf32>
    %800 = vector.broadcast %cst_256 : f32 to vector<4x1xf32>
    %801 = arith.select %798, %799, %800 : vector<4x1xi1>, vector<4x1xf32>
    %802 = arith.addf %794, %801 : vector<4x1xf32>
    %803 = arith.cmpf oge, %780, %793 : vector<4x1xf32>
    %cst_257 = arith.constant 5.000000e-01 : f32
    %804 = vector.broadcast %cst_257 : f32 to vector<4x1xf32>
    %805 = arith.cmpf olt, %802, %804 : vector<4x1xf32>
    %806 = arith.andi %803, %805 : vector<4x1xi1>
    %cst_258 = arith.constant 1.000000e+00 : f32
    %cst_259 = arith.constant 0.000000e+00 : f32
    %807 = vector.broadcast %cst_258 : f32 to vector<4x1xf32>
    %808 = vector.broadcast %cst_259 : f32 to vector<4x1xf32>
    %809 = arith.select %806, %807, %808 : vector<4x1xi1>, vector<4x1xf32>
    %810 = arith.addf %802, %809 : vector<4x1xf32>
    %811 = arith.cmpf oge, %783, %793 : vector<4x1xf32>
    %cst_260 = arith.constant 5.000000e-01 : f32
    %812 = vector.broadcast %cst_260 : f32 to vector<4x1xf32>
    %813 = arith.cmpf olt, %810, %812 : vector<4x1xf32>
    %814 = arith.andi %811, %813 : vector<4x1xi1>
    %cst_261 = arith.constant 1.000000e+00 : f32
    %cst_262 = arith.constant 0.000000e+00 : f32
    %815 = vector.broadcast %cst_261 : f32 to vector<4x1xf32>
    %816 = vector.broadcast %cst_262 : f32 to vector<4x1xf32>
    %817 = arith.select %814, %815, %816 : vector<4x1xi1>, vector<4x1xf32>
    %818 = arith.addf %810, %817 : vector<4x1xf32>
    %819 = arith.cmpf oge, %786, %793 : vector<4x1xf32>
    %cst_263 = arith.constant 5.000000e-01 : f32
    %820 = vector.broadcast %cst_263 : f32 to vector<4x1xf32>
    %821 = arith.cmpf olt, %818, %820 : vector<4x1xf32>
    %822 = arith.andi %819, %821 : vector<4x1xi1>
    %cst_264 = arith.constant 1.000000e+00 : f32
    %cst_265 = arith.constant 0.000000e+00 : f32
    %823 = vector.broadcast %cst_264 : f32 to vector<4x1xf32>
    %824 = vector.broadcast %cst_265 : f32 to vector<4x1xf32>
    %825 = arith.select %822, %823, %824 : vector<4x1xi1>, vector<4x1xf32>
    %826 = arith.addf %818, %825 : vector<4x1xf32>
    %827 = arith.cmpf oge, %789, %793 : vector<4x1xf32>
    %cst_266 = arith.constant 5.000000e-01 : f32
    %828 = vector.broadcast %cst_266 : f32 to vector<4x1xf32>
    %829 = arith.cmpf olt, %826, %828 : vector<4x1xf32>
    %830 = arith.andi %827, %829 : vector<4x1xi1>
    %cst_267 = arith.constant 1.000000e+00 : f32
    %cst_268 = arith.constant 0.000000e+00 : f32
    %831 = vector.broadcast %cst_267 : f32 to vector<4x1xf32>
    %832 = vector.broadcast %cst_268 : f32 to vector<4x1xf32>
    %833 = arith.select %830, %831, %832 : vector<4x1xi1>, vector<4x1xf32>
    %cst_269 = arith.constant 0.000000e+00 : f32
    %834 = vector.broadcast %cst_269 : f32 to vector<4x1xf32>
    %835 = arith.mulf %737, %649 : vector<4x1xf32>
    %836 = arith.addf %834, %835 : vector<4x1xf32>
    %837 = arith.mulf %746, %663 : vector<4x1xf32>
    %838 = arith.addf %836, %837 : vector<4x1xf32>
    %839 = arith.mulf %755, %677 : vector<4x1xf32>
    %840 = arith.addf %838, %839 : vector<4x1xf32>
    %841 = arith.mulf %764, %691 : vector<4x1xf32>
    %842 = arith.addf %840, %841 : vector<4x1xf32>
    %843 = arith.mulf %773, %705 : vector<4x1xf32>
    %844 = arith.addf %842, %843 : vector<4x1xf32>
    %cst_270 = arith.constant 0.000000e+00 : f32
    %845 = vector.broadcast %cst_270 : f32 to vector<4x1xf32>
    %846 = arith.mulf %801, %649 : vector<4x1xf32>
    %847 = arith.addf %845, %846 : vector<4x1xf32>
    %848 = arith.mulf %809, %663 : vector<4x1xf32>
    %849 = arith.addf %847, %848 : vector<4x1xf32>
    %850 = arith.mulf %817, %677 : vector<4x1xf32>
    %851 = arith.addf %849, %850 : vector<4x1xf32>
    %852 = arith.mulf %825, %691 : vector<4x1xf32>
    %853 = arith.addf %851, %852 : vector<4x1xf32>
    %854 = arith.mulf %833, %705 : vector<4x1xf32>
    %855 = arith.addf %853, %854 : vector<4x1xf32>
    %856 = arith.maximumf %844, %855 : vector<4x1xf32>
    %857 = arith.subf %844, %856 : vector<4x1xf32>
    %858 = math.exp %857 : vector<4x1xf32>
    %859 = arith.subf %855, %856 : vector<4x1xf32>
    %860 = math.exp %859 : vector<4x1xf32>
    %861 = arith.addf %858, %860 : vector<4x1xf32>
    %862 = tpu.reciprocal %861 {approx = true} : vector<4x1xf32> -> vector<4x1xf32>
    %863 = arith.mulf %858, %862 : vector<4x1xf32>
    %864 = arith.mulf %860, %862 : vector<4x1xf32>
    %cst_271 = arith.constant 0.000000e+00 : f32
    %865 = vector.broadcast %cst_271 : f32 to vector<4x64xf32>
    %cst_272 = arith.constant 0.000000e+00 : f32
    %866 = vector.broadcast %cst_272 : f32 to vector<4x1xf32>
    %867 = arith.mulf %863, %737 : vector<4x1xf32>
    %868 = arith.addf %866, %867 : vector<4x1xf32>
    %869 = arith.mulf %864, %801 : vector<4x1xf32>
    %870 = arith.addf %868, %869 : vector<4x1xf32>
    %871 = vector.broadcast %870 : vector<4x1xf32> to vector<4x64xf32>
    %872 = arith.mulf %871, %637 : vector<4x64xf32>
    %873 = arith.addf %865, %872 : vector<4x64xf32>
    %cst_273 = arith.constant 0.000000e+00 : f32
    %874 = vector.broadcast %cst_273 : f32 to vector<4x1xf32>
    %875 = arith.mulf %863, %746 : vector<4x1xf32>
    %876 = arith.addf %874, %875 : vector<4x1xf32>
    %877 = arith.mulf %864, %809 : vector<4x1xf32>
    %878 = arith.addf %876, %877 : vector<4x1xf32>
    %879 = vector.broadcast %878 : vector<4x1xf32> to vector<4x64xf32>
    %880 = arith.mulf %879, %651 : vector<4x64xf32>
    %881 = arith.addf %873, %880 : vector<4x64xf32>
    %cst_274 = arith.constant 0.000000e+00 : f32
    %882 = vector.broadcast %cst_274 : f32 to vector<4x1xf32>
    %883 = arith.mulf %863, %755 : vector<4x1xf32>
    %884 = arith.addf %882, %883 : vector<4x1xf32>
    %885 = arith.mulf %864, %817 : vector<4x1xf32>
    %886 = arith.addf %884, %885 : vector<4x1xf32>
    %887 = vector.broadcast %886 : vector<4x1xf32> to vector<4x64xf32>
    %888 = arith.mulf %887, %665 : vector<4x64xf32>
    %889 = arith.addf %881, %888 : vector<4x64xf32>
    %cst_275 = arith.constant 0.000000e+00 : f32
    %890 = vector.broadcast %cst_275 : f32 to vector<4x1xf32>
    %891 = arith.mulf %863, %764 : vector<4x1xf32>
    %892 = arith.addf %890, %891 : vector<4x1xf32>
    %893 = arith.mulf %864, %825 : vector<4x1xf32>
    %894 = arith.addf %892, %893 : vector<4x1xf32>
    %895 = vector.broadcast %894 : vector<4x1xf32> to vector<4x64xf32>
    %896 = arith.mulf %895, %679 : vector<4x64xf32>
    %897 = arith.addf %889, %896 : vector<4x64xf32>
    %cst_276 = arith.constant 0.000000e+00 : f32
    %898 = vector.broadcast %cst_276 : f32 to vector<4x1xf32>
    %899 = arith.mulf %863, %773 : vector<4x1xf32>
    %900 = arith.addf %898, %899 : vector<4x1xf32>
    %901 = arith.mulf %864, %833 : vector<4x1xf32>
    %902 = arith.addf %900, %901 : vector<4x1xf32>
    %903 = vector.broadcast %902 : vector<4x1xf32> to vector<4x64xf32>
    %904 = arith.mulf %903, %693 : vector<4x64xf32>
    %905 = arith.addf %897, %904 : vector<4x64xf32>
    %c1_277 = arith.constant 1 : index
    %c0_278 = arith.constant 0 : index
    %c0_279 = arith.constant 0 : index
    %906 = vector.load %arg7[%c1_277, %c0_278, %c0_279] : memref<2x64x64xbf16, #tpu.memory_space<vmem>>, vector<1x64x64xbf16>
    %907 = vector.shape_cast %906 : vector<1x64x64xbf16> to vector<64x64xbf16>
    %c1_280 = arith.constant 1 : index
    %c0_281 = arith.constant 0 : index
    %c0_282 = arith.constant 0 : index
    %c0_283 = arith.constant 0 : index
    %908 = vector.load %arg4[%c1_280, %c0_281, %c0_282, %c0_283] : memref<2x4x5x64xbf16, #tpu.memory_space<vmem>>, vector<1x4x5x64xbf16>
    %909 = vector.shape_cast %908 : vector<1x4x5x64xbf16> to vector<4x5x64xbf16>
    %910 = vector.broadcast %5 : vector<1x64xf32> to vector<4x64xf32>
    %911 = arith.mulf %623, %910 : vector<4x64xf32>
    %cst_284 = arith.constant dense<0.000000e+00> : vector<4xf32>
    %912 = vector.multi_reduction <add>, %911, %cst_284 [1] : vector<4x64xf32> to vector<4xf32>
    %913 = vector.shape_cast %912 : vector<4xf32> to vector<4x1xf32>
    %914 = vector.extract_strided_slice %909 {offsets = [0, 0, 0], sizes = [4, 1, 64], strides = [1, 1, 1]} : vector<4x5x64xbf16> to vector<4x1x64xbf16>
    %915 = vector.shape_cast %914 : vector<4x1x64xbf16> to vector<4x64xbf16>
    %cst_285 = arith.constant dense<0.000000e+00> : vector<4x64xf32>
    %916 = tpu.matmul %915, %907, %cst_285 {dimension_numbers = #tpu.dot_dimension_numbers<[1], [0], [0], [1], [0, 0, 1, 1], [], []>} : vector<4x64xbf16>, vector<64x64xbf16>, vector<4x64xf32> -> vector<4x64xf32>
    %917 = arith.subf %630, %916 : vector<4x64xf32>
    %918 = arith.mulf %917, %917 : vector<4x64xf32>
    %cst_286 = arith.constant dense<0.000000e+00> : vector<4xf32>
    %919 = vector.multi_reduction <add>, %918, %cst_286 [1] : vector<4x64xf32> to vector<4xf32>
    %920 = vector.shape_cast %919 : vector<4xf32> to vector<4x1xf32>
    %cst_287 = arith.constant 0.000000e+00 : f32
    %921 = vector.broadcast %cst_287 : f32 to vector<4x1xf32>
    %922 = arith.subf %921, %920 : vector<4x1xf32>
    %923 = arith.extf %915 : vector<4x64xbf16> to vector<4x64xf32>
    %924 = vector.broadcast %6 : vector<1x64xf32> to vector<4x64xf32>
    %925 = arith.mulf %923, %924 : vector<4x64xf32>
    %cst_288 = arith.constant dense<0.000000e+00> : vector<4xf32>
    %926 = vector.multi_reduction <add>, %925, %cst_288 [1] : vector<4x64xf32> to vector<4xf32>
    %927 = vector.shape_cast %926 : vector<4xf32> to vector<4x1xf32>
    %928 = vector.extract_strided_slice %909 {offsets = [0, 1, 0], sizes = [4, 1, 64], strides = [1, 1, 1]} : vector<4x5x64xbf16> to vector<4x1x64xbf16>
    %929 = vector.shape_cast %928 : vector<4x1x64xbf16> to vector<4x64xbf16>
    %cst_289 = arith.constant dense<0.000000e+00> : vector<4x64xf32>
    %930 = tpu.matmul %929, %907, %cst_289 {dimension_numbers = #tpu.dot_dimension_numbers<[1], [0], [0], [1], [0, 0, 1, 1], [], []>} : vector<4x64xbf16>, vector<64x64xbf16>, vector<4x64xf32> -> vector<4x64xf32>
    %931 = arith.subf %630, %930 : vector<4x64xf32>
    %932 = arith.mulf %931, %931 : vector<4x64xf32>
    %cst_290 = arith.constant dense<0.000000e+00> : vector<4xf32>
    %933 = vector.multi_reduction <add>, %932, %cst_290 [1] : vector<4x64xf32> to vector<4xf32>
    %934 = vector.shape_cast %933 : vector<4xf32> to vector<4x1xf32>
    %cst_291 = arith.constant 0.000000e+00 : f32
    %935 = vector.broadcast %cst_291 : f32 to vector<4x1xf32>
    %936 = arith.subf %935, %934 : vector<4x1xf32>
    %937 = arith.extf %929 : vector<4x64xbf16> to vector<4x64xf32>
    %938 = vector.broadcast %6 : vector<1x64xf32> to vector<4x64xf32>
    %939 = arith.mulf %937, %938 : vector<4x64xf32>
    %cst_292 = arith.constant dense<0.000000e+00> : vector<4xf32>
    %940 = vector.multi_reduction <add>, %939, %cst_292 [1] : vector<4x64xf32> to vector<4xf32>
    %941 = vector.shape_cast %940 : vector<4xf32> to vector<4x1xf32>
    %942 = vector.extract_strided_slice %909 {offsets = [0, 2, 0], sizes = [4, 1, 64], strides = [1, 1, 1]} : vector<4x5x64xbf16> to vector<4x1x64xbf16>
    %943 = vector.shape_cast %942 : vector<4x1x64xbf16> to vector<4x64xbf16>
    %cst_293 = arith.constant dense<0.000000e+00> : vector<4x64xf32>
    %944 = tpu.matmul %943, %907, %cst_293 {dimension_numbers = #tpu.dot_dimension_numbers<[1], [0], [0], [1], [0, 0, 1, 1], [], []>} : vector<4x64xbf16>, vector<64x64xbf16>, vector<4x64xf32> -> vector<4x64xf32>
    %945 = arith.subf %630, %944 : vector<4x64xf32>
    %946 = arith.mulf %945, %945 : vector<4x64xf32>
    %cst_294 = arith.constant dense<0.000000e+00> : vector<4xf32>
    %947 = vector.multi_reduction <add>, %946, %cst_294 [1] : vector<4x64xf32> to vector<4xf32>
    %948 = vector.shape_cast %947 : vector<4xf32> to vector<4x1xf32>
    %cst_295 = arith.constant 0.000000e+00 : f32
    %949 = vector.broadcast %cst_295 : f32 to vector<4x1xf32>
    %950 = arith.subf %949, %948 : vector<4x1xf32>
    %951 = arith.extf %943 : vector<4x64xbf16> to vector<4x64xf32>
    %952 = vector.broadcast %6 : vector<1x64xf32> to vector<4x64xf32>
    %953 = arith.mulf %951, %952 : vector<4x64xf32>
    %cst_296 = arith.constant dense<0.000000e+00> : vector<4xf32>
    %954 = vector.multi_reduction <add>, %953, %cst_296 [1] : vector<4x64xf32> to vector<4xf32>
    %955 = vector.shape_cast %954 : vector<4xf32> to vector<4x1xf32>
    %956 = vector.extract_strided_slice %909 {offsets = [0, 3, 0], sizes = [4, 1, 64], strides = [1, 1, 1]} : vector<4x5x64xbf16> to vector<4x1x64xbf16>
    %957 = vector.shape_cast %956 : vector<4x1x64xbf16> to vector<4x64xbf16>
    %cst_297 = arith.constant dense<0.000000e+00> : vector<4x64xf32>
    %958 = tpu.matmul %957, %907, %cst_297 {dimension_numbers = #tpu.dot_dimension_numbers<[1], [0], [0], [1], [0, 0, 1, 1], [], []>} : vector<4x64xbf16>, vector<64x64xbf16>, vector<4x64xf32> -> vector<4x64xf32>
    %959 = arith.subf %630, %958 : vector<4x64xf32>
    %960 = arith.mulf %959, %959 : vector<4x64xf32>
    %cst_298 = arith.constant dense<0.000000e+00> : vector<4xf32>
    %961 = vector.multi_reduction <add>, %960, %cst_298 [1] : vector<4x64xf32> to vector<4xf32>
    %962 = vector.shape_cast %961 : vector<4xf32> to vector<4x1xf32>
    %cst_299 = arith.constant 0.000000e+00 : f32
    %963 = vector.broadcast %cst_299 : f32 to vector<4x1xf32>
    %964 = arith.subf %963, %962 : vector<4x1xf32>
    %965 = arith.extf %957 : vector<4x64xbf16> to vector<4x64xf32>
    %966 = vector.broadcast %6 : vector<1x64xf32> to vector<4x64xf32>
    %967 = arith.mulf %965, %966 : vector<4x64xf32>
    %cst_300 = arith.constant dense<0.000000e+00> : vector<4xf32>
    %968 = vector.multi_reduction <add>, %967, %cst_300 [1] : vector<4x64xf32> to vector<4xf32>
    %969 = vector.shape_cast %968 : vector<4xf32> to vector<4x1xf32>
    %970 = vector.extract_strided_slice %909 {offsets = [0, 4, 0], sizes = [4, 1, 64], strides = [1, 1, 1]} : vector<4x5x64xbf16> to vector<4x1x64xbf16>
    %971 = vector.shape_cast %970 : vector<4x1x64xbf16> to vector<4x64xbf16>
    %cst_301 = arith.constant dense<0.000000e+00> : vector<4x64xf32>
    %972 = tpu.matmul %971, %907, %cst_301 {dimension_numbers = #tpu.dot_dimension_numbers<[1], [0], [0], [1], [0, 0, 1, 1], [], []>} : vector<4x64xbf16>, vector<64x64xbf16>, vector<4x64xf32> -> vector<4x64xf32>
    %973 = arith.subf %630, %972 : vector<4x64xf32>
    %974 = arith.mulf %973, %973 : vector<4x64xf32>
    %cst_302 = arith.constant dense<0.000000e+00> : vector<4xf32>
    %975 = vector.multi_reduction <add>, %974, %cst_302 [1] : vector<4x64xf32> to vector<4xf32>
    %976 = vector.shape_cast %975 : vector<4xf32> to vector<4x1xf32>
    %cst_303 = arith.constant 0.000000e+00 : f32
    %977 = vector.broadcast %cst_303 : f32 to vector<4x1xf32>
    %978 = arith.subf %977, %976 : vector<4x1xf32>
    %979 = arith.extf %971 : vector<4x64xbf16> to vector<4x64xf32>
    %980 = vector.broadcast %6 : vector<1x64xf32> to vector<4x64xf32>
    %981 = arith.mulf %979, %980 : vector<4x64xf32>
    %cst_304 = arith.constant dense<0.000000e+00> : vector<4xf32>
    %982 = vector.multi_reduction <add>, %981, %cst_304 [1] : vector<4x64xf32> to vector<4xf32>
    %983 = vector.shape_cast %982 : vector<4xf32> to vector<4x1xf32>
    %cst_305 = arith.constant 0.000000e+00 : f32
    %984 = vector.broadcast %cst_305 : f32 to vector<4x1xf32>
    %cst_306 = arith.constant 0.000000e+00 : f32
    %985 = vector.broadcast %cst_306 : f32 to vector<4x1xf32>
    %cst_307 = arith.constant 0.000000e+00 : f32
    %986 = vector.broadcast %cst_307 : f32 to vector<4x1xf32>
    %cst_308 = arith.constant 0.000000e+00 : f32
    %987 = vector.broadcast %cst_308 : f32 to vector<4x1xf32>
    %cst_309 = arith.constant 0.000000e+00 : f32
    %988 = vector.broadcast %cst_309 : f32 to vector<4x1xf32>
    %cst_310 = arith.constant 1.000000e+30 : f32
    %989 = vector.broadcast %cst_310 : f32 to vector<4x1xf32>
    %990 = arith.mulf %984, %989 : vector<4x1xf32>
    %991 = arith.subf %922, %990 : vector<4x1xf32>
    %cst_311 = arith.constant 1.000000e+30 : f32
    %992 = vector.broadcast %cst_311 : f32 to vector<4x1xf32>
    %993 = arith.mulf %985, %992 : vector<4x1xf32>
    %994 = arith.subf %936, %993 : vector<4x1xf32>
    %cst_312 = arith.constant 1.000000e+30 : f32
    %995 = vector.broadcast %cst_312 : f32 to vector<4x1xf32>
    %996 = arith.mulf %986, %995 : vector<4x1xf32>
    %997 = arith.subf %950, %996 : vector<4x1xf32>
    %cst_313 = arith.constant 1.000000e+30 : f32
    %998 = vector.broadcast %cst_313 : f32 to vector<4x1xf32>
    %999 = arith.mulf %987, %998 : vector<4x1xf32>
    %1000 = arith.subf %964, %999 : vector<4x1xf32>
    %cst_314 = arith.constant 1.000000e+30 : f32
    %1001 = vector.broadcast %cst_314 : f32 to vector<4x1xf32>
    %1002 = arith.mulf %988, %1001 : vector<4x1xf32>
    %1003 = arith.subf %978, %1002 : vector<4x1xf32>
    %1004 = arith.maximumf %991, %994 : vector<4x1xf32>
    %1005 = arith.maximumf %1004, %997 : vector<4x1xf32>
    %1006 = arith.maximumf %1005, %1000 : vector<4x1xf32>
    %1007 = arith.maximumf %1006, %1003 : vector<4x1xf32>
    %cst_315 = arith.constant 0.000000e+00 : f32
    %1008 = vector.broadcast %cst_315 : f32 to vector<4x1xf32>
    %1009 = arith.cmpf oge, %991, %1007 : vector<4x1xf32>
    %cst_316 = arith.constant 5.000000e-01 : f32
    %1010 = vector.broadcast %cst_316 : f32 to vector<4x1xf32>
    %1011 = arith.cmpf olt, %1008, %1010 : vector<4x1xf32>
    %1012 = arith.andi %1009, %1011 : vector<4x1xi1>
    %cst_317 = arith.constant 1.000000e+00 : f32
    %cst_318 = arith.constant 0.000000e+00 : f32
    %1013 = vector.broadcast %cst_317 : f32 to vector<4x1xf32>
    %1014 = vector.broadcast %cst_318 : f32 to vector<4x1xf32>
    %1015 = arith.select %1012, %1013, %1014 : vector<4x1xi1>, vector<4x1xf32>
    %1016 = arith.addf %1008, %1015 : vector<4x1xf32>
    %1017 = arith.addf %984, %1015 : vector<4x1xf32>
    %1018 = arith.cmpf oge, %994, %1007 : vector<4x1xf32>
    %cst_319 = arith.constant 5.000000e-01 : f32
    %1019 = vector.broadcast %cst_319 : f32 to vector<4x1xf32>
    %1020 = arith.cmpf olt, %1016, %1019 : vector<4x1xf32>
    %1021 = arith.andi %1018, %1020 : vector<4x1xi1>
    %cst_320 = arith.constant 1.000000e+00 : f32
    %cst_321 = arith.constant 0.000000e+00 : f32
    %1022 = vector.broadcast %cst_320 : f32 to vector<4x1xf32>
    %1023 = vector.broadcast %cst_321 : f32 to vector<4x1xf32>
    %1024 = arith.select %1021, %1022, %1023 : vector<4x1xi1>, vector<4x1xf32>
    %1025 = arith.addf %1016, %1024 : vector<4x1xf32>
    %1026 = arith.addf %985, %1024 : vector<4x1xf32>
    %1027 = arith.cmpf oge, %997, %1007 : vector<4x1xf32>
    %cst_322 = arith.constant 5.000000e-01 : f32
    %1028 = vector.broadcast %cst_322 : f32 to vector<4x1xf32>
    %1029 = arith.cmpf olt, %1025, %1028 : vector<4x1xf32>
    %1030 = arith.andi %1027, %1029 : vector<4x1xi1>
    %cst_323 = arith.constant 1.000000e+00 : f32
    %cst_324 = arith.constant 0.000000e+00 : f32
    %1031 = vector.broadcast %cst_323 : f32 to vector<4x1xf32>
    %1032 = vector.broadcast %cst_324 : f32 to vector<4x1xf32>
    %1033 = arith.select %1030, %1031, %1032 : vector<4x1xi1>, vector<4x1xf32>
    %1034 = arith.addf %1025, %1033 : vector<4x1xf32>
    %1035 = arith.addf %986, %1033 : vector<4x1xf32>
    %1036 = arith.cmpf oge, %1000, %1007 : vector<4x1xf32>
    %cst_325 = arith.constant 5.000000e-01 : f32
    %1037 = vector.broadcast %cst_325 : f32 to vector<4x1xf32>
    %1038 = arith.cmpf olt, %1034, %1037 : vector<4x1xf32>
    %1039 = arith.andi %1036, %1038 : vector<4x1xi1>
    %cst_326 = arith.constant 1.000000e+00 : f32
    %cst_327 = arith.constant 0.000000e+00 : f32
    %1040 = vector.broadcast %cst_326 : f32 to vector<4x1xf32>
    %1041 = vector.broadcast %cst_327 : f32 to vector<4x1xf32>
    %1042 = arith.select %1039, %1040, %1041 : vector<4x1xi1>, vector<4x1xf32>
    %1043 = arith.addf %1034, %1042 : vector<4x1xf32>
    %1044 = arith.addf %987, %1042 : vector<4x1xf32>
    %1045 = arith.cmpf oge, %1003, %1007 : vector<4x1xf32>
    %cst_328 = arith.constant 5.000000e-01 : f32
    %1046 = vector.broadcast %cst_328 : f32 to vector<4x1xf32>
    %1047 = arith.cmpf olt, %1043, %1046 : vector<4x1xf32>
    %1048 = arith.andi %1045, %1047 : vector<4x1xi1>
    %cst_329 = arith.constant 1.000000e+00 : f32
    %cst_330 = arith.constant 0.000000e+00 : f32
    %1049 = vector.broadcast %cst_329 : f32 to vector<4x1xf32>
    %1050 = vector.broadcast %cst_330 : f32 to vector<4x1xf32>
    %1051 = arith.select %1048, %1049, %1050 : vector<4x1xi1>, vector<4x1xf32>
    %1052 = arith.addf %988, %1051 : vector<4x1xf32>
    %cst_331 = arith.constant 1.000000e+30 : f32
    %1053 = vector.broadcast %cst_331 : f32 to vector<4x1xf32>
    %1054 = arith.mulf %1017, %1053 : vector<4x1xf32>
    %1055 = arith.subf %922, %1054 : vector<4x1xf32>
    %cst_332 = arith.constant 1.000000e+30 : f32
    %1056 = vector.broadcast %cst_332 : f32 to vector<4x1xf32>
    %1057 = arith.mulf %1026, %1056 : vector<4x1xf32>
    %1058 = arith.subf %936, %1057 : vector<4x1xf32>
    %cst_333 = arith.constant 1.000000e+30 : f32
    %1059 = vector.broadcast %cst_333 : f32 to vector<4x1xf32>
    %1060 = arith.mulf %1035, %1059 : vector<4x1xf32>
    %1061 = arith.subf %950, %1060 : vector<4x1xf32>
    %cst_334 = arith.constant 1.000000e+30 : f32
    %1062 = vector.broadcast %cst_334 : f32 to vector<4x1xf32>
    %1063 = arith.mulf %1044, %1062 : vector<4x1xf32>
    %1064 = arith.subf %964, %1063 : vector<4x1xf32>
    %cst_335 = arith.constant 1.000000e+30 : f32
    %1065 = vector.broadcast %cst_335 : f32 to vector<4x1xf32>
    %1066 = arith.mulf %1052, %1065 : vector<4x1xf32>
    %1067 = arith.subf %978, %1066 : vector<4x1xf32>
    %1068 = arith.maximumf %1055, %1058 : vector<4x1xf32>
    %1069 = arith.maximumf %1068, %1061 : vector<4x1xf32>
    %1070 = arith.maximumf %1069, %1064 : vector<4x1xf32>
    %1071 = arith.maximumf %1070, %1067 : vector<4x1xf32>
    %cst_336 = arith.constant 0.000000e+00 : f32
    %1072 = vector.broadcast %cst_336 : f32 to vector<4x1xf32>
    %1073 = arith.cmpf oge, %1055, %1071 : vector<4x1xf32>
    %cst_337 = arith.constant 5.000000e-01 : f32
    %1074 = vector.broadcast %cst_337 : f32 to vector<4x1xf32>
    %1075 = arith.cmpf olt, %1072, %1074 : vector<4x1xf32>
    %1076 = arith.andi %1073, %1075 : vector<4x1xi1>
    %cst_338 = arith.constant 1.000000e+00 : f32
    %cst_339 = arith.constant 0.000000e+00 : f32
    %1077 = vector.broadcast %cst_338 : f32 to vector<4x1xf32>
    %1078 = vector.broadcast %cst_339 : f32 to vector<4x1xf32>
    %1079 = arith.select %1076, %1077, %1078 : vector<4x1xi1>, vector<4x1xf32>
    %1080 = arith.addf %1072, %1079 : vector<4x1xf32>
    %1081 = arith.cmpf oge, %1058, %1071 : vector<4x1xf32>
    %cst_340 = arith.constant 5.000000e-01 : f32
    %1082 = vector.broadcast %cst_340 : f32 to vector<4x1xf32>
    %1083 = arith.cmpf olt, %1080, %1082 : vector<4x1xf32>
    %1084 = arith.andi %1081, %1083 : vector<4x1xi1>
    %cst_341 = arith.constant 1.000000e+00 : f32
    %cst_342 = arith.constant 0.000000e+00 : f32
    %1085 = vector.broadcast %cst_341 : f32 to vector<4x1xf32>
    %1086 = vector.broadcast %cst_342 : f32 to vector<4x1xf32>
    %1087 = arith.select %1084, %1085, %1086 : vector<4x1xi1>, vector<4x1xf32>
    %1088 = arith.addf %1080, %1087 : vector<4x1xf32>
    %1089 = arith.cmpf oge, %1061, %1071 : vector<4x1xf32>
    %cst_343 = arith.constant 5.000000e-01 : f32
    %1090 = vector.broadcast %cst_343 : f32 to vector<4x1xf32>
    %1091 = arith.cmpf olt, %1088, %1090 : vector<4x1xf32>
    %1092 = arith.andi %1089, %1091 : vector<4x1xi1>
    %cst_344 = arith.constant 1.000000e+00 : f32
    %cst_345 = arith.constant 0.000000e+00 : f32
    %1093 = vector.broadcast %cst_344 : f32 to vector<4x1xf32>
    %1094 = vector.broadcast %cst_345 : f32 to vector<4x1xf32>
    %1095 = arith.select %1092, %1093, %1094 : vector<4x1xi1>, vector<4x1xf32>
    %1096 = arith.addf %1088, %1095 : vector<4x1xf32>
    %1097 = arith.cmpf oge, %1064, %1071 : vector<4x1xf32>
    %cst_346 = arith.constant 5.000000e-01 : f32
    %1098 = vector.broadcast %cst_346 : f32 to vector<4x1xf32>
    %1099 = arith.cmpf olt, %1096, %1098 : vector<4x1xf32>
    %1100 = arith.andi %1097, %1099 : vector<4x1xi1>
    %cst_347 = arith.constant 1.000000e+00 : f32
    %cst_348 = arith.constant 0.000000e+00 : f32
    %1101 = vector.broadcast %cst_347 : f32 to vector<4x1xf32>
    %1102 = vector.broadcast %cst_348 : f32 to vector<4x1xf32>
    %1103 = arith.select %1100, %1101, %1102 : vector<4x1xi1>, vector<4x1xf32>
    %1104 = arith.addf %1096, %1103 : vector<4x1xf32>
    %1105 = arith.cmpf oge, %1067, %1071 : vector<4x1xf32>
    %cst_349 = arith.constant 5.000000e-01 : f32
    %1106 = vector.broadcast %cst_349 : f32 to vector<4x1xf32>
    %1107 = arith.cmpf olt, %1104, %1106 : vector<4x1xf32>
    %1108 = arith.andi %1105, %1107 : vector<4x1xi1>
    %cst_350 = arith.constant 1.000000e+00 : f32
    %cst_351 = arith.constant 0.000000e+00 : f32
    %1109 = vector.broadcast %cst_350 : f32 to vector<4x1xf32>
    %1110 = vector.broadcast %cst_351 : f32 to vector<4x1xf32>
    %1111 = arith.select %1108, %1109, %1110 : vector<4x1xi1>, vector<4x1xf32>
    %1112 = vector.broadcast %7 : vector<1x1xf32> to vector<4x1xf32>
    %1113 = arith.addf %913, %1112 : vector<4x1xf32>
    %1114 = arith.mulf %1015, %927 : vector<4x1xf32>
    %1115 = arith.addf %1113, %1114 : vector<4x1xf32>
    %1116 = arith.mulf %1024, %941 : vector<4x1xf32>
    %1117 = arith.addf %1115, %1116 : vector<4x1xf32>
    %1118 = arith.mulf %1033, %955 : vector<4x1xf32>
    %1119 = arith.addf %1117, %1118 : vector<4x1xf32>
    %1120 = arith.mulf %1042, %969 : vector<4x1xf32>
    %1121 = arith.addf %1119, %1120 : vector<4x1xf32>
    %1122 = arith.mulf %1051, %983 : vector<4x1xf32>
    %1123 = arith.addf %1121, %1122 : vector<4x1xf32>
    %cst_352 = arith.constant 0.000000e+00 : f32
    %1124 = vector.broadcast %cst_352 : f32 to vector<4x1xf32>
    %1125 = arith.maximumf %1123, %1124 : vector<4x1xf32>
    %1126 = vector.broadcast %7 : vector<1x1xf32> to vector<4x1xf32>
    %1127 = arith.addf %913, %1126 : vector<4x1xf32>
    %1128 = arith.mulf %1079, %927 : vector<4x1xf32>
    %1129 = arith.addf %1127, %1128 : vector<4x1xf32>
    %1130 = arith.mulf %1087, %941 : vector<4x1xf32>
    %1131 = arith.addf %1129, %1130 : vector<4x1xf32>
    %1132 = arith.mulf %1095, %955 : vector<4x1xf32>
    %1133 = arith.addf %1131, %1132 : vector<4x1xf32>
    %1134 = arith.mulf %1103, %969 : vector<4x1xf32>
    %1135 = arith.addf %1133, %1134 : vector<4x1xf32>
    %1136 = arith.mulf %1111, %983 : vector<4x1xf32>
    %1137 = arith.addf %1135, %1136 : vector<4x1xf32>
    %cst_353 = arith.constant 0.000000e+00 : f32
    %1138 = vector.broadcast %cst_353 : f32 to vector<4x1xf32>
    %1139 = arith.maximumf %1137, %1138 : vector<4x1xf32>
    %1140 = arith.maximumf %1125, %1139 : vector<4x1xf32>
    %1141 = arith.subf %1125, %1140 : vector<4x1xf32>
    %1142 = math.exp %1141 : vector<4x1xf32>
    %1143 = arith.subf %1139, %1140 : vector<4x1xf32>
    %1144 = math.exp %1143 : vector<4x1xf32>
    %1145 = arith.addf %1142, %1144 : vector<4x1xf32>
    %1146 = tpu.reciprocal %1145 {approx = true} : vector<4x1xf32> -> vector<4x1xf32>
    %1147 = arith.mulf %1142, %1146 : vector<4x1xf32>
    %1148 = arith.mulf %1144, %1146 : vector<4x1xf32>
    %cst_354 = arith.constant 0.000000e+00 : f32
    %1149 = vector.broadcast %cst_354 : f32 to vector<4x64xf32>
    %cst_355 = arith.constant 0.000000e+00 : f32
    %1150 = vector.broadcast %cst_355 : f32 to vector<4x1xf32>
    %1151 = arith.mulf %1147, %1015 : vector<4x1xf32>
    %1152 = arith.addf %1150, %1151 : vector<4x1xf32>
    %1153 = arith.mulf %1148, %1079 : vector<4x1xf32>
    %1154 = arith.addf %1152, %1153 : vector<4x1xf32>
    %1155 = vector.broadcast %1154 : vector<4x1xf32> to vector<4x64xf32>
    %1156 = arith.mulf %1155, %923 : vector<4x64xf32>
    %1157 = arith.addf %1149, %1156 : vector<4x64xf32>
    %cst_356 = arith.constant 0.000000e+00 : f32
    %1158 = vector.broadcast %cst_356 : f32 to vector<4x1xf32>
    %1159 = arith.mulf %1147, %1024 : vector<4x1xf32>
    %1160 = arith.addf %1158, %1159 : vector<4x1xf32>
    %1161 = arith.mulf %1148, %1087 : vector<4x1xf32>
    %1162 = arith.addf %1160, %1161 : vector<4x1xf32>
    %1163 = vector.broadcast %1162 : vector<4x1xf32> to vector<4x64xf32>
    %1164 = arith.mulf %1163, %937 : vector<4x64xf32>
    %1165 = arith.addf %1157, %1164 : vector<4x64xf32>
    %cst_357 = arith.constant 0.000000e+00 : f32
    %1166 = vector.broadcast %cst_357 : f32 to vector<4x1xf32>
    %1167 = arith.mulf %1147, %1033 : vector<4x1xf32>
    %1168 = arith.addf %1166, %1167 : vector<4x1xf32>
    %1169 = arith.mulf %1148, %1095 : vector<4x1xf32>
    %1170 = arith.addf %1168, %1169 : vector<4x1xf32>
    %1171 = vector.broadcast %1170 : vector<4x1xf32> to vector<4x64xf32>
    %1172 = arith.mulf %1171, %951 : vector<4x64xf32>
    %1173 = arith.addf %1165, %1172 : vector<4x64xf32>
    %cst_358 = arith.constant 0.000000e+00 : f32
    %1174 = vector.broadcast %cst_358 : f32 to vector<4x1xf32>
    %1175 = arith.mulf %1147, %1042 : vector<4x1xf32>
    %1176 = arith.addf %1174, %1175 : vector<4x1xf32>
    %1177 = arith.mulf %1148, %1103 : vector<4x1xf32>
    %1178 = arith.addf %1176, %1177 : vector<4x1xf32>
    %1179 = vector.broadcast %1178 : vector<4x1xf32> to vector<4x64xf32>
    %1180 = arith.mulf %1179, %965 : vector<4x64xf32>
    %1181 = arith.addf %1173, %1180 : vector<4x64xf32>
    %cst_359 = arith.constant 0.000000e+00 : f32
    %1182 = vector.broadcast %cst_359 : f32 to vector<4x1xf32>
    %1183 = arith.mulf %1147, %1051 : vector<4x1xf32>
    %1184 = arith.addf %1182, %1183 : vector<4x1xf32>
    %1185 = arith.mulf %1148, %1111 : vector<4x1xf32>
    %1186 = arith.addf %1184, %1185 : vector<4x1xf32>
    %1187 = vector.broadcast %1186 : vector<4x1xf32> to vector<4x64xf32>
    %1188 = arith.mulf %1187, %979 : vector<4x64xf32>
    %1189 = arith.addf %1181, %1188 : vector<4x64xf32>
    %1190 = vector.broadcast %8 : vector<1x64xf32> to vector<4x64xf32>
    %1191 = arith.mulf %623, %1190 : vector<4x64xf32>
    %cst_360 = arith.constant dense<0.000000e+00> : vector<4xf32>
    %1192 = vector.multi_reduction <add>, %1191, %cst_360 [1] : vector<4x64xf32> to vector<4xf32>
    %1193 = vector.shape_cast %1192 : vector<4xf32> to vector<4x1xf32>
    %1194 = vector.broadcast %9 : vector<1x64xf32> to vector<4x64xf32>
    %1195 = arith.mulf %905, %1194 : vector<4x64xf32>
    %cst_361 = arith.constant dense<0.000000e+00> : vector<4xf32>
    %1196 = vector.multi_reduction <add>, %1195, %cst_361 [1] : vector<4x64xf32> to vector<4xf32>
    %1197 = vector.shape_cast %1196 : vector<4xf32> to vector<4x1xf32>
    %1198 = arith.addf %1193, %1197 : vector<4x1xf32>
    %1199 = vector.broadcast %10 : vector<1x1xf32> to vector<4x1xf32>
    %1200 = arith.addf %1198, %1199 : vector<4x1xf32>
    %cst_362 = arith.constant 0.000000e+00 : f32
    %1201 = vector.broadcast %cst_362 : f32 to vector<4x1xf32>
    %1202 = arith.maximumf %1200, %1201 : vector<4x1xf32>
    %1203 = vector.broadcast %9 : vector<1x64xf32> to vector<4x64xf32>
    %1204 = arith.mulf %1189, %1203 : vector<4x64xf32>
    %cst_363 = arith.constant dense<0.000000e+00> : vector<4xf32>
    %1205 = vector.multi_reduction <add>, %1204, %cst_363 [1] : vector<4x64xf32> to vector<4xf32>
    %1206 = vector.shape_cast %1205 : vector<4xf32> to vector<4x1xf32>
    %1207 = arith.addf %1193, %1206 : vector<4x1xf32>
    %1208 = vector.broadcast %10 : vector<1x1xf32> to vector<4x1xf32>
    %1209 = arith.addf %1207, %1208 : vector<4x1xf32>
    %cst_364 = arith.constant 0.000000e+00 : f32
    %1210 = vector.broadcast %cst_364 : f32 to vector<4x1xf32>
    %1211 = arith.maximumf %1209, %1210 : vector<4x1xf32>
    %1212 = arith.maximumf %1202, %1211 : vector<4x1xf32>
    %1213 = arith.subf %1202, %1212 : vector<4x1xf32>
    %1214 = math.exp %1213 : vector<4x1xf32>
    %1215 = arith.subf %1211, %1212 : vector<4x1xf32>
    %1216 = math.exp %1215 : vector<4x1xf32>
    %1217 = arith.addf %1214, %1216 : vector<4x1xf32>
    %1218 = tpu.reciprocal %1217 {approx = true} : vector<4x1xf32> -> vector<4x1xf32>
    %1219 = arith.mulf %1214, %1218 : vector<4x1xf32>
    %1220 = arith.mulf %1216, %1218 : vector<4x1xf32>
    %1221 = vector.broadcast %1219 : vector<4x1xf32> to vector<4x64xf32>
    %1222 = arith.mulf %1221, %905 : vector<4x64xf32>
    %1223 = vector.broadcast %1220 : vector<4x1xf32> to vector<4x64xf32>
    %1224 = arith.mulf %1223, %1189 : vector<4x64xf32>
    %1225 = arith.addf %1222, %1224 : vector<4x64xf32>
    %1226 = tpu.concatenate %623, %1225 in 1 : vector<4x64xf32>, vector<4x64xf32> -> vector<4x128xf32>
    %1227 = arith.truncf %1226 : vector<4x128xf32> to vector<4x128xbf16>
    %cst_365 = arith.constant dense<0.000000e+00> : vector<4x64xf32>
    %1228 = tpu.matmul %1227, %2, %cst_365 {dimension_numbers = #tpu.dot_dimension_numbers<[1], [0], [0], [1], [0, 0, 1, 1], [], []>} : vector<4x128xbf16>, vector<128x64xbf16>, vector<4x64xf32> -> vector<4x64xf32>
    %1229 = vector.broadcast %3 : vector<1x64xf32> to vector<4x64xf32>
    %1230 = arith.addf %1228, %1229 : vector<4x64xf32>
    %cst_366 = arith.constant 0.000000e+00 : f32
    %1231 = vector.broadcast %cst_366 : f32 to vector<4x64xf32>
    %1232 = arith.maximumf %1230, %1231 : vector<4x64xf32>
    %1233 = arith.mulf %621, %1232 : vector<4x64xf32>
    %cst_367 = arith.constant dense<0.000000e+00> : vector<4xf32>
    %1234 = vector.multi_reduction <add>, %1233, %cst_367 [1] : vector<4x64xf32> to vector<4xf32>
    %1235 = vector.shape_cast %1234 : vector<4xf32> to vector<4x1xf32>
    %c0_368 = arith.constant 0 : index
    %c0_369 = arith.constant 0 : index
    %1236 = vector.load %arg17[%c0_368, %c0_369] : memref<4x1xf32, #tpu.memory_space<vmem>>, vector<4x1xf32>
    tpu.vector_store %arg17[%c0_368, %c0_369], %1235 {strides = array<i32>} : memref<4x1xf32, #tpu.memory_space<vmem>>, vector<4x1xf32>,
    return
  }
  func.func @transform_0(%arg0: i32) -> (i32, i32, i32) {
    %c0_i32 = arith.constant 0 : i32
    %c0_i32_0 = arith.constant 0 : i32
    %c0_i32_1 = arith.constant 0 : i32
    return %c0_i32, %arg0, %c0_i32_0 : i32, i32, i32
  }
  func.func @transform_1(%arg0: i32) -> (i32, i32, i32, i32) {
    %c0_i32 = arith.constant 0 : i32
    %c0_i32_0 = arith.constant 0 : i32
    %c0_i32_1 = arith.constant 0 : i32
    %c0_i32_2 = arith.constant 0 : i32
    return %c0_i32, %arg0, %c0_i32_0, %c0_i32_1 : i32, i32, i32, i32
  }
  func.func @transform_2(%arg0: i32) -> (i32, i32, i32) {
    %c0_i32 = arith.constant 0 : i32
    %c0_i32_0 = arith.constant 0 : i32
    %c0_i32_1 = arith.constant 0 : i32
    return %c0_i32, %arg0, %c0_i32_0 : i32, i32, i32
  }
  func.func @transform_3(%arg0: i32) -> (i32, i32, i32, i32) {
    %c0_i32 = arith.constant 0 : i32
    %c0_i32_0 = arith.constant 0 : i32
    %c0_i32_1 = arith.constant 0 : i32
    %c0_i32_2 = arith.constant 0 : i32
    return %c0_i32, %arg0, %c0_i32_0, %c0_i32_1 : i32, i32, i32, i32
  }
  func.func @transform_4(%arg0: i32) -> (i32, i32) {
    %c0_i32 = arith.constant 0 : i32
    %c0_i32_0 = arith.constant 0 : i32
    %c0_i32_1 = arith.constant 0 : i32
    return %c0_i32, %c0_i32_0 : i32, i32
  }
  func.func @transform_5(%arg0: i32) -> (i32, i32) {
    %c0_i32 = arith.constant 0 : i32
    %c0_i32_0 = arith.constant 0 : i32
    %c0_i32_1 = arith.constant 0 : i32
    return %c0_i32, %c0_i32_0 : i32, i32
  }
  func.func @transform_6(%arg0: i32) -> (i32, i32, i32) {
    %c0_i32 = arith.constant 0 : i32
    %c0_i32_0 = arith.constant 0 : i32
    %c0_i32_1 = arith.constant 0 : i32
    %c0_i32_2 = arith.constant 0 : i32
    return %c0_i32, %c0_i32_0, %c0_i32_1 : i32, i32, i32
  }
  func.func @transform_7(%arg0: i32) -> (i32, i32) {
    %c0_i32 = arith.constant 0 : i32
    %c0_i32_0 = arith.constant 0 : i32
    %c0_i32_1 = arith.constant 0 : i32
    return %c0_i32, %c0_i32_0 : i32, i32
  }
  func.func @transform_8(%arg0: i32) -> (i32, i32) {
    %c0_i32 = arith.constant 0 : i32
    %c0_i32_0 = arith.constant 0 : i32
    %c0_i32_1 = arith.constant 0 : i32
    return %c0_i32, %c0_i32_0 : i32, i32
  }
  func.func @transform_9(%arg0: i32) -> (i32, i32) {
    %c0_i32 = arith.constant 0 : i32
    %c0_i32_0 = arith.constant 0 : i32
    %c0_i32_1 = arith.constant 0 : i32
    return %c0_i32, %c0_i32_0 : i32, i32
  }
  func.func @transform_10(%arg0: i32) -> (i32, i32) {
    %c0_i32 = arith.constant 0 : i32
    %c0_i32_0 = arith.constant 0 : i32
    %c0_i32_1 = arith.constant 0 : i32
    return %c0_i32, %c0_i32_0 : i32, i32
  }
  func.func @transform_11(%arg0: i32) -> (i32, i32) {
    %c0_i32 = arith.constant 0 : i32
    %c0_i32_0 = arith.constant 0 : i32
    %c0_i32_1 = arith.constant 0 : i32
    return %c0_i32, %c0_i32_0 : i32, i32
  }
  func.func @transform_12(%arg0: i32) -> (i32, i32) {
    %c0_i32 = arith.constant 0 : i32
    %c0_i32_0 = arith.constant 0 : i32
    %c0_i32_1 = arith.constant 0 : i32
    return %c0_i32, %c0_i32_0 : i32, i32
  }
  func.func @transform_13(%arg0: i32) -> (i32, i32) {
    %c0_i32 = arith.constant 0 : i32
    %c0_i32_0 = arith.constant 0 : i32
    %c0_i32_1 = arith.constant 0 : i32
    return %c0_i32, %c0_i32_0 : i32, i32
  }
  func.func @transform_14(%arg0: i32) -> (i32, i32) {
    %c0_i32 = arith.constant 0 : i32
    %c0_i32_0 = arith.constant 0 : i32
    %c0_i32_1 = arith.constant 0 : i32
    return %c0_i32, %c0_i32_0 : i32, i32
  }
  func.func @transform_15(%arg0: i32) -> (i32, i32) {
    %c0_i32 = arith.constant 0 : i32
    %c0_i32_0 = arith.constant 0 : i32
    %c0_i32_1 = arith.constant 0 : i32
    return %c0_i32, %c0_i32_0 : i32, i32
  }
  func.func @transform_16(%arg0: i32) -> (i32, i32) {
    %c0_i32 = arith.constant 0 : i32
    %c0_i32_0 = arith.constant 0 : i32
    return %arg0, %c0_i32 : i32, i32
  }
}

</mosaic_0001>

<bundles_post_ra>
// kernel: forward.13
= control target key start
LH: loop header
LB: loop body
LE: loop exit
PB: predicated region body
PF: predicated region fallthrough
CT: control target
= control target key end

     0   :  { %v43_v5 = vlaneseq  ;;  %vm53_vm1 = vcmask 523264   ;;  %vm55_vm2 = vcmask 516096   ;;  %s127_s0 = inlined_call_operand.vmem [shape: f32[9,64], index: 0, kind: input, shape index: {}]   ;;  %s128_s1 = inlined_call_operand.vmem [shape: f32[9,64], index: 1, kind: input, shape index: {}]   ;;  %s129_s2 = inlined_call_operand.vmem [shape: f32[9,64], index: 2, kind: input, shape index: {}]   ;;  %s130_s3 = inlined_call_operand.vmem [shape: f32[9,64], index: 3, kind: input, shape index: {}]   ;;  %s131_s4 = inlined_call_operand.vmem [shape: f32[9,64], index: 4, kind: input, shape index: {}]   ;;  %s132_s5 = inlined_call_operand.vmem [shape: f32[9,64], index: 5, kind: output, shape index: {}]  }
   0x1   :  { %v20_v0 = vld [vmem:[%s127_s0] sm:$0xff]  ;;  %v21_v3 = vld [vmem:[%s127_s0 + $0x8] sm:$0x1] }
   0x2   :  { %v24_v1 = vld [vmem:[%s128_s1] sm:$0xff]  ;;  %v22_v2 = vmul.f32 2.0, %v20_v0  ;;  %v23_v6 = vmul.f32 2.0, %v21_v3  ;;  %v25_v7 = vld [vmem:[%s128_s1 + $0x8] sm:$0x1]  ;;  %v44_v15 = vshrl.u32 %v43_v5, 7 }
   0x3   :  { %v28_v4 = vld [vmem:[%s129_s2] sm:$0xff]  ;;  %v29_v9 = vld [vmem:[%s129_s2 + $0x8] sm:$0x1] }
   0x4   :  { %v26_v8 = vadd.f32 %v24_v1, %v22_v2  ;;  %v32_v10 = vld [vmem:[%s130_s3] sm:$0xff]  ;;  %v27_v11 = vadd.f32 %v25_v7, %v23_v6  ;;  %v33_v13 = vld [vmem:[%s130_s3 + $0x8] sm:$0x1]  ;;  %vm49_vm0 = vcmp.eq.s32.totalorder %v44_v15, 0 }
   0x5   :  { %v36_v14 = vld [vmem:[%s131_s4] sm:$0xff]  ;;  %v37_v18 = vld [vmem:[%s131_s4 + $0x8] sm:$0x1] }
   0x6   :  { %v30_v12 = vadd.f32 %v28_v4, %v26_v8  ;;  %v31_v16 = vadd.f32 %v29_v9, %v27_v11 }
   0x8   :  { %v34_v17 = vadd.f32 %v32_v10, %v30_v12  ;;  %v35_v19 = vadd.f32 %v33_v13, %v31_v16 }
   0xa   :  { %v38_v20 = vadd.f32 %v36_v14, %v34_v17  ;;  %v39_v21 = vadd.f32 %v37_v18, %v35_v19 }
   0xc   :  { %v40_v22 = vmul.f32 0.16666667, %v38_v20  ;;  %v41_v23 = vmul.f32 0.16666667, %v39_v21 }
   0xe   :  { %v51_v24 = vsel %vm49_vm0, 0.0, %v40_v22  ;;  %56 = vst.msk [vmem:[%s132_s5 + $0x8] sm:$0x1] %vm55_vm2, %v41_v23 }
   0xf   :  { %54 = vst.msk [vmem:[%s132_s5] sm:$0xff] %vm53_vm1, %v51_v24 }

// kernel: forward.9
= control target key start
LH: loop header
LB: loop body
LE: loop exit
PB: predicated region body
PF: predicated region fallthrough
CT: control target
= control target key end

     0   :  { %vm38_vm0 = vcmask 1043456   ;;  %vm39_vm1 = vcmask 1044480   ;;  %v269_v0 = vmov 0.0   ;;  %v270_v2 = vmov 65535   ;;  %s344_s1 = inlined_call_operand.vmem [shape: bf16[9,64], index: 1, kind: input, shape index: {}]   ;;  %s345_s0 = inlined_call_operand.vmem [shape: bf16[9,9], index: 0, kind: input, shape index: {}]   ;;  %s346_s2 = inlined_call_operand.vmem [shape: bf16[64,64], index: 2, kind: input, shape index: {}]   ;;  %s347_s3 = inlined_call_operand.vmem [shape: f32[1,64], index: 3, kind: input, shape index: {}]   ;;  %s348_s4 = inlined_call_operand.vmem [shape: bf16[9,64], index: 4, kind: output, shape index: {0}]   ;;  %s349_s5 = inlined_call_operand.vmem [shape: f32[9,64], index: 5, kind: output, shape index: {1}]  }
   0x1   :  { %238 = vmatprep.subr.bf16.mxu0 %v269_v0  ;;  %v259_v1 = vld [vmem:[%s344_s1] sm:$0x1f]   ;;  %244 = vmatprep.subr.bf16.mxu1 %v269_v0  ;;  %v40_v3 = vsel %vm38_vm0, 4294967295, %v270_v2  ;;  %vm271_vm2 = vmmov 0   ;;  %vm34_vm3 = vcmask 72704   ;;  %v262_v8 = vld [vmem:[%s346_s2 + $0x8] sm:$0xff]  }
   0x2   :  { %v41_v4 = vsel %vm39_vm1, %v40_v3, 0  ;;  %240 = vmatprep.mubr.msk.bf16.mxu0 %vm271_vm2, %v269_v0  ;;  %252 = vmatprep.mubr.msk.bf16.mxu1 %vm271_vm2, %v269_v0  ;;  %v261_v6 = vld [vmem:[%s346_s2] sm:$0xff]   ;;  %v263_v9 = vld [vmem:[%s346_s2 + $0x10] sm:$0xff]   ;;  %v264_v10 = vld [vmem:[%s346_s2 + $0x18] sm:$0xff]   ;;  %vm126_vm4 = vcmask 523264   ;;  %vm182_vm6 = vcmask 516096  }
   0x3   :  { %v43_v5 = vand.u32 %v259_v1, %v41_v4  ;;  %v260_v7 = vld [vmem:[%s345_s0] sm:$0x1f]   ;;  %245 = vmatpush3.bf16.msra.mxu1 %v261_v6  ;;  %vm201_vm7 = vsmask.f32 256  ;;  %vm198_vm9 = vcmask 519168  }
   0x4   :  { %246 = vmatprep.subr.bf16.mxu1 %v269_v0  ;;  %v221_v16 = vld [vmem:[%s347_s3] ss:$0 sm:$0xff]  ;;  %vm202_vm10 = vmand %vm182_vm6, %vm201_vm7  ;;  %v203_v29 = vld [vmem:[%s348_s4 + $0x4] sm:$0x1] }
   0x5   :  { %239 = vmatpush3.bf16.msra.mxu0 %v43_v5 }
   0x7   :  { %247 = vmatpush3.bf16.msra.mxu1 %v262_v8 }
   0x8   :  { %241 = vmatmul.mubr.msk.bf16.vlgmr.msra.gmra.mrb[0].mxu0 %vm34_vm3, %v260_v7  ;;  %248 = vmatprep.subr.bf16.mxu1 %v269_v0 }
   0xb   :  { %249 = vmatpush3.bf16.msra.mxu1 %v263_v9 }
   0xc   :  { %250 = vmatprep.subr.bf16.mxu1 %v269_v0 }
   0xf   :  { %251 = vmatpush3.bf16.msra.mxu1 %v264_v10 }
  0xdb   :  { %v79_v11 = vpop.f32.mrb[0].mxu0 }
  0xdc   :  { %v242_v12 = vpop.f32.mrb[1].mxu0 }
  0xdd   :  { %v82_v13 = vpop.f32.mrb[2].mxu0 }
  0xde   :  { %v86_v14 = vpack.c.bf16 %v82_v13, %v79_v11  ;;  %v243_v15 = vpop.f32.mrb[3].mxu0 }
  0xe0   :  { %253 = vmatmul.mubr.msk.bf16.vlgmr.msra.gmra.mrb[0].mxu1 %vm126_vm4, %v86_v14 }
 0x1b3   :  { %v164_v17 = vpop.f32.mrb[0].mxu1 }
 0x1b4   :  { %v165_v18 = vadd.f32 %v221_v16, %v164_v17  ;;  %v254_v19 = vpop.f32.mrb[1].mxu1 }
 0x1b5   :  { %v167_v20 = vpop.f32.mrb[2].mxu1 }
 0x1b6   :  { %vm171_vm5 = vcmp.ge.f32.partialorder %v165_v18, 0.0  ;;  %v173_v21 = vmul.f32 0.01, %v165_v18  ;;  %v168_v22 = vadd.f32 %v221_v16, %v167_v20  ;;  %v255_v23 = vpop.f32.mrb[3].mxu1 }
 0x1b8   :  { %vm172_vm8 = vcmp.ge.f32.partialorder %v168_v22, 0.0  ;;  %v174_v24 = vmul.f32 0.01, %v168_v22  ;;  %v175_v25 = vsel %vm171_vm5, %v165_v18, %v173_v21 }
 0x1b9   :  { %v177_v26 = vmul.f32 %v175_v25, %v175_v25  ;;  %v229_v27 = vpack.c.bf16 %v175_v25, %v175_v25 }
 0x1ba   :  { %v176_v28 = vsel %vm172_vm8, %v168_v22, %v174_v24 }
 0x1bb   :  { %v179_v30 = vsel %vm126_vm4, %v177_v26, 0.0  ;;  %199 = vst.msk [vmem:[%s348_s4] sm:$0xf] %vm198_vm9, %v229_v27  ;;  %v178_v31 = vmul.f32 %v176_v28, %v176_v28  ;;  %v230_v32 = vpack.c.bf16 %v176_v28, %v176_v28 }
 0x1bc   :  { %180 = vadd.xlane.f32.xlu0 %v179_v30 }
 0x1bd   :  { %v204_v33 = vsel %vm202_vm10, %v230_v32, %v203_v29  ;;  %v183_v34 = vsel %vm182_vm6, %v178_v31, 0.0 }
 0x1be   :  { %205 = vst [vmem:[%s348_s4 + $0x4] sm:$0x1] %v204_v33 }
 0x1c0   :  { %184 = vadd.xlane.f32.xlu0 %v183_v34 }
 0x249   :  { %v181_v35 = vpop.xlane.xlu0 %180 }
 0x24a   :  { %v186_v36 = vmax.f32 %v181_v35, 1e-24 }
 0x24c   :  { %265 = vrsqrt.f32 %v186_v36 }
 0x24d   :  { %v185_v37 = vpop.xlane.xlu0 %184 }
 0x24e   :  { %v187_v38 = vmax.f32 %v185_v37, 1e-24 }
 0x250   :  { %267 = vrsqrt.f32 %v187_v38 }
 0x256   :  { %v266_v39 = vpop.eup %265 }
 0x257   :  { %v206_v40 = vmul.f32 %v266_v39, %v175_v25 }
 0x259   :  { %208 = vst.msk [vmem:[%s349_s5] sm:$0xff] %vm126_vm4, %v206_v40 }
 0x25a   :  { %v268_v41 = vpop.eup %267 }
 0x25b   :  { %v207_v42 = vmul.f32 %v268_v41, %v176_v28 }
 0x25d   :  { %209 = vst.msk [vmem:[%s349_s5 + $0x8] sm:$0x1] %vm182_vm6, %v207_v42 }

// kernel: forward.10
= control target key start
LH: loop header
LB: loop body
LE: loop exit
PB: predicated region body
PF: predicated region fallthrough
CT: control target
= control target key end

     0   :  { %vm39_vm0 = vcmask 1043456   ;;  %v309_v0 = vmov 0.0   ;;  %vm40_vm1 = vcmask 1044480   ;;  %v310_v2 = vmov 65535   ;;  %s390_s0 = inlined_call_operand.vmem [shape: bf16[9,9], index: 0, kind: input, shape index: {}]   ;;  %s391_s1 = inlined_call_operand.vmem [shape: bf16[9,64], index: 1, kind: input, shape index: {}]   ;;  %s392_s2 = inlined_call_operand.vmem [shape: bf16[64,64], index: 2, kind: input, shape index: {}]   ;;  %s393_s3 = inlined_call_operand.vmem [shape: f32[1,64], index: 3, kind: input, shape index: {}]   ;;  %s394_s4 = inlined_call_operand.hbm [shape: bf16[9,64], index: 4, kind: output, shape index: {0}]   ;;  %s395_s5 = inlined_call_operand.vmem [shape: f32[9,64], index: 5, kind: output, shape index: {1}]  }
   0x1   :  { %251 = vmatprep.subr.bf16.mxu0 %v309_v0  ;;  %v275_v1 = vld [vmem:[%s391_s1] sm:$0x1f]   ;;  %257 = vmatprep.subr.bf16.mxu1 %v309_v0  ;;  %v41_v3 = vsel %vm39_vm0, 4294967295, %v310_v2  ;;  %vm311_vm2 = vmmov 0   ;;  %vm35_vm3 = vcmask 72704   ;;  %v278_v6 = vld [vmem:[%s392_s2 + $0x8] sm:$0xff]  }
   0x2   :  { %253 = vmatprep.mubr.msk.bf16.mxu0 %vm311_vm2, %v309_v0  ;;  %v277_v4 = vld [vmem:[%s392_s2] sm:$0xff]   ;;  %265 = vmatprep.mubr.msk.bf16.mxu1 %vm311_vm2, %v309_v0  ;;  %v42_v5 = vsel %vm40_vm1, %v41_v3, 0 }
   0x3   :  { %v44_v7 = vand.u32 %v275_v1, %v42_v5  ;;  %258 = vmatpush3.bf16.msra.mxu1 %v277_v4  ;;  %v276_v8 = vld [vmem:[%s390_s0] sm:$0x1f]  }
   0x4   :  { %259 = vmatprep.subr.bf16.mxu1 %v309_v0 }
   0x5   :  { %252 = vmatpush3.bf16.msra.mxu0 %v44_v7 }
   0x6   :  { %11 = vsyncpa [#allocation3], 0  ;;  %v279_v9 = vld [vmem:[%s392_s2 + $0x10] sm:$0xff]   ;;  %v280_v10 = vld [vmem:[%s392_s2 + $0x18] sm:$0xff]   ;;  %vm127_vm4 = vcmask 523264   ;;  %vm183_vm6 = vcmask 516096  }
   0x7   :  { %260 = vmatpush3.bf16.msra.mxu1 %v278_v6  ;;  %v234_v16 = vld [vmem:[%s393_s3] ss:$0 sm:$0xff]  ;;  %vm202_vm7 = vsmask.f32 256  ;;  %vm199_vm9 = vcmask 519168   ;;  %s312_s2 = smov [#allocation2]  }
   0x8   :  { %254 = vmatmul.mubr.msk.bf16.vlgmr.msra.gmra.mrb[0].mxu0 %vm35_vm3, %v276_v8  ;;  %261 = vmatprep.subr.bf16.mxu1 %v309_v0  ;;  %vm203_vm10 = vmand %vm183_vm6, %vm202_vm7  ;;  %v204_v29 = vld [vmem:[#allocation2 + $0x4] sm:$0x1]  ;;  %s216_s3 = sshll.u32 %s312_s2, 4  ;;  %s217_s3 = int_to_ptr.vmem [resolvable:$true] %s216_s3 }
   0x9   :  { %s285_s30 = scalar_lea.vmem %s217_s3, 128  ;;  %p290_p1 = scmp.lt.s32.totalorder %s217_s3, %s217_s3 }
   0xa   :  { %p286_p0 = scmp.ne.s32.totalorder %s217_s3, %s285_s30  ;;  %p291_p2 = scmp.lt.s32.totalorder %s285_s30, %s285_s30 }
   0xb   :  { %262 = vmatpush3.bf16.msra.mxu1 %v279_v9 }
   0xc   :  { %263 = vmatprep.subr.bf16.mxu1 %v309_v0  ;;  %p292_p3 = por %p291_p2, %p290_p1 }
   0xe   :  { %p293_p4 = pnand %p292_p3, %p286_p0 }
   0xf   :  { %264 = vmatpush3.bf16.msra.mxu1 %v280_v10 }
  0xdb   :  { %v80_v11 = vpop.f32.mrb[0].mxu0 }
  0xdc   :  { %v255_v12 = vpop.f32.mrb[1].mxu0 }
  0xdd   :  { %v83_v13 = vpop.f32.mrb[2].mxu0 }
  0xde   :  { %v87_v14 = vpack.c.bf16 %v83_v13, %v80_v11  ;;  %v256_v15 = vpop.f32.mrb[3].mxu0 }
  0xe0   :  { %266 = vmatmul.mubr.msk.bf16.vlgmr.msra.gmra.mrb[0].mxu1 %vm127_vm4, %v87_v14 }
 0x1b3   :  { %v165_v17 = vpop.f32.mrb[0].mxu1 }
 0x1b4   :  { %v166_v18 = vadd.f32 %v234_v16, %v165_v17  ;;  %v267_v19 = vpop.f32.mrb[1].mxu1 }
 0x1b5   :  { %v168_v20 = vpop.f32.mrb[2].mxu1 }
 0x1b6   :  { %vm172_vm5 = vcmp.ge.f32.partialorder %v166_v18, 0.0  ;;  %v174_v21 = vmul.f32 0.01, %v166_v18  ;;  %v169_v22 = vadd.f32 %v234_v16, %v168_v20  ;;  %v268_v23 = vpop.f32.mrb[3].mxu1 }
 0x1b8   :  { %vm173_vm8 = vcmp.ge.f32.partialorder %v169_v22, 0.0  ;;  %v175_v24 = vmul.f32 0.01, %v169_v22  ;;  %v176_v25 = vsel %vm172_vm5, %v166_v18, %v174_v21 }
 0x1b9   :  { %v178_v26 = vmul.f32 %v176_v25, %v176_v25  ;;  %v242_v27 = vpack.c.bf16 %v176_v25, %v176_v25 }
 0x1ba   :  { %v177_v28 = vsel %vm173_vm8, %v169_v22, %v175_v24 }
 0x1bb   :  { %v180_v30 = vsel %vm127_vm4, %v178_v26, 0.0  ;;  %200 = vst.msk [vmem:[#allocation2] sm:$0xf] %vm199_vm9, %v242_v27  ;;  %v179_v31 = vmul.f32 %v177_v28, %v177_v28  ;;  %v243_v32 = vpack.c.bf16 %v177_v28, %v177_v28 }
 0x1bc   :  { %181 = vadd.xlane.f32.xlu0 %v180_v30 }
 0x1bd   :  { %v205_v33 = vsel %vm203_vm10, %v243_v32, %v204_v29  ;;  %v184_v34 = vsel %vm183_vm6, %v179_v31, 0.0 }
 0x1be   :  { %206 = vst [vmem:[#allocation2 + $0x4] sm:$0x1] %v205_v33 }
 0x1c0   :  { %185 = vadd.xlane.f32.xlu0 %v184_v34 }
 0x1c1   :  { %296 = shalt.err (!%p293_p4)
}
 0x1c2   :  { %s297_s8 = scalar_lea.hbm %s394_s4, 128 }
 0x1c3   :  { %p298_p5 = scmp.ne.s32.totalorder %s394_s4, %s297_s8  ;;  %p301_p6 = scmp.lt.u32.totalorder %s297_s8, %s394_s4 }
 0x1c5   :  { %p303_p7 = pnand %p301_p6, %p298_p5 }
 0x1c7   :  { %306 = shalt.err (!%p303_p7)
}
 0x1c8   :  { %s313_s13 = smov 64   ;;  %s314_s14 = smov 4  }
 0x1c9   :  { %222 = dma.vmem_to_hbm [thread:$0]  %s217_s3, 128, %s394_s4, [#allocation3], %s313_s13, %s313_s13, %s314_s14  }
 0x249   :  { %v182_v35 = vpop.xlane.xlu0 %181 }
 0x24a   :  { %v187_v36 = vmax.f32 %v182_v35, 1e-24 }
 0x24c   :  { %281 = vrsqrt.f32 %v187_v36 }
 0x24d   :  { %v186_v37 = vpop.xlane.xlu0 %185 }
 0x24e   :  { %v188_v38 = vmax.f32 %v186_v37, 1e-24 }
 0x250   :  { %283 = vrsqrt.f32 %v188_v38 }
 0x256   :  { %v282_v39 = vpop.eup %281 }
 0x257   :  { %v207_v40 = vmul.f32 %v282_v39, %v176_v25 }
 0x259   :  { %209 = vst.msk [vmem:[%s395_s5] sm:$0xff] %vm127_vm4, %v207_v40 }
 0x25a   :  { %v284_v41 = vpop.eup %283 }
 0x25b   :  { %v208_v42 = vmul.f32 %v284_v41, %v177_v28 }
 0x25d   :  { %210 = vst.msk [vmem:[%s395_s5 + $0x8] sm:$0x1] %vm183_vm6, %v208_v42 }
 0x25e   :  { %307 = dma.done.wait [#allocation3], 128  }
 0x25f   :  { %308 = vsyncadd [#allocation3], 4294967168 }
 0x260   :  { %230 = vsyncpa [#allocation3], 1 }

// kernel: forward.16
= control target key start
LH: loop header
LB: loop body
LE: loop exit
PB: predicated region body
PF: predicated region fallthrough
CT: control target
= control target key end

     0   :  { %v27_v0 = vlaneseq  ;;  %vm37_vm1 = vcmask 523264   ;;  %vm39_vm2 = vcmask 516096   ;;  %s89_s0 = inlined_call_operand.vmem [shape: f32[9,64], index: 0, kind: input, shape index: {}]   ;;  %s90_s1 = inlined_call_operand.vmem [shape: f32[9,64], index: 1, kind: input, shape index: {}]   ;;  %s91_s2 = inlined_call_operand.vmem [shape: f32[9,64], index: 2, kind: input, shape index: {}]   ;;  %s92_s3 = inlined_call_operand.vmem [shape: f32[9,64], index: 3, kind: output, shape index: {}]  }
   0x1   :  { %v14_v1 = vld [vmem:[%s89_s0] sm:$0xff]  ;;  %v15_v6 = vld [vmem:[%s89_s0 + $0x8] sm:$0x1] }
   0x2   :  { %v16_v2 = vld [vmem:[%s90_s1] sm:$0xff]  ;;  %v28_v5 = vshrl.u32 %v27_v0, 7  ;;  %v17_v7 = vld [vmem:[%s90_s1 + $0x8] sm:$0x1] }
   0x3   :  { %v20_v3 = vld [vmem:[%s91_s2] sm:$0xff]  ;;  %v18_v4 = vadd.f32 %v16_v2, %v14_v1  ;;  %v19_v8 = vadd.f32 %v17_v7, %v15_v6  ;;  %v21_v9 = vld [vmem:[%s91_s2 + $0x8] sm:$0x1] }
   0x4   :  { %vm33_vm0 = vcmp.eq.s32.totalorder %v28_v5, 0 }
   0x5   :  { %v22_v10 = vadd.f32 %v20_v3, %v18_v4  ;;  %v23_v11 = vadd.f32 %v21_v9, %v19_v8 }
   0x7   :  { %v24_v12 = vmul.f32 0.33333334, %v22_v10  ;;  %v25_v13 = vmul.f32 0.33333334, %v23_v11 }
   0x9   :  { %v35_v14 = vsel %vm33_vm0, 0.0, %v24_v12  ;;  %40 = vst.msk [vmem:[%s92_s3 + $0x8] sm:$0x1] %vm39_vm2, %v25_v13 }
   0xa   :  { %38 = vst.msk [vmem:[%s92_s3] sm:$0xff] %vm37_vm1, %v35_v14 }

// kernel: forward.17
= control target key start
LH: loop header
LB: loop body
LE: loop exit
PB: predicated region body
PF: predicated region fallthrough
CT: control target
= control target key end

     0   :  { %v2812_v1 = vmov 0.0   ;;  %vm2813_vm0 = vmmov 0   ;;  %s2814_s24 = smov 64   ;;  %vm217_vm1 = vcmask 1041409   ;;  %vm220_vm2 = vcmask 1042434   ;;  %s2815_s21 = smov 126   ;;  %s4416_s0 = inlined_call_operand.vmem [shape: f32[2,4,64], index: 0, kind: input, shape index: {}]   ;;  %s4417_s6 = inlined_call_operand.vmem [shape: bf16[2,64,64], index: 6, kind: input, shape index: {}]   ;;  %s4418_s3 = inlined_call_operand.vmem [shape: bf16[2,4,5,64], index: 3, kind: input, shape index: {}]   ;;  %s4419_s4 = inlined_call_operand.vmem [shape: bf16[128,64], index: 4, kind: input, shape index: {}]   ;;  %s4420_s1 = inlined_call_operand.vmem [shape: bf16[2,4,5,64], index: 1, kind: input, shape index: {}]   ;;  %s4421_s7 = inlined_call_operand.vmem [shape: f32[1,64], index: 7, kind: input, shape index: {}]   ;;  %s4422_s9 = inlined_call_operand.vmem [shape: f32[1,64], index: 9, kind: input, shape index: {}]   ;;  %s4423_s5 = inlined_call_operand.vmem [shape: f32[1,64], index: 5, kind: input, shape index: {}]   ;;  %s4424_s8 = inlined_call_operand.vmem [shape: f32[1,64], index: 8, kind: input, shape index: {}]   ;;  %s4425_s2 = inlined_call_operand.vmem [shape: f32[2,4,5], index: 2, kind: input, shape index: {}]   ;;  %s4426_s10 = inlined_call_operand.<no memory space> [shape: f32[1,1], index: 10, kind: input, shape index: {}]   ;;  %s4427_s11 = inlined_call_operand.vmem [shape: f32[1,64], index: 11, kind: input, shape index: {}]   ;;  %s4428_s13 = inlined_call_operand.<no memory space> [shape: f32[1,1], index: 13, kind: input, shape index: {}]   ;;  %s4429_s12 = inlined_call_operand.vmem [shape: f32[1,64], index: 12, kind: input, shape index: {}]   ;;  %s4430_s14 = inlined_call_operand.vmem [shape: bf16[128,64], index: 14, kind: input, shape index: {}]   ;;  %s4431_s15 = inlined_call_operand.vmem [shape: f32[1,64], index: 15, kind: input, shape index: {}]   ;;  %s4432_s16 = inlined_call_operand.vmem [shape: f32[4,1], index: 16, kind: output, shape index: {}]  }
   0x1   :  { %4439 = sst [smem:[#allocation4_spill]] %s4416_s0  ;;  %2543 = vmatprep.subr.bf16.mxu1 %v2812_v1  ;;  %2551 = vmatprep.mubr.msk.bf16.mxu1 %vm2813_vm0, %v2812_v1  ;;  %v2915_v2 = vld [vmem:[%s4417_s6] sm:$0xff]   ;;  %v2924_v3 = vld [vmem:[%s4417_s6 + $0x8] sm:$0xff]   ;;  %v2964_v13 = vld [vmem:[%s4417_s6 + $0x10] sm:$0xff]   ;;  %vm223_vm3 = vcmask 1043459   ;;  %vm106_vm4 = vcmask 523264  }
   0x2   :  { %s4440_s23 = sld [smem:[#allocation4_spill]]  ;;  %2523 = vmatprep.subr.bf16.mxu0 %v2812_v1  ;;  %2539 = vmatprep.mubr.msk.bf16.mxu0 %vm2813_vm0, %v2812_v1  ;;  %v2930_v4 = vld [vmem:[%s4418_s3] sm:$0x7]  ;;  %v2935_v5 = vld [vmem:[%s4418_s3 + $0x4] sm:$0x7]  ;;  %v2979_v18 = vld [vmem:[%s4419_s4 + $0x8] sm:$0xff]  }
   0x3   :  { %2544 = vmatpush3.bf16.msra.mxu1 %v2915_v2  ;;  %v2940_v6 = vld [vmem:[%s4418_s3 + $0x8] sm:$0x7]  ;;  %v2945_v7 = vld [vmem:[%s4418_s3 + $0xc] sm:$0x7]  ;;  %v2380_v8 = vcombine.low %v2930_v4, %v2930_v4  ;;  %v2381_v9 = vcombine.low %v2935_v5, %v2935_v5  ;;  %v2958_v12 = vld [vmem:[%s4419_s4] sm:$0xff]   ;;  %vm273_vm5 = vcmask 1044484  }
   0x4   :  { %2545 = vmatprep.subr.bf16.mxu1 %v2812_v1  ;;  %v2382_v10 = vcombine.low %v2940_v6, %v2940_v6  ;;  %v2383_v11 = vcombine.low %v2945_v7, %v2945_v7  ;;  %2524 = vmatpush3.bf16.msra.mxu0 %v2958_v12  ;;  %v2989_v22 = vld [vmem:[%s4417_s6 + $0x18] sm:$0xff]   ;;  %v2998_v24 = vld [vmem:[%s4419_s4 + $0x10] sm:$0xff]   ;;  %v3029_v37 = vld [vmem:[%s4419_s4 + $0x20] sm:$0xff]   ;;  %vm228_vm6 = vcmask 519168   ;;  %vm276_vm7 = vcmask 520193   ;;  %s2816_s26 = smov 127  }
   0x5   :  { %v2967_v14 = vunpack.c.l.b16 %v2380_v8  ;;  %v2969_v15 = vunpack.c.l.b16 %v2381_v9  ;;  %2525 = vmatprep.subr.bf16.mxu0 %v2812_v1  ;;  %v3007_v28 = vld [vmem:[%s4419_s4 + $0x18] sm:$0xff]   ;;  %v3045_v42 = vld [vmem:[%s4419_s4 + $0x28] sm:$0xff]   ;;  %v3055_v44 = vld [vmem:[%s4419_s4 + $0x30] sm:$0xff]   ;;  %vm301_vm8 = vcmask 1045509   ;;  %vm4438_vm9 = vcmask 521218   ;;  %s2817_s27 = smov 125  }
   0x6   :  { %v2971_v16 = vunpack.c.l.b16 %v2382_v10  ;;  %v2973_v17 = vunpack.c.l.b16 %v2383_v11  ;;  %v3064_v46 = vld [vmem:[%s4419_s4 + $0x38] sm:$0xff]   ;;  %vm4437_vm10 = vcmask 1046534   ;;  %vm4436_vm11 = vcmask 522243   ;;  %s2818_s28 = smov 124  }
   0x7   :  { %2546 = vmatpush3.bf16.msra.mxu1 %v2924_v3  ;;  %v573_v19 = vrot.slane %v2969_v15, 7  ;;  %v870_v29 = vrot.slane %v2967_v14, 4  ;;  %v871_v30 = vrot.slane %v2969_v15, 3  ;;  %v681_v32 = vrot.slane %v2967_v14, 1 }
   0x8   :  { %v2368_v0 = vld [vmem:[%s4440_s23 + $0x4] sm:$0xf]  ;;  %2547 = vmatprep.subr.bf16.mxu1 %v2812_v1  ;;  %v575_v20 = vrot.slane %v2971_v16, 6  ;;  %v577_v21 = vrot.slane %v2973_v17, 5  ;;  %2526 = vmatpush3.bf16.msra.mxu0 %v2979_v18  ;;  %v873_v31 = vrot.slane %v2971_v16, 2  ;;  %v875_v33 = vrot.slane %v2973_v17, 1 }
   0x9   :  { %103 = vrot.lane.b32.xlu0 %v2368_v0, %s2814_s24  ;;  %v574_v23 = vsel %vm217_vm1, %v573_v19, %v2967_v14  ;;  %2527 = vmatprep.subr.bf16.mxu0 %v2812_v1  ;;  %v872_v34 = vsel %vm217_vm1, %v871_v30, %v870_v29  ;;  %v683_v36 = vrot.slane %v2971_v16, 7  ;;  %v682_v39 = vsel %vm217_vm1, %v2969_v15, %v681_v32  ;;  %v3111_v61 = vld [vmem:[%s4440_s23] sm:$0xf] }
   0xa   :  { %v576_v25 = vsel %vm220_vm2, %v575_v20, %v574_v23  ;;  %v874_v35 = vsel %vm220_vm2, %v873_v31, %v872_v34  ;;  %v685_v40 = vrot.slane %v2973_v17, 6  ;;  %v744_v47 = vrot.slane %v2967_v14, 2  ;;  %v204_v23 = vld [vmem:[%s4420_s1 + $0x4] sm:$0x7]  ;;  %v2389_v34 = vld [vmem:[%s4422_s9] ss:$0 sm:$0xff] }
   0xb   :  { %2548 = vmatpush3.bf16.msra.mxu1 %v2964_v13  ;;  %v578_v26 = vsel %vm223_vm3, %v577_v21, %v576_v25  ;;  %v3032_v38 = vsel %vm223_vm3, %v875_v33, %v874_v35  ;;  %v684_v41 = vsel %vm220_vm2, %v683_v36, %v682_v39  ;;  %v745_v48 = vrot.slane %v2969_v15, 1  ;;  %v205_v25 = vld [vmem:[%s4420_s1 + $0x8] sm:$0x7] }
   0xc   :  { %2549 = vmatprep.subr.bf16.mxu1 %v2812_v1  ;;  %v579_v27 = vpack.c.b16 %v578_v26, %v578_v26  ;;  %2528 = vmatpush3.bf16.msra.mxu0 %v2998_v24  ;;  %v686_v43 = vsel %vm223_vm3, %v685_v40, %v684_v41  ;;  %v748_v50 = vrot.slane %v2973_v17, 7  ;;  %v807_v54 = vrot.slane %v2967_v14, 3 }
   0xd   :  { %2529 = vmatprep.subr.bf16.mxu0 %v2812_v1  ;;  %v687_v45 = vpack.c.b16 %v686_v43, %v686_v43  ;;  %v746_v49 = vsel %vm217_vm1, %v745_v48, %v744_v47  ;;  %v808_v55 = vrot.slane %v2969_v15, 2  ;;  %v810_v56 = vrot.slane %v2971_v16, 1  ;;  %v2369_v48 = vld [vmem:[%s4423_s5] ss:$0 sm:$0xff] }
   0xe   :  { %v747_v51 = vsel %vm220_vm2, %v2971_v16, %v746_v49  ;;  %v877_v8 = vpack.c.b16 %v3032_v38, %v3032_v38  ;;  %v3161_v26 = vunpack.c.l.bf16 %v204_v23  ;;  %v3171_v30 = vunpack.c.l.bf16 %v205_v25 }
   0xf   :  { %2550 = vmatpush3.bf16.msra.mxu1 %v2989_v22  ;;  %v749_v52 = vsel %vm223_vm3, %v748_v50, %v747_v51  ;;  %v809_v57 = vsel %vm217_vm1, %v808_v55, %v807_v54  ;;  %v3174_v31 = vunpack.c.l.bf16 %v2935_v5  ;;  %v3184_v36 = vunpack.c.l.bf16 %v2930_v4 }
  0x10   :  { %2555 = vmatprep.subr.bf16.mxu1 %v2812_v1  ;;  %2530 = vmatpush3.bf16.msra.mxu0 %v3007_v28  ;;  %v750_v53 = vpack.c.b16 %v749_v52, %v749_v52  ;;  %v811_v58 = vsel %vm220_vm2, %v810_v56, %v809_v57  ;;  %v216_v32 = vrot.slane %v3161_v26, 7  ;;  %v3189_v5 = vunpack.c.l.bf16 %v2940_v6 }
  0x11   :  { %2531 = vmatprep.subr.bf16.mxu0 %v2812_v1  ;;  %v812_v59 = vsel %vm223_vm3, %v2973_v17, %v811_v58  ;;  %v664_v41 = vmul.f32 %v2389_v34, %v3174_v31  ;;  %v3201_v4 = vunpack.c.l.bf16 %v2945_v7  ;;  %v3215_v7 = vmul.f32 %v2389_v34, %v3184_v36 }
  0x12   :  { %2552 = vmatmul.mubr.msk.bf16.vlgmr.msra.gmra.mrb[0].mxu1 %vm106_vm4, %v579_v27  ;;  %v813_v60 = vpack.c.b16 %v812_v59, %v812_v59  ;;  %v2378_v27 = vld [vmem:[%s4421_s7] ss:$0 sm:$0xff]  ;;  %v665_v50 = vmul.f32 %v2389_v34, %v3189_v5  ;;  %v287_v57 = vrot.slane %v3161_v26, 1  ;;  %vm4435_vm12 = vcmask 1047559  }
  0x13   :  { %2556 = vmatpush3.bf16.msra.mxu1 %v2915_v2  ;;  %2563 = vmatprep.mubr.msk.bf16.mxu1 %vm2813_vm0, %v2812_v1  ;;  %v240_v33 = vmul.f32 %v2378_v27, %v3161_v26  ;;  %v241_v40 = vmul.f32 %v2378_v27, %v3171_v30  ;;  %v3218_v51 = vrot.slane %v664_v41, 7  ;;  %vm4434_vm13 = vcmask 523268  }
  0x14   :  { %2557 = vmatprep.subr.bf16.mxu1 %v2812_v1  ;;  %2532 = vmatpush3.bf16.msra.mxu0 %v3029_v37 }
  0x15   :  { %2533 = vmatprep.subr.bf16.mxu0 %v2812_v1  ;;  %v3198_v43 = vrot.slane %v240_v33, 7  ;;  %v3212_v49 = vrot.slane %v241_v40, 6 }
  0x17   :  { %2558 = vmatpush3.bf16.msra.mxu1 %v2924_v3 }
  0x18   :  { %2559 = vmatprep.subr.bf16.mxu1 %v2812_v1  ;;  %2534 = vmatpush3.bf16.msra.mxu0 %v3045_v42 }
  0x19   :  { %2535 = vmatprep.subr.bf16.mxu0 %v2812_v1 }
  0x1b   :  { %2560 = vmatpush3.bf16.msra.mxu1 %v2964_v13 }
  0x1c   :  { %2561 = vmatprep.subr.bf16.mxu1 %v2812_v1  ;;  %2536 = vmatpush3.bf16.msra.mxu0 %v3055_v44 }
  0x1d   :  { %2537 = vmatprep.subr.bf16.mxu0 %v2812_v1 }
  0x1f   :  { %2562 = vmatpush3.bf16.msra.mxu1 %v2989_v22 }
  0x20   :  { %2567 = vmatprep.subr.bf16.mxu1 %v2812_v1  ;;  %2538 = vmatpush3.bf16.msra.mxu0 %v3064_v46 }
  0x21   :  { %2591 = vmatprep.subr.bf16.mxu0 %v2812_v1 }
  0x22   :  { %2564 = vmatmul.mubr.msk.bf16.vlgmr.msra.gmra.mrb[4].mxu1 %vm106_vm4, %v687_v45 }
  0x23   :  { %2568 = vmatpush3.bf16.msra.mxu1 %v2915_v2  ;;  %2575 = vmatprep.mubr.msk.bf16.mxu1 %vm2813_vm0, %v2812_v1 }
  0x24   :  { %2569 = vmatprep.subr.bf16.mxu1 %v2812_v1 }
  0x27   :  { %2570 = vmatpush3.bf16.msra.mxu1 %v2924_v3 }
  0x28   :  { %2571 = vmatprep.subr.bf16.mxu1 %v2812_v1 }
  0x2b   :  { %2572 = vmatpush3.bf16.msra.mxu1 %v2964_v13 }
  0x2c   :  { %2573 = vmatprep.subr.bf16.mxu1 %v2812_v1 }
  0x2f   :  { %2574 = vmatpush3.bf16.msra.mxu1 %v2989_v22 }
  0x30   :  { %2579 = vmatprep.subr.bf16.mxu1 %v2812_v1 }
  0x32   :  { %2576 = vmatmul.mubr.msk.bf16.vlgmr.msra.gmra.mrb[8].mxu1 %vm106_vm4, %v750_v53 }
  0x33   :  { %2580 = vmatpush3.bf16.msra.mxu1 %v2915_v2  ;;  %2587 = vmatprep.mubr.msk.bf16.mxu1 %vm2813_vm0, %v2812_v1 }
  0x34   :  { %2581 = vmatprep.subr.bf16.mxu1 %v2812_v1 }
  0x37   :  { %2582 = vmatpush3.bf16.msra.mxu1 %v2924_v3 }
  0x38   :  { %2583 = vmatprep.subr.bf16.mxu1 %v2812_v1 }
  0x3b   :  { %2584 = vmatpush3.bf16.msra.mxu1 %v2964_v13 }
  0x3c   :  { %2585 = vmatprep.subr.bf16.mxu1 %v2812_v1 }
  0x3f   :  { %2586 = vmatpush3.bf16.msra.mxu1 %v2989_v22 }
  0x40   :  { %2603 = vmatprep.subr.bf16.mxu1 %v2812_v1 }
  0x42   :  { %2588 = vmatmul.mubr.msk.bf16.vlgmr.msra.gmra.mrb[12].mxu1 %vm106_vm4, %v813_v60 }
  0x43   :  { %2619 = vmatprep.mubr.msk.bf16.mxu1 %vm2813_vm0, %v2812_v1 }
  0x7b   :  { %v104_v62 = vpop.permute.xlu0 %103 }
  0x7c   :  { %v107_v63 = vsel %vm106_vm4, %v3111_v61, %v104_v62 }
  0x7d   :  { %v108_v0 = vpack.c.bf16 %v107_v63, %v107_v63 }
  0x7f   :  { %2540 = vmatmul.mubr.bf16.vlgmr.msra.gmra.mrb[0].mxu0 %v108_v0 }
  0x80   :  { %2592 = vmatpush3.bf16.msra.mxu0 %v2915_v2  ;;  %2599 = vmatprep.mubr.msk.bf16.mxu0 %vm2813_vm0, %v2812_v1 }
  0x81   :  { %2593 = vmatprep.subr.bf16.mxu0 %v2812_v1 }
  0x84   :  { %2594 = vmatpush3.bf16.msra.mxu0 %v2924_v3 }
  0x85   :  { %2595 = vmatprep.subr.bf16.mxu0 %v2812_v1 }
  0x88   :  { %2596 = vmatpush3.bf16.msra.mxu0 %v2964_v13 }
  0x89   :  { %2597 = vmatprep.subr.bf16.mxu0 %v2812_v1 }
  0x8c   :  { %2598 = vmatpush3.bf16.msra.mxu0 %v2989_v22 }
  0x8d   :  { %2623 = vmatprep.subr.bf16.mxu0 %v2812_v1 }
  0x8f   :  { %2600 = vmatmul.mubr.msk.bf16.vlgmr.msra.gmra.mrb[4].mxu0 %vm106_vm4, %v877_v8  ;;  %v666_v8 = vmul.f32 %v2389_v34, %v3201_v4 }
  0x90   :  { %2624 = vmatpush3.bf16.msra.mxu0 %v2958_v12  ;;  %2639 = vmatprep.mubr.msk.bf16.mxu0 %vm2813_vm0, %v2812_v1 }
  0x91   :  { %2625 = vmatprep.subr.bf16.mxu0 %v2812_v1 }
  0x94   :  { %2626 = vmatpush3.bf16.msra.mxu0 %v2979_v18 }
  0x95   :  { %2627 = vmatprep.subr.bf16.mxu0 %v2812_v1 }
  0x98   :  { %2628 = vmatpush3.bf16.msra.mxu0 %v2998_v24  ;;  %v203_v24 = vld [vmem:[%s4420_s1] sm:$0x7] }
  0x99   :  { %2629 = vmatprep.subr.bf16.mxu0 %v2812_v1  ;;  %v3169_v29 = vunpack.c.l.bf16 %v203_v24 }
  0x9b   :  { %v258_v38 = vrot.slane %v3169_v29, 1  ;;  %v218_v39 = vsel %vm217_vm1, %v216_v32, %v3169_v29  ;;  %v286_v56 = vrot.slane %v3169_v29, 2 }
  0x9c   :  { %2630 = vmatpush3.bf16.msra.mxu0 %v3007_v28  ;;  %v206_v28 = vld [vmem:[%s4420_s1 + $0xc] sm:$0x7] }
  0x9d   :  { %2631 = vmatprep.subr.bf16.mxu0 %v2812_v1  ;;  %v3181_v35 = vunpack.c.l.bf16 %v206_v28  ;;  %v259_v45 = vsel %vm217_vm1, %v3161_v26, %v258_v38  ;;  %v314_v38 = vrot.slane %v3161_v26, 2 }
  0x9f   :  { %v242_v47 = vmul.f32 %v2378_v27, %v3181_v35  ;;  %v262_v55 = vrot.slane %v3181_v35, 6 }
  0xa0   :  { %2632 = vmatpush3.bf16.msra.mxu0 %v3029_v37  ;;  %v219_v37 = vrot.slane %v3171_v30, 6 }
  0xa1   :  { %2633 = vmatprep.subr.bf16.mxu0 %v2812_v1  ;;  %v3232_v62 = vrot.slane %v242_v47, 5  ;;  %v340_v47 = vrot.slane %v3169_v29, 4 }
  0xa2   :  { %v221_v6 = vsel %vm220_vm2, %v219_v37, %v218_v39  ;;  %v313_v37 = vrot.slane %v3169_v29, 3 }
  0xa4   :  { %2634 = vmatpush3.bf16.msra.mxu0 %v3045_v42  ;;  %v3196_v42 = vmul.f32 %v2378_v27, %v3169_v29  ;;  %v290_v27 = vrot.slane %v3181_v35, 7  ;;  %v863_v29 = vsel %vm273_vm5, %v3218_v51, %v3215_v7 }
  0xa5   :  { %2635 = vmatprep.subr.bf16.mxu0 %v2812_v1 }
  0xa6   :  { %v271_v52 = vsel %vm220_vm2, %v3198_v43, %v3196_v42  ;;  %v248_v28 = vsel %vm217_vm1, %v3198_v43, %v3196_v42 }
  0xa7   :  { %v272_v0 = vsel %vm223_vm3, %v3212_v49, %v271_v52  ;;  %v250_v41 = vsel %vm220_vm2, %v3212_v49, %v248_v28  ;;  %v341_v52 = vrot.slane %v3161_v26, 3 }
  0xa8   :  { %2636 = vmatpush3.bf16.msra.mxu0 %v3055_v44  ;;  %v222_v44 = vrot.slane %v3181_v35, 5 }
  0xa9   :  { %2637 = vmatprep.subr.bf16.mxu0 %v2812_v1 }
  0xaa   :  { %v3224_v54 = vsel %vm223_vm3, %v222_v44, %v221_v6  ;;  %v800_v6 = vsel %vm223_vm3, %v3218_v51, %v3215_v7 }
  0xac   :  { %2638 = vmatpush3.bf16.msra.mxu0 %v3064_v46  ;;  %v260_v46 = vrot.slane %v3171_v30, 7 }
  0xad   :  { %2655 = vmatprep.subr.bf16.mxu0 %v2812_v1 }
  0xae   :  { %v261_v60 = vsel %vm220_vm2, %v260_v46, %v259_v45  ;;  %v316_v46 = vrot.slane %v3171_v30, 1 }
  0xe5   :  { %v3146_v2 = vpop.f32.mrb[0].mxu1 }
  0xe6   :  { %v2553_v3 = vpop.f32.mrb[1].mxu1 }
  0xe7   :  { %v644_v9 = vpop.f32.mrb[2].mxu1  ;;  %v672_v3 = vsel %vm217_vm1, %v3218_v51, %v3215_v7 }
  0xe8   :  { %v2554_v10 = vpop.f32.mrb[3].mxu1  ;;  %v3240_v9 = vrot.slane %v665_v50, 6  ;;  %v252_v50 = vsel %vm223_vm3, %v3232_v62, %v250_v41 }
  0xf5   :  { %v3148_v11 = vpop.f32.mrb[4].mxu1 }
  0xf6   :  { %v2565_v12 = vpop.f32.mrb[5].mxu1 }
  0xf7   :  { %v728_v13 = vpop.f32.mrb[6].mxu1 }
  0xf8   :  { %v2566_v14 = vpop.f32.mrb[7].mxu1 }
 0x105   :  { %v3150_v15 = vpop.f32.mrb[8].mxu1 }
 0x106   :  { %v2577_v16 = vpop.f32.mrb[9].mxu1 }
 0x107   :  { %v791_v17 = vpop.f32.mrb[10].mxu1 }
 0x108   :  { %v2578_v18 = vpop.f32.mrb[11].mxu1  ;;  %v3252_v17 = vsel %vm223_vm3, %v262_v55, %v261_v60 }
 0x115   :  { %v851_v19 = vpop.f32.mrb[12].mxu1 }
 0x116   :  { %v2589_v20 = vpop.f32.mrb[13].mxu1 }
 0x117   :  { %v854_v21 = vpop.f32.mrb[14].mxu1 }
 0x118   :  { %v2590_v22 = vpop.f32.mrb[15].mxu1  ;;  %v288_v21 = vsel %vm217_vm1, %v287_v57, %v286_v56  ;;  %v801_v57 = vsel %vm273_vm5, %v3240_v9, %v800_v6 }
 0x119   :  { %v3261_v22 = vrot.slane %v666_v8, 5  ;;  %v289_v32 = vsel %vm220_vm2, %v3171_v30, %v288_v21  ;;  %v343_v8 = vrot.slane %v3171_v30, 2  ;;  %v345_v30 = vrot.slane %v3181_v35, 1 }
 0x11a   :  { %v3282_v44 = vsel %vm223_vm3, %v290_v27, %v289_v32  ;;  %v927_v21 = vsel %vm301_vm8, %v3218_v51, %v3215_v7 }
 0x152   :  { %v197_v53 = vpop.f32.mrb[0].mxu0 }
 0x153   :  { %v3229_v58 = vadd.f32 %v2369_v48, %v197_v53  ;;  %v2541_v59 = vpop.f32.mrb[1].mxu0  ;;  %v315_v48 = vsel %vm217_vm1, %v314_v38, %v313_v37 }
 0x154   :  { %v200_v63 = vpop.f32.mrb[2].mxu0  ;;  %v317_v26 = vsel %vm220_vm2, %v316_v46, %v315_v48  ;;  %v299_v48 = vsel %vm223_vm3, %v3198_v43, %v3196_v42 }
 0x155   :  { %v3243_v10 = vsub.f32 %v3229_v58, %v851_v19  ;;  %v2542_v12 = vpop.f32.mrb[3].mxu0  ;;  %v731_v13 = vsub.f32 %v3229_v58, %v3148_v11  ;;  %v647_v14 = vsub.f32 %v3229_v58, %v3146_v2  ;;  %v226_v16 = vsub.f32 %v3229_v58, %v3224_v54 }
 0x156   :  { %v794_v18 = vsub.f32 %v3229_v58, %v3150_v15  ;;  %v274_v11 = vsel %vm273_vm5, %v3232_v62, %v272_v0  ;;  %v674_v2 = vsel %vm220_vm2, %v3240_v9, %v672_v3  ;;  %v265_v15 = vsub.f32 %v3229_v58, %v3252_v17 }
 0x157   :  { %v732_v20 = vmul.f32 %v731_v13, %v731_v13  ;;  %v648_v19 = vmul.f32 %v647_v14, %v647_v14  ;;  %v227_v25 = vmul.f32 %v226_v16, %v226_v16  ;;  %v277_v33 = vsel %vm276_vm7, %v274_v11, 0.0 }
 0x158   :  { %v676_v34 = vsel %vm223_vm3, %v3261_v22, %v674_v2  ;;  %v266_v40 = vmul.f32 %v265_v15, %v265_v15  ;;  %v795_v55 = vmul.f32 %v794_v18, %v794_v18  ;;  %v293_v56 = vsub.f32 %v3229_v58, %v3282_v44 }
 0x159   :  { %v733_v23 = vsel %vm228_vm6, %v732_v20, 0.0  ;;  %v649_v24 = vsel %vm228_vm6, %v648_v19, 0.0  ;;  %v229_v39 = vsel %vm228_vm6, %v227_v25, 0.0  ;;  %v678_v45 = vsel %vm228_vm6, %v676_v34, 0.0 }
 0x15a   :  { %734 = vadd.xlane.f32.xlu1 %v733_v23  ;;  %650 = vadd.xlane.f32.xlu0 %v649_v24  ;;  %v267_v53 = vsel %vm228_vm6, %v266_v40, 0.0  ;;  %v254_v0 = vsel %vm228_vm6, %v252_v50, 0.0  ;;  %v342_v12 = vsel %vm217_vm1, %v341_v52, %v340_v47  ;;  %v802_v13 = vsel %vm301_vm8, %v3261_v22, %v801_v57  ;;  %v2379_v40 = vld [vmem:[%s4424_s8] ss:$0 sm:$0xff] }
 0x15b   :  { %v796_v14 = vsel %vm228_vm6, %v795_v55, 0.0  ;;  %v294_v16 = vmul.f32 %v293_v56, %v293_v56  ;;  %v864_v20 = vsel %vm301_vm8, %v3240_v9, %v863_v29  ;;  %v3314_v19 = vsel %vm223_vm3, %v3181_v35, %v317_v26 }
 0x15c   :  { %v344_v11 = vsel %vm220_vm2, %v343_v8, %v342_v12  ;;  %v804_v2 = vsel %vm4438_vm9, %v802_v13, 0.0  ;;  %v865_v23 = vsel %vm4437_vm10, %v3261_v22, %v864_v20  ;;  %v858_v24 = vmul.f32 %v3243_v10, %v3243_v10 }
 0x15d   :  { %v295_v25 = vsel %vm228_vm6, %v294_v16, 0.0  ;;  %v320_v35 = vsub.f32 %v3229_v58, %v3314_v19  ;;  %v928_v15 = vsel %vm4437_vm10, %v3240_v9, %v927_v21  ;;  %v3332_v27 = vsel %vm223_vm3, %v345_v30, %v344_v11 }
 0x15e   :  { %230 = vadd.xlane.f32.xlu1 %v229_v39  ;;  %278 = vadd.xlane.f32.xlu0 %v277_v33  ;;  %v867_v28 = vsel %vm4436_vm11, %v865_v23, 0.0  ;;  %v929_v32 = vsel %vm4435_vm12, %v3261_v22, %v928_v15  ;;  %v859_v10 = vsel %vm228_vm6, %v858_v24, 0.0  ;;  %v348_v34 = vsub.f32 %v3229_v58, %v3332_v27 }
 0x15f   :  { %v321_v33 = vmul.f32 %v320_v35, %v320_v35  ;;  %v931_v37 = vsel %vm4434_vm13, %v929_v32, 0.0  ;;  %v354_v55 = vsel %vm301_vm8, %v3198_v43, %v3196_v42 }
 0x160   :  { %v349_v39 = vmul.f32 %v348_v34, %v348_v34  ;;  %v355_v29 = vsel %vm4437_vm10, %v3212_v49, %v354_v55 }
 0x161   :  { %v322_v38 = vsel %vm228_vm6, %v321_v33, 0.0  ;;  %v357_v26 = vsel %vm4435_vm12, %v3232_v62, %v355_v29 }
 0x162   :  { %v915_v59 = vpop.f32.mrb[4].mxu0  ;;  %268 = vadd.xlane.f32.xlu1 %v267_v53  ;;  %679 = vadd.xlane.f32.xlu0 %v678_v45  ;;  %v350_v6 = vsel %vm228_vm6, %v349_v39, 0.0  ;;  %v553_v45 = vmul.f32 %v2379_v40, %v3111_v61  ;;  %v326_v61 = vsel %vm273_vm5, %v3198_v43, %v3196_v42  ;;  %v360_v42 = vsel %vm4434_vm13, %v357_v26, 0.0 }
 0x163   :  { %v921_v60 = vsub.f32 %v3229_v58, %v915_v59  ;;  %v2601_v63 = vpop.f32.mrb[5].mxu0  ;;  %v737_v58 = vsel %vm220_vm2, %v3218_v51, %v3215_v7  ;;  %v300_v7 = vsel %vm273_vm5, %v3212_v49, %v299_v48  ;;  %v327_v53 = vsel %vm301_vm8, %v3212_v49, %v326_v61 }
 0x164   :  { %v918_v3 = vpop.f32.mrb[6].mxu0  ;;  %v738_v47 = vsel %vm223_vm3, %v3240_v9, %v737_v58  ;;  %v554_v50 = vsel %vm228_vm6, %v553_v45, 0.0  ;;  %v302_v9 = vsel %vm301_vm8, %v3232_v62, %v300_v7  ;;  %v329_v57 = vsel %vm4437_vm10, %v3232_v62, %v327_v53 }
 0x165   :  { %v2602_v18 = vpop.f32.mrb[7].mxu0  ;;  %v922_v41 = vmul.f32 %v921_v60, %v921_v60  ;;  %v739_v52 = vsel %vm273_vm5, %v3261_v22, %v738_v47  ;;  %v3372_v22 = vld [vmem:[%s4425_s2] sm:$0xf]  ;;  %v305_v56 = vsel %vm4438_vm9, %v302_v9, 0.0  ;;  %v332_v60 = vsel %vm4436_vm11, %v329_v57, 0.0 }
 0x166   :  { %797 = vadd.xlane.f32.xlu1 %v796_v14  ;;  %255 = vadd.xlane.f32.xlu0 %v254_v0  ;;  %v741_v51 = vsel %vm276_vm7, %v739_v52, 0.0  ;;  %v308_v59 = vrot.slane %v3372_v22, 6  ;;  %v21_v43 = vstv %s4426_s10  ;;  %v281_v49 = vrot.slane %v3372_v22, 7 }
 0x167   :  { %v923_v46 = vsel %vm228_vm6, %v922_v41, 0.0  ;;  %22 = vst [vmem:[#allocation2] sm:$0x1] %v21_v43  ;;  %v335_v63 = vrot.slane %v3372_v22, 5  ;;  %v363_v62 = vrot.slane %v3372_v22, 4  ;;  %v2819_v0 = vmov 0  }
 0x168   :  { %2732 = vset.pattern.permute.xlu1 %v2819_v0  ;;  %2731 = vset.pattern.permute.xlu0 %v2819_v0 }
 0x16a   :  { %296 = vadd.xlane.f32.xlu1 %v295_v25  ;;  %805 = vadd.xlane.f32.xlu0 %v804_v2 }
 0x16e   :  { %860 = vadd.xlane.f32.xlu1 %v859_v10  ;;  %868 = vadd.xlane.f32.xlu0 %v867_v28 }
 0x172   :  { %323 = vadd.xlane.f32.xlu1 %v322_v38  ;;  %932 = vadd.xlane.f32.xlu0 %v931_v37 }
 0x176   :  { %351 = vadd.xlane.f32.xlu1 %v350_v6 }
 0x17a   :  { %924 = vadd.xlane.f32.xlu1 %v923_v46 }
 0x17e   :  { %555 = vadd.xlane.f32.xlu1 %v554_v50 }
 0x182   :  { %742 = vadd.xlane.f32.xlu1 %v741_v51 }
 0x186   :  { %306 = vadd.xlane.f32.xlu1 %v305_v56 }
 0x188   :  { %309 = vrot.lane.b32.xlu0 %v308_v59, %s2815_s21 }
 0x18a   :  { %333 = vadd.xlane.f32.xlu1 %v332_v60 }
 0x18e   :  { %361 = vadd.xlane.f32.xlu1 %v360_v42 }
 0x19f   :  { %282 = vrot.lane.b32.xlu1 %v281_v49, %s2816_s26 }
 0x1a3   :  { %336 = vrot.lane.b32.xlu1 %v335_v63, %s2817_s27 }
 0x1a7   :  { %364 = vrot.lane.b32.xlu1 %v363_v62, %s2818_s28 }
 0x1e7   :  { %v735_v8 = vpop.xlane.xlu1 %734  ;;  %v651_v18 = vpop.xlane.xlu0 %650 }
 0x1e8   :  { %v3401_v25 = vsub.f32 0.0, %v735_v8  ;;  %v3403_v35 = vsub.f32 0.0, %v651_v18 }
 0x1ea   :  { %v934_v34 = vmax.f32 %v3403_v35, %v3401_v25 }
 0x1eb   :  { %v231_v3 = vpop.xlane.xlu1 %230  ;;  %v3397_v23 = vpop.xlane.xlu0 %278 }
 0x1ec   :  { %v232_v30 = vsub.f32 0.0, %v231_v3 }
 0x1ef   :  { %v269_v12 = vpop.xlane.xlu1 %268  ;;  %v3414_v38 = vpop.xlane.xlu0 %679 }
 0x1f0   :  { %v270_v20 = vsub.f32 0.0, %v269_v12 }
 0x1f2   :  { %v368_v2 = vmax.f32 %v232_v30, %v270_v20 }
 0x1f3   :  { %v798_v13 = vpop.xlane.xlu1 %797  ;;  %v3430_v48 = vpop.xlane.xlu0 %255 }
 0x1f4   :  { %v3405_v28 = vsub.f32 0.0, %v798_v13 }
 0x1f6   :  { %v935_v40 = vmax.f32 %v934_v34, %v3405_v28 }
 0x1f7   :  { %v297_v14 = vpop.xlane.xlu1 %296  ;;  %v3452_v55 = vpop.xlane.xlu0 %805 }
 0x1f8   :  { %v298_v21 = vsub.f32 0.0, %v297_v14 }
 0x1fa   :  { %v369_v15 = vmax.f32 %v368_v2, %v298_v21 }
 0x1fb   :  { %v861_v16 = vpop.xlane.xlu1 %860  ;;  %v3480_v13 = vpop.xlane.xlu0 %868 }
 0x1fc   :  { %v3412_v37 = vsub.f32 0.0, %v861_v16 }
 0x1fe   :  { %v936_v6 = vmax.f32 %v935_v40, %v3412_v37 }
 0x1ff   :  { %v324_v11 = vpop.xlane.xlu1 %323 }
 0x200   :  { %v3399_v24 = vsub.f32 0.0, %v324_v11 }
 0x202   :  { %v370_v10 = vmax.f32 %v369_v15, %v3399_v24 }
 0x203   :  { %v352_v32 = vpop.xlane.xlu1 %351 }
 0x204   :  { %v3408_v33 = vsub.f32 0.0, %v352_v32 }
 0x206   :  { %v371_v39 = vmax.f32 %v370_v10, %v3408_v33 }
 0x207   :  { %v925_v41 = vpop.xlane.xlu1 %924 }
 0x208   :  { %vm372_vm14 = vcmp.ge.f32.partialorder %v232_v30, %v371_v39  ;;  %v3422_v45 = vsub.f32 0.0, %v925_v41  ;;  %vm377_vm15 = vcmp.ge.f32.partialorder %v270_v20, %v371_v39 }
 0x209   :  { %v3420_v58 = vsel %vm372_vm14, 1.0, %v2812_v1 }
 0x20a   :  { %vm378_vm13 = vcmp.lt.f32.partialorder %v3420_v58, 0.5  ;;  %v3426_v46 = vmax.f32 %v936_v6, %v3422_v45  ;;  %v400_v29 = vmul.f32 1e+30, %v3420_v58  ;;  %v3509_v6 = vpop.xlane.xlu0 %932 }
 0x20b   :  { %vm379_vm12 = vmand %vm377_vm15, %vm378_vm13  ;;  %v3428_v47 = vpop.xlane.xlu1 %555  ;;  %vm383_vm13 = vcmp.ge.f32.partialorder %v298_v21, %v371_v39 }
 0x20c   :  { %v3433_v50 = vsel %vm379_vm12, 1.0, %v2812_v1  ;;  %vm938_vm14 = vcmp.ge.f32.partialorder %v3403_v35, %v3426_v46  ;;  %vm942_vm12 = vcmp.ge.f32.partialorder %v3401_v25, %v3426_v46  ;;  %v401_v0 = vsub.f32 %v232_v30, %v400_v29 }
 0x20d   :  { %v381_v52 = vadd.f32 %v3433_v50, %v3420_v58  ;;  %v3440_v7 = vsel %vm938_vm14, 1.0, %v2812_v1  ;;  %v402_v53 = vmul.f32 1e+30, %v3433_v50  ;;  %vm389_vm14 = vcmp.ge.f32.partialorder %v3399_v24, %v371_v39 }
 0x20e   :  { %vm943_vm11 = vcmp.lt.f32.partialorder %v3440_v7, 0.5  ;;  %v965_v14 = vmul.f32 1e+30, %v3440_v7 }
 0x20f   :  { %vm384_vm15 = vcmp.lt.f32.partialorder %v381_v52, 0.5  ;;  %v3443_v61 = vpop.xlane.xlu1 %742  ;;  %vm944_vm9 = vmand %vm942_vm12, %vm943_vm11  ;;  %vm948_vm11 = vcmp.ge.f32.partialorder %v3405_v28, %v3426_v46  ;;  %v403_v42 = vsub.f32 %v270_v20, %v402_v53  ;;  %vm395_vm12 = vcmp.ge.f32.partialorder %v3408_v33, %v371_v39 }
 0x210   :  { %vm385_vm10 = vmand %vm383_vm13, %vm384_vm15  ;;  %v3455_v56 = vsel %vm944_vm9, 1.0, %v2812_v1  ;;  %v966_v40 = vsub.f32 %v3403_v35, %v965_v14 }
 0x211   :  { %v3448_v51 = vsel %vm385_vm10, 1.0, %v2812_v1  ;;  %v946_v57 = vadd.f32 %v3455_v56, %v3440_v7  ;;  %v967_v12 = vmul.f32 1e+30, %v3455_v56  ;;  %v410_v18 = vmax.f32 %v401_v0, %v403_v42 }
 0x212   :  { %v387_v9 = vadd.f32 %v3448_v51, %v381_v52  ;;  %v404_v60 = vmul.f32 1e+30, %v3448_v51 }
 0x213   :  { %v3459_v59 = vpop.xlane.xlu1 %306  ;;  %vm949_vm15 = vcmp.lt.f32.partialorder %v946_v57, 0.5  ;;  %v968_v32 = vsub.f32 %v3401_v25, %v967_v12 }
 0x214   :  { %vm390_vm13 = vcmp.lt.f32.partialorder %v387_v9, 0.5  ;;  %vm950_vm9 = vmand %vm948_vm11, %vm949_vm15  ;;  %v3476_v8 = vsub.f32 %v298_v21, %v404_v60 }
 0x215   :  { %vm391_vm10 = vmand %vm389_vm14, %vm390_vm13  ;;  %v3472_v63 = vsel %vm950_vm9, 1.0, %v2812_v1  ;;  %vm954_vm13 = vcmp.ge.f32.partialorder %v3412_v37, %v3426_v46  ;;  %vm960_vm9 = vcmp.ge.f32.partialorder %v3422_v45, %v3426_v46 }
 0x216   :  { %v3467_v26 = vsel %vm391_vm10, 1.0, %v2812_v1  ;;  %v952_v3 = vadd.f32 %v3472_v63, %v946_v57  ;;  %v969_v20 = vmul.f32 1e+30, %v3472_v63  ;;  %v411_v2 = vmax.f32 %v410_v18, %v3476_v8 }
 0x217   :  { %v393_v43 = vadd.f32 %v3467_v26, %v387_v9  ;;  %v406_v49 = vmul.f32 1e+30, %v3467_v26  ;;  %v3474_v62 = vpop.xlane.xlu1 %333  ;;  %v975_v9 = vmax.f32 %v966_v40, %v968_v32 }
 0x218   :  { %vm955_vm11 = vcmp.lt.f32.partialorder %v952_v3, 0.5  ;;  %v3507_v41 = vsub.f32 %v3405_v28, %v969_v20 }
 0x219   :  { %vm396_vm14 = vcmp.lt.f32.partialorder %v393_v43, 0.5  ;;  %v3487_v16 = vsub.f32 %v3399_v24, %v406_v49  ;;  %vm956_vm15 = vmand %vm954_vm13, %vm955_vm11  ;;  %v310_v43 = vpop.permute.xlu0 %309 }
 0x21a   :  { %vm397_vm10 = vmand %vm395_vm12, %vm396_vm14  ;;  %v3496_v15 = vsel %vm956_vm15, 1.0, %v2812_v1  ;;  %v976_v57 = vmax.f32 %v975_v9, %v3507_v41  ;;  %v312_v14 = vadd.f32 %v310_v43, %v3459_v59  ;;  %v1017_v59 = vrot.slane %v3452_v55, 2 }
 0x21b   :  { %v3491_v30 = vsel %vm397_vm10, 1.0, %v2812_v1  ;;  %v362_v21 = vpop.xlane.xlu1 %361  ;;  %v958_v24 = vadd.f32 %v3496_v15, %v952_v3  ;;  %v971_v10 = vmul.f32 1e+30, %v3496_v15  ;;  %v412_v39 = vmax.f32 %v411_v2, %v3487_v16 }
 0x21c   :  { %v408_v11 = vmul.f32 1e+30, %v3491_v30  ;;  %v1027_v55 = vrot.slane %v3509_v6, 4 }
 0x21d   :  { %vm961_vm12 = vcmp.lt.f32.partialorder %v958_v24, 0.5  ;;  %v445_v24 = vrot.slane %v312_v14, 2 }
 0x21e   :  { %v3502_v34 = vsub.f32 %v3408_v33, %v408_v11  ;;  %vm962_vm14 = vmand %vm960_vm9, %vm961_vm12  ;;  %v3517_v33 = vsub.f32 %v3412_v37, %v971_v10 }
 0x21f   :  { %v283_v25 = vpop.permute.xlu1 %282  ;;  %v3520_v35 = vsel %vm962_vm14, 1.0, %v2812_v1  ;;  %v447_v6 = vmul.f32 %v445_v24, %v3448_v51 }
 0x220   :  { %v3514_v52 = vmax.f32 %v412_v39, %v3502_v34  ;;  %v285_v28 = vadd.f32 %v283_v25, %v3397_v23  ;;  %v973_v53 = vmul.f32 1e+30, %v3520_v35  ;;  %v977_v37 = vmax.f32 %v976_v57, %v3517_v33  ;;  %v2394_v23 = vld [vmem:[#allocation2] ss:$0 sm:$0xff] }
 0x221   :  { %v1008_v18 = vadd.f32 %v2394_v23, %v3428_v47  ;;  %v1012_v47 = vrot.slane %v3443_v61, 1 }
 0x222   :  { %vm414_vm13 = vcmp.ge.f32.partialorder %v401_v0, %v3514_v52  ;;  %v3530_v60 = vsub.f32 %v3422_v45, %v973_v53  ;;  %vm418_vm10 = vcmp.ge.f32.partialorder %v403_v42, %v3514_v52  ;;  %v440_v49 = vrot.slane %v285_v28, 1 }
 0x223   :  { %v3527_v46 = vsel %vm414_vm13, 1.0, %v2812_v1  ;;  %v337_v29 = vpop.permute.xlu1 %336  ;;  %v257_v45 = vadd.f32 %v3430_v48, %v3372_v22  ;;  %v1009_v42 = vmul.f32 %v3440_v7, %v3414_v38  ;;  %vm423_vm12 = vcmp.ge.f32.partialorder %v3476_v8, %v3514_v52 }
 0x224   :  { %vm419_vm11 = vcmp.lt.f32.partialorder %v3527_v46, 0.5  ;;  %v3536_v3 = vmax.f32 %v977_v37, %v3530_v60  ;;  %v442_v22 = vmul.f32 %v440_v49, %v3433_v50  ;;  %v339_v48 = vadd.f32 %v337_v29, %v3474_v62 }
 0x225   :  { %vm420_vm15 = vmand %vm418_vm10, %vm419_vm11  ;;  %v1022_v8 = vrot.slane %v3480_v13, 3  ;;  %v437_v10 = vmul.f32 %v3420_v58, %v257_v45  ;;  %v1014_v9 = vmul.f32 %v1012_v47, %v3455_v56  ;;  %v459_v57 = vmul.f32 %v3527_v46, %v257_v45 }
 0x226   :  { %v3539_v0 = vsel %vm420_vm15, 1.0, %v2812_v1  ;;  %vm979_vm9 = vcmp.ge.f32.partialorder %v966_v40, %v3536_v3  ;;  %vm983_vm13 = vcmp.ge.f32.partialorder %v968_v32, %v3536_v3  ;;  %v1010_v40 = vadd.f32 %v1009_v42, %v1008_v18 }
 0x227   :  { %v422_v12 = vadd.f32 %v3539_v0, %v3527_v46  ;;  %v3553_v20 = vsel %vm979_vm9, 1.0, %v2812_v1  ;;  %v365_v11 = vpop.permute.xlu1 %364  ;;  %v443_v25 = vadd.f32 %v442_v22, %v437_v10  ;;  %v450_v13 = vrot.slane %v339_v48, 3 }
 0x228   :  { %vm984_vm10 = vcmp.lt.f32.partialorder %v3553_v20, 0.5  ;;  %v367_v39 = vadd.f32 %v365_v11, %v362_v21  ;;  %v461_v28 = vmul.f32 %v440_v49, %v3539_v0  ;;  %vm428_vm9 = vcmp.ge.f32.partialorder %v3487_v16, %v3514_v52 }
 0x229   :  { %vm424_vm14 = vcmp.lt.f32.partialorder %v422_v12, 0.5  ;;  %vm985_vm15 = vmand %vm983_vm13, %vm984_vm10  ;;  %v1032_v21 = vmul.f32 %v3553_v20, %v3414_v38  ;;  %v452_v43 = vmul.f32 %v450_v13, %v3467_v26  ;;  %v1019_v49 = vmul.f32 %v1017_v59, %v3472_v63 }
 0x22a   :  { %vm425_vm11 = vmand %vm423_vm12, %vm424_vm14  ;;  %v3567_v62 = vsel %vm985_vm15, 1.0, %v2812_v1  ;;  %vm988_vm14 = vcmp.ge.f32.partialorder %v3507_v41, %v3536_v3  ;;  %v455_v16 = vrot.slane %v367_v39, 4  ;;  %v448_v41 = vadd.f32 %v447_v6, %v443_v25 }
 0x22b   :  { %v3563_v2 = vsel %vm425_vm11, 1.0, %v2812_v1  ;;  %v987_v61 = vadd.f32 %v3567_v62, %v3553_v20  ;;  %vm993_vm15 = vcmp.ge.f32.partialorder %v3517_v33, %v3536_v3  ;;  %v1033_v45 = vadd.f32 %v1032_v21, %v1008_v18 }
 0x22c   :  { %v427_v32 = vadd.f32 %v3563_v2, %v422_v12  ;;  %v463_v53 = vmul.f32 %v445_v24, %v3563_v2  ;;  %v462_v12 = vadd.f32 %v461_v28, %v459_v57  ;;  %v1034_v42 = vmul.f32 %v1012_v47, %v3567_v62 }
 0x22d   :  { %vm989_vm13 = vcmp.lt.f32.partialorder %v987_v61, 0.5  ;;  %v457_v48 = vmul.f32 %v455_v16, %v3491_v30  ;;  %v1024_v11 = vmul.f32 %v1022_v8, %v3496_v15  ;;  %v1015_v24 = vadd.f32 %v1014_v9, %v1010_v40 }
 0x22e   :  { %vm429_vm12 = vcmp.lt.f32.partialorder %v427_v32, 0.5  ;;  %vm990_vm11 = vmand %vm988_vm14, %vm989_vm13  ;;  %v464_v22 = vadd.f32 %v463_v53, %v462_v12  ;;  %v453_v10 = vadd.f32 %v452_v43, %v448_v41  ;;  %v1029_v39 = vmul.f32 %v1027_v55, %v3520_v35 }
 0x22f   :  { %vm430_vm10 = vmand %vm428_vm9, %vm429_vm12  ;;  %v3588_v37 = vsel %vm990_vm11, 1.0, %v2812_v1  ;;  %vm433_vm9 = vcmp.ge.f32.partialorder %v3502_v34, %v3514_v52  ;;  %v1035_v40 = vadd.f32 %v1034_v42, %v1033_v45  ;;  %vm998_vm11 = vcmp.ge.f32.partialorder %v3530_v60, %v3536_v3 }
 0x230   :  { %v3585_v29 = vsel %vm430_vm10, 1.0, %v2812_v1  ;;  %v992_v23 = vadd.f32 %v3588_v37, %v987_v61  ;;  %v1036_v34 = vmul.f32 %v1017_v59, %v3588_v37  ;;  %v1020_v61 = vadd.f32 %v1019_v49, %v1015_v24 }
 0x231   :  { %v432_v38 = vadd.f32 %v3585_v29, %v427_v32  ;;  %v465_v14 = vmul.f32 %v450_v13, %v3585_v29  ;;  %v458_v13 = vadd.f32 %v457_v48, %v453_v10 }
 0x232   :  { %vm994_vm14 = vcmp.lt.f32.partialorder %v992_v23, 0.5  ;;  %v1025_v28 = vadd.f32 %v1024_v11, %v1020_v61  ;;  %v1037_v59 = vadd.f32 %v1036_v34, %v1035_v40 }
 0x233   :  { %vm434_vm12 = vcmp.lt.f32.partialorder %v432_v38, 0.5  ;;  %vm995_vm10 = vmand %vm993_vm15, %vm994_vm14  ;;  %v466_v52 = vadd.f32 %v465_v14, %v464_v22 }
 0x234   :  { %vm435_vm13 = vmand %vm433_vm9, %vm434_vm12  ;;  %v3606_v33 = vsel %vm995_vm10, 1.0, %v2812_v1  ;;  %v1030_v53 = vadd.f32 %v1029_v39, %v1025_v28  ;;  %vm4442_vm12 = vcmask 1046534   ;;  %vm4445_vm10 = vcmask 1047559  }
 0x235   :  { %v3603_v32 = vsel %vm435_vm13, 1.0, %v2812_v1  ;;  %v997_v47 = vadd.f32 %v3606_v33, %v992_v23  ;;  %v1038_v25 = vmul.f32 %v1022_v8, %v3606_v33  ;;  %vm4443_vm14 = vmmov %vm4442_vm12  ;;  %vm4444_vm13 = vcmask 522243  }
 0x236   :  { %v467_v18 = vmul.f32 %v455_v16, %v3603_v32  ;;  %v1031_v49 = vmax.f32 %v1030_v53, 0.0 }
 0x237   :  { %vm999_vm15 = vcmp.lt.f32.partialorder %v997_v47, 0.5  ;;  %v1039_v16 = vadd.f32 %v1038_v25, %v1037_v59 }
 0x238   :  { %v468_v9 = vadd.f32 %v467_v18, %v466_v52  ;;  %vm1000_vm9 = vmand %vm998_vm11, %vm999_vm15 }
 0x239   :  { %v3616_v6 = vsel %vm1000_vm9, 1.0, %v2812_v1  ;;  %vm4448_vm15 = vmmov %vm4442_vm12 }
 0x23a   :  { %v469_v21 = vmax.f32 %v458_v13, %v468_v9  ;;  %v1040_v57 = vmul.f32 %v1027_v55, %v3616_v6  ;;  %vm4450_vm9 = vmmov %vm4444_vm13 }
 0x23c   :  { %v470_v41 = vsub.f32 %v458_v13, %v469_v21  ;;  %v473_v8 = vsub.f32 %v468_v9, %v469_v21  ;;  %v1041_v43 = vadd.f32 %v1040_v57, %v1039_v16 }
 0x23e   :  { %v471_v38 = vmul.f32 1.442695, %v470_v41  ;;  %v474_v23 = vmul.f32 1.442695, %v473_v8  ;;  %v1042_v12 = vmax.f32 %v1041_v43, 0.0 }
 0x240   :  { %2765 = vpow2.f32 %v471_v38  ;;  %v1043_v60 = vmax.f32 %v1031_v49, %v1042_v12 }
 0x241   :  { %2767 = vpow2.f32 %v474_v23 }
 0x242   :  { %v1044_v3 = vsub.f32 %v1031_v49, %v1043_v60  ;;  %v1047_v14 = vsub.f32 %v1042_v12, %v1043_v60  ;;  %v1085_v60 = vrot.slane %v3184_v36, 1 }
 0x244   :  { %v1045_v45 = vmul.f32 1.442695, %v1044_v3  ;;  %v1048_v42 = vmul.f32 1.442695, %v1047_v14  ;;  %v1069_v3 = vrot.slane %v3189_v5, 6 }
 0x246   :  { %2769 = vpow2.f32 %v1045_v45  ;;  %v1103_v45 = vrot.slane %v3184_v36, 2 }
 0x247   :  { %2771 = vpow2.f32 %v1048_v42  ;;  %v1104_v42 = vrot.slane %v3174_v31, 1 }
 0x24a   :  { %v2766_v22 = vpop.eup %2765 }
 0x24b   :  { %v2768_v48 = vpop.eup %2767 }
 0x24c   :  { %v476_v55 = vadd.f32 %v2768_v48, %v2766_v22 }
 0x24e   :  { %2773 = vrcp.f32 %v476_v55 }
 0x250   :  { %v2770_v11 = vpop.eup %2769 }
 0x251   :  { %v2772_v24 = vpop.eup %2771 }
 0x252   :  { %v1050_v10 = vadd.f32 %v2772_v24, %v2770_v11 }
 0x254   :  { %2775 = vrcp.f32 %v1050_v10  ;;  %v1121_v10 = vrot.slane %v3184_v36, 3 }
 0x258   :  { %v2774_v34 = vpop.eup %2773 }
 0x259   :  { %v479_v52 = vmul.f32 %v2774_v34, %v2768_v48  ;;  %v478_v18 = vmul.f32 %v2774_v34, %v2766_v22  ;;  %v1087_v22 = vrot.slane %v3189_v5, 7  ;;  %v1122_v34 = vrot.slane %v3174_v31, 2 }
 0x25b   :  { %v491_v47 = vmul.f32 %v478_v18, %v3433_v50  ;;  %v493_v39 = vmul.f32 %v479_v52, %v3539_v0  ;;  %v480_v61 = vmul.f32 %v478_v18, %v3420_v58  ;;  %v482_v25 = vmul.f32 %v479_v52, %v3527_v46 }
 0x25c   :  { %v502_v13 = vmul.f32 %v478_v18, %v3448_v51  ;;  %v504_v9 = vmul.f32 %v479_v52, %v3563_v2  ;;  %v513_v51 = vmul.f32 %v478_v18, %v3467_v26  ;;  %v515_v2 = vmul.f32 %v479_v52, %v3585_v29 }
 0x25d   :  { %v494_v40 = vadd.f32 %v493_v39, %v491_v47  ;;  %v483_v28 = vadd.f32 %v482_v25, %v480_v61  ;;  %v1105_v47 = vsel %vm217_vm1, %v1104_v42, %v1103_v45  ;;  %v1107_v61 = vrot.slane %v3201_v4, 7 }
 0x25e   :  { %v2776_v59 = vpop.eup %2775  ;;  %v505_v21 = vadd.f32 %v504_v9, %v502_v13  ;;  %v1124_v25 = vrot.slane %v3189_v5, 1 }
 0x25f   :  { %497 = vperm.xlu1 %2732, %v494_v40   ;;  %486 = vperm.xlu0 %2731, %v483_v28   ;;  %v1052_v53 = vmul.f32 %v2776_v59, %v2770_v11  ;;  %v1053_v57 = vmul.f32 %v2776_v59, %v2772_v24  ;;  %v1086_v11 = vsel %vm217_vm1, %v3174_v31, %v1085_v60  ;;  %v1071_v24 = vrot.slane %v3201_v4, 5 }
 0x260   :  { %v1088_v39 = vsel %vm220_vm2, %v1087_v22, %v1086_v11  ;;  %v1123_v28 = vsel %vm217_vm1, %v1122_v34, %v1121_v10  ;;  %v1139_v59 = vrot.slane %v3184_v36, 4 }
 0x261   :  { %v1076_v50 = vmul.f32 %v1052_v53, %v3455_v56  ;;  %v1078_v0 = vmul.f32 %v1053_v57, %v3567_v62  ;;  %v1054_v58 = vmul.f32 %v1052_v53, %v3440_v7  ;;  %v1056_v46 = vmul.f32 %v1053_v57, %v3553_v20 }
 0x262   :  { %v1094_v8 = vmul.f32 %v1052_v53, %v3472_v63  ;;  %v1096_v43 = vmul.f32 %v1053_v57, %v3588_v37  ;;  %v526_v56 = vmul.f32 %v479_v52, %v3603_v32  ;;  %v524_v62 = vmul.f32 %v478_v18, %v3491_v30  ;;  %v2395_v30 = vld [vmem:[%s4427_s11] ss:$0 sm:$0xff] }
 0x263   :  { %508 = vperm.xlu1 %2732, %v505_v21   ;;  %v1079_v16 = vadd.f32 %v1078_v0, %v1076_v50  ;;  %v1057_v41 = vadd.f32 %v1056_v46, %v1054_v58  ;;  %v516_v7 = vadd.f32 %v515_v2, %v513_v51  ;;  %v1112_v20 = vmul.f32 %v1052_v53, %v3496_v15  ;;  %v3645_v15 = vld [vmem:[%s4440_s23] sm:$0xf] }
 0x264   :  { %v1097_v38 = vadd.f32 %v1096_v43, %v1094_v8  ;;  %v1114_v26 = vmul.f32 %v1053_v57, %v3606_v33  ;;  %v527_v23 = vadd.f32 %v526_v56, %v524_v62  ;;  %v1130_v63 = vmul.f32 %v1052_v53, %v3520_v35 }
 0x265   :  { %1082 = vperm.xlu0 %2731, %v1079_v16   ;;  %v1132_v37 = vmul.f32 %v1053_v57, %v3616_v6  ;;  %v1155_v32 = vmul.f32 %v3645_v15, %v2395_v30  ;;  %v23_v35 = vstv %s4428_s13  ;;  %v1067_v6 = vrot.slane %v3174_v31, 7 }
 0x266   :  { %v1115_v29 = vadd.f32 %v1114_v26, %v1112_v20  ;;  %24 = vst [vmem:[#allocation3] sm:$0x1] %v23_v35  ;;  %v1089_v18 = vrot.slane %v3201_v4, 6  ;;  %v1140_v21 = vrot.slane %v3174_v31, 3  ;;  %v1106_v50 = vsel %vm220_vm2, %v3189_v5, %v1105_v47 }
 0x267   :  { %1060 = vperm.xlu1 %2732, %v1057_v41   ;;  %v1133_v49 = vadd.f32 %v1132_v37, %v1130_v63  ;;  %v1156_v33 = vsel %vm228_vm6, %v1155_v32, 0.0  ;;  %v1068_v14 = vsel %vm217_vm1, %v1067_v6, %v3184_v36  ;;  %v1125_v51 = vsel %vm220_vm2, %v1124_v25, %v1123_v28  ;;  %v3703_v28 = vld [vmem:[%s4430_s14] sm:$0xff]  }
 0x268   :  { %v1070_v52 = vsel %vm220_vm2, %v1069_v3, %v1068_v14  ;;  %v1090_v0 = vsel %vm223_vm3, %v1089_v18, %v1088_v39  ;;  %v1142_v2 = vrot.slane %v3189_v5, 2  ;;  %v1108_v36 = vsel %vm223_vm3, %v1107_v61, %v1106_v50  ;;  %2604 = vmatpush3.bf16.msra.mxu1 %v3703_v28  ;;  %v3737_v50 = vld [vmem:[%s4430_s14 + $0x28] sm:$0xff]  }
 0x269   :  { %1100 = vperm.xlu0 %2731, %v1097_v38   ;;  %v1072_v13 = vsel %vm223_vm3, %v1071_v24, %v1070_v52  ;;  %v1126_v43 = vsel %vm223_vm3, %v3201_v4, %v1125_v51  ;;  %2605 = vmatprep.subr.bf16.mxu1 %v2812_v1 }
 0x26b   :  { %519 = vperm.xlu1 %2732, %v516_v7  }
 0x26d   :  { %1118 = vperm.xlu0 %2731, %v1115_v29   ;;  %v2397_v45 = vld [vmem:[#allocation3] ss:$0 sm:$0xff] }
 0x26f   :  { %530 = vperm.xlu1 %2732, %v527_v23  }
 0x271   :  { %1136 = vperm.xlu0 %2731, %v1133_v49  }
 0x293   :  { %1157 = vadd.xlane.f32.xlu1 %v1156_v33 }
 0x2de   :  { %v498_v12 = vpop.permute.xlu1 %497  ;;  %v487_v48 = vpop.permute.xlu0 %486 }
 0x2df   :  { %v500_v53 = vmul.f32 %v498_v12, %v3252_v17  ;;  %v489_v57 = vmul.f32 %v487_v48, %v3224_v54  ;;  %v1141_v17 = vsel %vm217_vm1, %v1140_v21, %v1139_v59  ;;  %v3709_v59 = vld [vmem:[%s4430_s14 + $0x8] sm:$0xff]   ;;  %v3716_v21 = vld [vmem:[%s4430_s14 + $0x10] sm:$0xff]  }
 0x2e0   :  { %v1143_v5 = vsel %vm220_vm2, %v1142_v2, %v1141_v17  ;;  %2606 = vmatpush3.bf16.msra.mxu1 %v3709_v59  ;;  %v3768_v17 = vld [vmem:[%s4418_s3 + $0x18] sm:$0x7] }
 0x2e1   :  { %v501_v41 = vadd.f32 %v500_v53, %v489_v57  ;;  %2607 = vmatprep.subr.bf16.mxu1 %v2812_v1  ;;  %v3723_v53 = vld [vmem:[%s4430_s14 + $0x18] sm:$0xff]   ;;  %v3730_v57 = vld [vmem:[%s4430_s14 + $0x20] sm:$0xff]  }
 0x2e2   :  { %v509_v55 = vpop.permute.xlu1 %508 }
 0x2e3   :  { %v511_v58 = vmul.f32 %v509_v55, %v3282_v44  ;;  %v1144_v44 = vrot.slane %v3201_v4, 1 }
 0x2e4   :  { %v1083_v40 = vpop.permute.xlu0 %1082  ;;  %2608 = vmatpush3.bf16.msra.mxu1 %v3716_v21 }
 0x2e5   :  { %v1092_v54 = vmul.f32 %v1090_v0, %v1083_v40  ;;  %v512_v56 = vadd.f32 %v511_v58, %v501_v41  ;;  %v1145_v63 = vsel %vm223_vm3, %v1144_v44, %v1143_v5  ;;  %2609 = vmatprep.subr.bf16.mxu1 %v2812_v1  ;;  %v3744_v0 = vld [vmem:[%s4430_s14 + $0x30] sm:$0xff]   ;;  %v3751_v58 = vld [vmem:[%s4430_s14 + $0x38] sm:$0xff]   ;;  %v3793_v5 = vld [vmem:[%s4417_s6 + $0x20] sm:$0xff]  }
 0x2e6   :  { %v1061_v9 = vpop.permute.xlu1 %1060 }
 0x2e7   :  { %v1074_v46 = vmul.f32 %v1072_v13, %v1061_v9 }
 0x2e8   :  { %v1101_v16 = vpop.permute.xlu0 %1100  ;;  %2610 = vmatpush3.bf16.msra.mxu1 %v3723_v53 }
 0x2e9   :  { %v1093_v62 = vadd.f32 %v1092_v54, %v1074_v46  ;;  %v1110_v38 = vmul.f32 %v1108_v36, %v1101_v16  ;;  %2611 = vmatprep.subr.bf16.mxu1 %v2812_v1  ;;  %v3775_v54 = vld [vmem:[%s4418_s3 + $0x10] sm:$0x7] }
 0x2ea   :  { %v520_v31 = vpop.permute.xlu1 %519  ;;  %v2424_v44 = vcombine.low %v3775_v54, %v3775_v54 }
 0x2eb   :  { %v522_v8 = vmul.f32 %v520_v31, %v3314_v19  ;;  %v2396_v19 = vld [vmem:[%s4429_s12] ss:$0 sm:$0xff]  ;;  %v1111_v37 = vadd.f32 %v1110_v38, %v1093_v62  ;;  %v3763_v31 = vld [vmem:[%s4418_s3 + $0x14] sm:$0x7] }
 0x2ec   :  { %v1119_v7 = vpop.permute.xlu0 %1118  ;;  %2612 = vmatpush3.bf16.msra.mxu1 %v3730_v57  ;;  %v2425_v41 = vcombine.low %v3763_v31, %v3763_v31 }
 0x2ed   :  { %v523_v26 = vadd.f32 %v522_v8, %v512_v56  ;;  %v1128_v29 = vmul.f32 %v1126_v43, %v1119_v7  ;;  %2613 = vmatprep.subr.bf16.mxu1 %v2812_v1  ;;  %v3780_v8 = vld [vmem:[%s4418_s3 + $0x1c] sm:$0x7]  ;;  %v2426_v43 = vcombine.low %v3768_v17, %v3768_v17 }
 0x2ee   :  { %v531_v20 = vpop.permute.xlu1 %530  ;;  %v3786_v56 = vunpack.c.l.b16 %v2425_v41  ;;  %v2427_v7 = vcombine.low %v3780_v8, %v3780_v8 }
 0x2ef   :  { %v533_v23 = vmul.f32 %v531_v20, %v3332_v27  ;;  %v1129_v30 = vadd.f32 %v1128_v29, %v1111_v37  ;;  %v3799_v29 = vunpack.c.l.b16 %v2424_v44  ;;  %v3813_v37 = vld [vmem:[%s4417_s6 + $0x28] sm:$0xff]  }
 0x2f0   :  { %v1137_v4 = vpop.permute.xlu0 %1136  ;;  %2614 = vmatpush3.bf16.msra.mxu1 %v3737_v50 }
 0x2f1   :  { %v3695_v49 = vadd.f32 %v533_v23, %v523_v26  ;;  %v1147_v32 = vmul.f32 %v1145_v63, %v1137_v4  ;;  %2615 = vmatprep.subr.bf16.mxu1 %v2812_v1  ;;  %v3797_v26 = vunpack.c.l.b16 %v2426_v43  ;;  %v1705_v23 = vrot.slane %v3786_v56, 7 }
 0x2f3   :  { %v1165_v33 = vmul.f32 %v2396_v19, %v3695_v49  ;;  %v1148_v35 = vadd.f32 %v1147_v32, %v1129_v30  ;;  %v1707_v30 = vrot.slane %v3797_v26, 6  ;;  %v1706_v32 = vsel %vm217_vm1, %v1705_v23, %v3799_v29 }
 0x2f4   :  { %2616 = vmatpush3.bf16.msra.mxu1 %v3744_v0 }
 0x2f5   :  { %v1166_v6 = vsel %vm228_vm6, %v1165_v33, 0.0  ;;  %v1178_v12 = vmul.f32 %v2396_v19, %v1148_v35  ;;  %2617 = vmatprep.subr.bf16.mxu1 %v2812_v1  ;;  %v1807_v33 = vrot.slane %v3799_v29, 1 }
 0x2f6   :  { %1167 = vadd.xlane.f32.xlu0 %v1166_v6 }
 0x2f7   :  { %v1179_v27 = vsel %vm228_vm6, %v1178_v12, 0.0  ;;  %v1708_v12 = vsel %vm220_vm2, %v1707_v30, %v1706_v32 }
 0x2f8   :  { %2618 = vmatpush3.bf16.msra.mxu1 %v3751_v58 }
 0x2f9   :  { %2643 = vmatprep.subr.bf16.mxu1 %v2812_v1 }
 0x2fa   :  { %1180 = vadd.xlane.f32.xlu0 %v1179_v27  ;;  %v1809_v27 = vrot.slane %v3797_v26, 7 }
 0x320   :  { %v1158_v60 = vpop.xlane.xlu1 %1157 }
 0x383   :  { %v1168_v3 = vpop.xlane.xlu0 %1167 }
 0x384   :  { %v1169_v14 = vadd.f32 %v1168_v3, %v1158_v60  ;;  %v3845_v3 = vld [vmem:[%s4417_s6 + $0x38] sm:$0xff]  }
 0x386   :  { %v1176_v22 = vadd.f32 %v2397_v45, %v1169_v14 }
 0x387   :  { %v1181_v42 = vpop.xlane.xlu0 %1180 }
 0x388   :  { %v1182_v48 = vadd.f32 %v1181_v42, %v1158_v60  ;;  %v1177_v11 = vmax.f32 %v1176_v22, 0.0  ;;  %v1808_v60 = vsel %vm217_vm1, %v3786_v56, %v1807_v33 }
 0x389   :  { %v1810_v42 = vsel %vm220_vm2, %v1809_v27, %v1808_v60 }
 0x38a   :  { %v1183_v55 = vadd.f32 %v2397_v45, %v1182_v48 }
 0x38c   :  { %v1184_v24 = vmax.f32 %v1183_v55, 0.0  ;;  %v1870_v55 = vrot.slane %v3799_v29, 2 }
 0x38e   :  { %v1185_v10 = vmax.f32 %v1177_v11, %v1184_v24 }
 0x390   :  { %v1186_v34 = vsub.f32 %v1177_v11, %v1185_v10  ;;  %v1189_v52 = vsub.f32 %v1184_v24, %v1185_v10  ;;  %v1871_v11 = vrot.slane %v3786_v56, 1 }
 0x392   :  { %v1187_v18 = vmul.f32 1.442695, %v1186_v34  ;;  %v1190_v47 = vmul.f32 1.442695, %v1189_v52  ;;  %v1872_v10 = vsel %vm217_vm1, %v1871_v11, %v1870_v55  ;;  %v1933_v34 = vrot.slane %v3799_v29, 3 }
 0x393   :  { %v1934_v52 = vrot.slane %v3786_v56, 2 }
 0x394   :  { %2777 = vpow2.f32 %v1187_v18 }
 0x395   :  { %2779 = vpow2.f32 %v1190_v47  ;;  %v1873_v47 = vsel %vm220_vm2, %v3797_v26, %v1872_v10 }
 0x39e   :  { %v2778_v39 = vpop.eup %2777 }
 0x39f   :  { %v2780_v61 = vpop.eup %2779 }
 0x3a0   :  { %v1192_v25 = vadd.f32 %v2780_v61, %v2778_v39 }
 0x3a2   :  { %2781 = vrcp.f32 %v1192_v25 }
 0x3ac   :  { %v2782_v40 = vpop.eup %2781 }
 0x3ad   :  { %v1195_v13 = vmul.f32 %v2782_v40, %v2780_v61  ;;  %v1194_v9 = vmul.f32 %v2782_v40, %v2778_v39  ;;  %v1936_v39 = vrot.slane %v3797_v26, 1  ;;  %v1935_v61 = vsel %vm217_vm1, %v1934_v52, %v1933_v34 }
 0x3af   :  { %1204 = vperm.xlu0 %2731, %v1195_v13   ;;  %1198 = vperm.xlu1 %2732, %v1194_v9   ;;  %v1937_v40 = vsel %vm220_vm2, %v1936_v39, %v1935_v61 }
 0x42e   :  { %v1205_v46 = vpop.permute.xlu0 %1204  ;;  %v1199_v51 = vpop.permute.xlu1 %1198 }
 0x42f   :  { %v1207_v2 = vmul.f32 %v1205_v46, %v1148_v35  ;;  %v1201_v36 = vmul.f32 %v1199_v51, %v3695_v49  ;;  %v3817_v49 = vunpack.c.l.b16 %v2427_v7  ;;  %v3829_v35 = vld [vmem:[%s4417_s6 + $0x30] sm:$0xff]   ;;  %v1996_v46 = vrot.slane %v3799_v29, 4 }
 0x430   :  { %v1997_v51 = vrot.slane %v3786_v56, 3 }
 0x431   :  { %v1208_v16 = vadd.f32 %v1207_v2, %v1201_v36  ;;  %v1709_v6 = vrot.slane %v3817_v49, 5  ;;  %v1811_v45 = vrot.slane %v3817_v49, 6  ;;  %v1874_v18 = vrot.slane %v3817_v49, 7 }
 0x432   :  { %v1938_v9 = vsel %vm223_vm3, %v3817_v49, %v1937_v40  ;;  %v1999_v36 = vrot.slane %v3797_v26, 2  ;;  %v2001_v41 = vrot.slane %v3817_v49, 1 }
 0x433   :  { %1210 = vrot.lane.b32.xlu1 %v1208_v16, %s2814_s24  ;;  %v1710_v14 = vsel %vm223_vm3, %v1709_v6, %v1708_v12  ;;  %v1812_v48 = vsel %vm223_vm3, %v1811_v45, %v1810_v42  ;;  %v1875_v25 = vsel %vm223_vm3, %v1874_v18, %v1873_v47  ;;  %v1939_v2 = vpack.c.b16 %v1938_v9, %v1938_v9 }
 0x434   :  { %v1711_v22 = vpack.c.b16 %v1710_v14, %v1710_v14  ;;  %v1813_v24 = vpack.c.b16 %v1812_v48, %v1812_v48  ;;  %v1876_v13 = vpack.c.b16 %v1875_v25, %v1875_v25  ;;  %v1998_v16 = vsel %vm217_vm1, %v1997_v51, %v1996_v46 }
 0x435   :  { %v2000_v43 = vsel %vm220_vm2, %v1999_v36, %v1998_v16  ;;  %v4003_v16 = vunpack.c.l.bf16 %v3763_v31 }
 0x436   :  { %v2002_v44 = vsel %vm223_vm3, %v2001_v41, %v2000_v43 }
 0x437   :  { %1311 = vrot.lane.b32.xlu1 %v3645_v15, %s2814_s24 }
 0x4a5   :  { %v1211_v62 = vpop.permute.xlu1 %1210 }
 0x4a6   :  { %v1213_v38 = vsel %vm106_vm4, %v3645_v15, %v1211_v62  ;;  %v3806_v15 = vld [vmem:[%s4440_s23 + $0x4] sm:$0xf] }
 0x4a7   :  { %v1214_v20 = vpack.c.bf16 %v1213_v38, %v1213_v38 }
 0x4a9   :  { %2620 = vmatmul.mubr.bf16.vlgmr.msra.gmra.mrb[16].mxu1 %v1214_v20  ;;  %v1312_v63 = vpop.permute.xlu1 %1311 }
 0x4aa   :  { %2644 = vmatpush3.bf16.msra.mxu1 %v3793_v5  ;;  %v1314_v19 = vsel %vm106_vm4, %v3806_v15, %v1312_v63  ;;  %2651 = vmatprep.mubr.msk.bf16.mxu1 %vm2813_vm0, %v2812_v1 }
 0x4ab   :  { %v1315_v4 = vpack.c.bf16 %v1314_v19, %v1314_v19  ;;  %2645 = vmatprep.subr.bf16.mxu1 %v2812_v1 }
 0x4ad   :  { %2640 = vmatmul.mubr.bf16.vlgmr.msra.gmra.mrb[8].mxu0 %v1315_v4 }
 0x4ae   :  { %2646 = vmatpush3.bf16.msra.mxu1 %v3813_v37  ;;  %2656 = vmatpush3.bf16.msra.mxu0 %v3793_v5 }
 0x4af   :  { %2647 = vmatprep.subr.bf16.mxu1 %v2812_v1  ;;  %2657 = vmatprep.subr.bf16.mxu0 %v2812_v1 }
 0x4b0   :  { %2663 = vmatprep.mubr.msk.bf16.mxu0 %vm2813_vm0, %v2812_v1 }
 0x4b2   :  { %2648 = vmatpush3.bf16.msra.mxu1 %v3829_v35  ;;  %2658 = vmatpush3.bf16.msra.mxu0 %v3813_v37 }
 0x4b3   :  { %2649 = vmatprep.subr.bf16.mxu1 %v2812_v1  ;;  %2659 = vmatprep.subr.bf16.mxu0 %v2812_v1 }
 0x4b6   :  { %2650 = vmatpush3.bf16.msra.mxu1 %v3845_v3  ;;  %2660 = vmatpush3.bf16.msra.mxu0 %v3829_v35 }
 0x4b7   :  { %2661 = vmatprep.subr.bf16.mxu0 %v2812_v1  ;;  %2667 = vmatprep.subr.bf16.mxu1 %v2812_v1 }
 0x4b9   :  { %2652 = vmatmul.mubr.msk.bf16.vlgmr.msra.gmra.mrb[20].mxu1 %vm106_vm4, %v1711_v22 }
 0x4ba   :  { %2662 = vmatpush3.bf16.msra.mxu0 %v3845_v3  ;;  %2668 = vmatpush3.bf16.msra.mxu1 %v3793_v5 }
 0x4bb   :  { %2669 = vmatprep.subr.bf16.mxu1 %v2812_v1  ;;  %2679 = vmatprep.subr.bf16.mxu0 %v2812_v1 }
 0x4bc   :  { %2675 = vmatprep.mubr.msk.bf16.mxu1 %vm2813_vm0, %v2812_v1 }
 0x4bd   :  { %2664 = vmatmul.mubr.msk.bf16.vlgmr.msra.gmra.mrb[12].mxu0 %vm106_vm4, %v1813_v24 }
 0x4be   :  { %2670 = vmatpush3.bf16.msra.mxu1 %v3813_v37  ;;  %2680 = vmatpush3.bf16.msra.mxu0 %v3793_v5 }
 0x4bf   :  { %2671 = vmatprep.subr.bf16.mxu1 %v2812_v1  ;;  %2681 = vmatprep.subr.bf16.mxu0 %v2812_v1 }
 0x4c0   :  { %2687 = vmatprep.mubr.msk.bf16.mxu0 %vm2813_vm0, %v2812_v1 }
 0x4c2   :  { %2672 = vmatpush3.bf16.msra.mxu1 %v3829_v35  ;;  %2682 = vmatpush3.bf16.msra.mxu0 %v3813_v37 }
 0x4c3   :  { %2673 = vmatprep.subr.bf16.mxu1 %v2812_v1  ;;  %2683 = vmatprep.subr.bf16.mxu0 %v2812_v1 }
 0x4c6   :  { %2674 = vmatpush3.bf16.msra.mxu1 %v3845_v3  ;;  %2684 = vmatpush3.bf16.msra.mxu0 %v3829_v35 }
 0x4c7   :  { %2685 = vmatprep.subr.bf16.mxu0 %v2812_v1  ;;  %2691 = vmatprep.subr.bf16.mxu1 %v2812_v1 }
 0x4c9   :  { %2676 = vmatmul.mubr.msk.bf16.vlgmr.msra.gmra.mrb[24].mxu1 %vm106_vm4, %v1876_v13 }
 0x4ca   :  { %2686 = vmatpush3.bf16.msra.mxu0 %v3845_v3  ;;  %2692 = vmatpush3.bf16.msra.mxu1 %v3793_v5 }
 0x4cb   :  { %2693 = vmatprep.subr.bf16.mxu1 %v2812_v1  ;;  %2699 = vmatprep.mubr.msk.bf16.mxu1 %vm2813_vm0, %v2812_v1 }
 0x4cc   :  { %2703 = vmatprep.subr.bf16.mxu0 %v2812_v1 }
 0x4cd   :  { %2688 = vmatmul.mubr.msk.bf16.vlgmr.msra.gmra.mrb[16].mxu0 %vm106_vm4, %v1939_v2 }
 0x4ce   :  { %2694 = vmatpush3.bf16.msra.mxu1 %v3813_v37  ;;  %2704 = vmatpush3.bf16.msra.mxu0 %v3703_v28  ;;  %v2003_v28 = vpack.c.b16 %v2002_v44, %v2002_v44 }
 0x4cf   :  { %2695 = vmatprep.subr.bf16.mxu1 %v2812_v1  ;;  %2705 = vmatprep.subr.bf16.mxu0 %v2812_v1 }
 0x4d0   :  { %2719 = vmatprep.mubr.msk.bf16.mxu0 %vm2813_vm0, %v2812_v1  ;;  %vm4441_vm0 = vcmask 521218  }
 0x4d1   :  { %vm4447_vm11 = vmmov %vm4441_vm0 }
 0x4d2   :  { %2696 = vmatpush3.bf16.msra.mxu1 %v3829_v35  ;;  %2706 = vmatpush3.bf16.msra.mxu0 %v3709_v59  ;;  %v2407_v59 = vld [vmem:[%s4420_s1 + $0x10] sm:$0x7] }
 0x4d3   :  { %2697 = vmatprep.subr.bf16.mxu1 %v2812_v1  ;;  %2707 = vmatprep.subr.bf16.mxu0 %v2812_v1 }
 0x4d6   :  { %2698 = vmatpush3.bf16.msra.mxu1 %v3845_v3  ;;  %2708 = vmatpush3.bf16.msra.mxu0 %v3716_v21  ;;  %v2408_v21 = vld [vmem:[%s4420_s1 + $0x14] sm:$0x7]  ;;  %v2803_v3 = vld [vmem:[%s4423_s5] ss:$0 sm:$0xff] }
 0x4d7   :  { %2709 = vmatprep.subr.bf16.mxu0 %v2812_v1 }
 0x4d9   :  { %2700 = vmatmul.mubr.msk.bf16.vlgmr.msra.gmra.mrb[28].mxu1 %vm106_vm4, %v2003_v28 }
 0x4da   :  { %2710 = vmatpush3.bf16.msra.mxu0 %v3723_v53  ;;  %v2409_v53 = vld [vmem:[%s4420_s1 + $0x18] sm:$0x7] }
 0x4db   :  { %2711 = vmatprep.subr.bf16.mxu0 %v2812_v1 }
 0x4de   :  { %2712 = vmatpush3.bf16.msra.mxu0 %v3730_v57  ;;  %v3940_v57 = vunpack.c.l.bf16 %v2407_v59 }
 0x4df   :  { %2713 = vmatprep.subr.bf16.mxu0 %v2812_v1 }
 0x4e0   :  { %v1403_v62 = vrot.slane %v3940_v57, 1  ;;  %v1429_v29 = vrot.slane %v3940_v57, 2  ;;  %v1454_v48 = vrot.slane %v3940_v57, 3  ;;  %v1479_v39 = vrot.slane %v3940_v57, 4 }
 0x4e2   :  { %2714 = vmatpush3.bf16.msra.mxu0 %v3737_v50  ;;  %v3942_v50 = vunpack.c.l.bf16 %v2408_v21 }
 0x4e3   :  { %2715 = vmatprep.subr.bf16.mxu0 %v2812_v1 }
 0x4e4   :  { %v1371_v56 = vrot.slane %v3942_v50, 7  ;;  %v1404_v26 = vsel %vm217_vm1, %v3942_v50, %v1403_v62  ;;  %v1430_v23 = vrot.slane %v3942_v50, 1  ;;  %v1455_v55 = vrot.slane %v3942_v50, 2 }
 0x4e5   :  { %v1480_v61 = vrot.slane %v3942_v50, 3 }
 0x4e6   :  { %2716 = vmatpush3.bf16.msra.mxu0 %v3744_v0  ;;  %v2410_v0 = vld [vmem:[%s4420_s1 + $0x1c] sm:$0x7]  ;;  %v1372_v20 = vsel %vm217_vm1, %v1371_v56, %v3940_v57  ;;  %v1431_v33 = vsel %vm217_vm1, %v1430_v23, %v1429_v29  ;;  %v1456_v47 = vsel %vm217_vm1, %v1455_v55, %v1454_v48 }
 0x4e7   :  { %2717 = vmatprep.subr.bf16.mxu0 %v2812_v1  ;;  %v3951_v38 = vunpack.c.l.bf16 %v2410_v0  ;;  %v1481_v51 = vsel %vm217_vm1, %v1480_v61, %v1479_v39 }
 0x4e9   :  { %v1375_v19 = vrot.slane %v3951_v38, 5  ;;  %v1407_v37 = vrot.slane %v3951_v38, 6  ;;  %v1433_v60 = vrot.slane %v3951_v38, 7  ;;  %v1484_v44 = vrot.slane %v3951_v38, 1 }
 0x4ea   :  { %2718 = vmatpush3.bf16.msra.mxu0 %v3751_v58  ;;  %v3947_v58 = vunpack.c.l.bf16 %v2409_v53  ;;  %v4013_v53 = vunpack.c.l.bf16 %v3768_v17  ;;  %v2804_v17 = vld [vmem:[%s4422_s9] ss:$0 sm:$0xff] }
 0x4eb   :  { %v1790_v29 = vmul.f32 %v2804_v17, %v4003_v16 }
 0x4ec   :  { %v1373_v5 = vrot.slane %v3947_v58, 6  ;;  %v1405_v7 = vrot.slane %v3947_v58, 7  ;;  %v1432_v42 = vsel %vm220_vm2, %v3947_v58, %v1431_v33  ;;  %v1457_v18 = vrot.slane %v3947_v58, 1 }
 0x4ed   :  { %v3989_v34 = vsel %vm223_vm3, %v1433_v60, %v1432_v42  ;;  %v1482_v46 = vrot.slane %v3947_v58, 2  ;;  %v4039_v60 = vrot.slane %v1790_v29, 7 }
 0x4ee   :  { %v1374_v4 = vsel %vm220_vm2, %v1373_v5, %v1372_v20  ;;  %v1406_v30 = vsel %vm220_vm2, %v1405_v7, %v1404_v26  ;;  %v1458_v9 = vsel %vm220_vm2, %v1457_v18, %v1456_v47  ;;  %v4019_v7 = vunpack.c.l.bf16 %v3775_v54 }
 0x4ef   :  { %v3969_v12 = vsel %vm223_vm3, %v1375_v19, %v1374_v4  ;;  %v3972_v27 = vsel %vm223_vm3, %v1407_v37, %v1406_v30  ;;  %v4007_v43 = vsel %vm223_vm3, %v3951_v38, %v1458_v9  ;;  %v1483_v21 = vsel %vm220_vm2, %v1482_v46, %v1481_v51 }
 0x4f0   :  { %v4022_v26 = vsel %vm223_vm3, %v1484_v44, %v1483_v21  ;;  %v4030_v37 = vunpack.c.l.bf16 %v3780_v8  ;;  %v1791_v54 = vmul.f32 %v2804_v17, %v4013_v53  ;;  %v2805_v8 = vld [vmem:[%s4421_s7] ss:$0 sm:$0xff] }
 0x4f1   :  { %v1387_v39 = vmul.f32 %v2805_v8, %v3951_v38 }
 0x4f2   :  { %v1792_v42 = vmul.f32 %v2804_v17, %v4030_v37  ;;  %v4048_v55 = vrot.slane %v1791_v54, 6 }
 0x4f3   :  { %v1396_v38 = vrot.slane %v1387_v39, 5 }
 0x4f4   :  { %v4059_v47 = vrot.slane %v1792_v42, 5 }
 0x57c   :  { %v3961_v63 = vpop.f32.mrb[16].mxu1 }
 0x57d   :  { %v2621_v49 = vpop.f32.mrb[17].mxu1 }
 0x57e   :  { %v1306_v32 = vpop.f32.mrb[18].mxu1 }
 0x57f   :  { %v2622_v35 = vpop.f32.mrb[19].mxu1 }
 0x580   :  { %v1350_v6 = vpop.f32.mrb[8].mxu0 }
 0x581   :  { %v3978_v14 = vadd.f32 %v2803_v3, %v1350_v6  ;;  %v2641_v45 = vpop.f32.mrb[9].mxu0  ;;  %v4037_v6 = vmul.f32 %v2804_v17, %v4019_v7  ;;  %v1385_v3 = vmul.f32 %v2805_v8, %v3942_v50 }
 0x582   :  { %v1353_v22 = vpop.f32.mrb[10].mxu0 }
 0x583   :  { %v2642_v11 = vpop.f32.mrb[11].mxu0  ;;  %v1378_v24 = vsub.f32 %v3978_v14, %v3969_v12  ;;  %v1410_v10 = vsub.f32 %v3978_v14, %v3972_v27  ;;  %v1436_v13 = vsub.f32 %v3978_v14, %v3989_v34  ;;  %v1461_v5 = vsub.f32 %v3978_v14, %v4007_v43 }
 0x584   :  { %v1487_v35 = vsub.f32 %v3978_v14, %v4022_v26  ;;  %v1386_v11 = vmul.f32 %v2805_v8, %v3947_v58  ;;  %v1392_v50 = vrot.slane %v1385_v3, 7 }
 0x585   :  { %v1379_v52 = vmul.f32 %v1378_v24, %v1378_v24  ;;  %v1411_v40 = vmul.f32 %v1410_v10, %v1410_v10  ;;  %v1437_v36 = vmul.f32 %v1436_v13, %v1436_v13  ;;  %v1462_v33 = vmul.f32 %v1461_v5, %v1461_v5 }
 0x586   :  { %v1488_v48 = vmul.f32 %v1487_v35, %v1487_v35  ;;  %v1863_v24 = vsel %vm220_vm2, %v4039_v60, %v4037_v6  ;;  %v1384_v10 = vmul.f32 %v2805_v8, %v3940_v57  ;;  %v1798_v8 = vsel %vm217_vm1, %v4039_v60, %v4037_v6 }
 0x587   :  { %v1380_v25 = vsel %vm228_vm6, %v1379_v52, 0.0  ;;  %v1412_v2 = vsel %vm228_vm6, %v1411_v40, 0.0  ;;  %v1438_v62 = vsel %vm228_vm6, %v1437_v36, 0.0  ;;  %v1463_v22 = vsel %vm228_vm6, %v1462_v33, 0.0  ;;  %v2806_v52 = vld [vmem:[%s4424_s8] ss:$0 sm:$0xff] }
 0x588   :  { %1381 = vadd.xlane.f32.xlu0 %v1380_v25  ;;  %v1685_v18 = vmul.f32 %v2806_v52, %v3806_v15  ;;  %v1489_v58 = vsel %vm228_vm6, %v1488_v48, 0.0  ;;  %v1864_v61 = vsel %vm223_vm3, %v4048_v55, %v1863_v24  ;;  %v1394_v25 = vrot.slane %v1386_v11, 6 }
 0x589   :  { %v1442_v57 = vsel %vm223_vm3, %v1392_v50, %v1384_v10  ;;  %v1865_v51 = vsel %vm273_vm5, %v4059_v47, %v1864_v61  ;;  %v1800_v11 = vsel %vm220_vm2, %v4048_v55, %v1798_v8  ;;  %v1393_v52 = vsel %vm217_vm1, %v1392_v50, %v1384_v10 }
 0x58a   :  { %v1686_v46 = vsel %vm228_vm6, %v1685_v18, 0.0  ;;  %v1395_v61 = vsel %vm220_vm2, %v1394_v25, %v1393_v52 }
 0x58c   :  { %v1773_v41 = vpop.f32.mrb[20].mxu1  ;;  %1413 = vadd.xlane.f32.xlu0 %v1412_v2  ;;  %v1416_v2 = vsel %vm220_vm2, %v1392_v50, %v1384_v10 }
 0x58d   :  { %v1779_v28 = vsub.f32 %v3978_v14, %v1773_v41  ;;  %v2653_v59 = vpop.f32.mrb[21].mxu1  ;;  %v1443_v41 = vsel %vm273_vm5, %v1394_v25, %v1442_v57 }
 0x58e   :  { %v1776_v0 = vpop.f32.mrb[22].mxu1 }
 0x58f   :  { %v1780_v56 = vmul.f32 %v1779_v28, %v1779_v28  ;;  %v2654_v31 = vpop.f32.mrb[23].mxu1  ;;  %v1467_v28 = vsel %vm273_vm5, %v1392_v50, %v1384_v10  ;;  %v1867_v0 = vsel %vm276_vm7, %v1865_v51, 0.0 }
 0x590   :  { %v1851_v20 = vpop.f32.mrb[12].mxu0  ;;  %1439 = vadd.xlane.f32.xlu0 %v1438_v62  ;;  %v1444_v62 = vsel %vm301_vm8, %v1396_v38, %v1443_v41  ;;  %v1468_v17 = vsel %vm301_vm8, %v1394_v25, %v1467_v28  ;;  %v4127_v41 = vld [vmem:[%s4425_s2 + $0x4] sm:$0xf] }
 0x591   :  { %v1857_v23 = vsub.f32 %v3978_v14, %v1851_v20  ;;  %v2665_v19 = vpop.f32.mrb[13].mxu0  ;;  %v1781_v32 = vsel %vm228_vm6, %v1780_v56, 0.0  ;;  %v1417_v56 = vsel %vm223_vm3, %v1394_v25, %v1416_v2  ;;  %v1469_v54 = vsel %vm4442_vm12, %v1396_v38, %v1468_v17 }
 0x592   :  { %v1854_v49 = vpop.f32.mrb[14].mxu0  ;;  %v1418_v29 = vsel %vm273_vm5, %v1396_v38, %v1417_v56  ;;  %v1471_v33 = vsel %vm4444_vm13, %v1469_v54, 0.0  ;;  %v1449_v28 = vrot.slane %v4127_v41, 6 }
 0x593   :  { %v1858_v4 = vmul.f32 %v1857_v23, %v1857_v23  ;;  %v2666_v30 = vpop.f32.mrb[15].mxu0  ;;  %v1493_v23 = vsel %vm301_vm8, %v1392_v50, %v1384_v10  ;;  %v1446_v49 = vsel %vm4441_vm0, %v1444_v62, 0.0  ;;  %v1989_v50 = vsel %vm273_vm5, %v4039_v60, %v4037_v6  ;;  %vm4451_vm0 = vmmov %vm4445_vm10 }
 0x594   :  { %1782 = vadd.xlane.f32.xlu0 %v1781_v32  ;;  %v1494_v30 = vsel %vm4443_vm14, %v1394_v25, %v1493_v23 }
 0x595   :  { %v1859_v45 = vsel %vm228_vm6, %v1858_v4, 0.0  ;;  %v1420_v4 = vsel %vm276_vm7, %v1418_v29, 0.0  ;;  %v1495_v35 = vsel %vm4445_vm10, %v1396_v38, %v1494_v30  ;;  %vm4446_vm7 = vcmask 523268  }
 0x596   :  { %1860 = vadd.xlane.f32.xlu1 %v1859_v45  ;;  %v1497_v48 = vsel %vm4446_vm7, %v1495_v35, 0.0 }
 0x598   :  { %1464 = vadd.xlane.f32.xlu0 %v1463_v22 }
 0x59c   :  { %v1914_v40 = vpop.f32.mrb[24].mxu1  ;;  %1490 = vadd.xlane.f32.xlu0 %v1489_v58  ;;  %v1802_v58 = vsel %vm223_vm3, %v4059_v47, %v1800_v11 }
 0x59d   :  { %v1920_v13 = vsub.f32 %v3978_v14, %v1914_v40  ;;  %v2677_v9 = vpop.f32.mrb[25].mxu1  ;;  %v1926_v40 = vsel %vm223_vm3, %v4039_v60, %v4037_v6  ;;  %v1804_v57 = vsel %vm228_vm6, %v1802_v58, 0.0 }
 0x59e   :  { %v1917_v15 = vpop.f32.mrb[26].mxu1  ;;  %v1927_v10 = vsel %vm273_vm5, %v4048_v55, %v1926_v40  ;;  %vm4449_vm5 = vmmov %vm4442_vm12 }
 0x59f   :  { %v2678_v36 = vpop.f32.mrb[27].mxu1  ;;  %v1921_v32 = vmul.f32 %v1920_v13, %v1920_v13  ;;  %v1397_v13 = vsel %vm223_vm3, %v1396_v38, %v1395_v61  ;;  %v1928_v25 = vsel %vm301_vm8, %v4059_v47, %v1927_v10  ;;  %v2053_v15 = vsel %vm301_vm8, %v4039_v60, %v4037_v6 }
 0x5a0   :  { %v1977_v44 = vpop.f32.mrb[16].mxu0  ;;  %1687 = vadd.xlane.f32.xlu0 %v1686_v46  ;;  %v1399_v9 = vsel %vm228_vm6, %v1397_v13, 0.0  ;;  %v1990_v46 = vsel %vm301_vm8, %v4048_v55, %v1989_v50  ;;  %v1930_v51 = vsel %vm4447_vm11, %v1928_v25, 0.0  ;;  %v2054_v2 = vsel %vm4449_vm5, %v4048_v55, %v2053_v15  ;;  %vm4452_vm8 = vmmov %vm4446_vm7 }
 0x5a1   :  { %v1983_v59 = vsub.f32 %v3978_v14, %v1977_v44  ;;  %v2689_v21 = vpop.f32.mrb[17].mxu0  ;;  %v1922_v22 = vsel %vm228_vm6, %v1921_v32, 0.0  ;;  %v1991_v38 = vsel %vm4448_vm15, %v4059_v47, %v1990_v46  ;;  %v2055_v44 = vsel %vm4451_vm0, %v4059_v47, %v2054_v2 }
 0x5a2   :  { %v1980_v31 = vpop.f32.mrb[18].mxu0  ;;  %v1993_v36 = vsel %vm4450_vm9, %v1991_v38, 0.0  ;;  %v1424_v6 = vrot.slane %v4127_v41, 7  ;;  %v2057_v60 = vsel %vm4452_vm8, %v2055_v44, 0.0  ;;  %v1500_v55 = vrot.slane %v4127_v41, 4 }
 0x5a3   :  { %v1984_v5 = vmul.f32 %v1983_v59, %v1983_v59  ;;  %v2690_v20 = vpop.f32.mrb[19].mxu0  ;;  %v1474_v59 = vrot.slane %v4127_v41, 5 }
 0x5a4   :  { %1868 = vadd.xlane.f32.xlu0 %v1867_v0 }
 0x5a5   :  { %v1985_v19 = vsel %vm228_vm6, %v1984_v5, 0.0 }
 0x5a6   :  { %1986 = vadd.xlane.f32.xlu1 %v1985_v19 }
 0x5a8   :  { %1447 = vadd.xlane.f32.xlu0 %v1446_v49 }
 0x5aa   :  { %1421 = vadd.xlane.f32.xlu1 %v1420_v4 }
 0x5ac   :  { %v2041_v3 = vpop.f32.mrb[28].mxu1  ;;  %1472 = vadd.xlane.f32.xlu0 %v1471_v33 }
 0x5ad   :  { %v2047_v45 = vsub.f32 %v3978_v14, %v2041_v3  ;;  %v2701_v42 = vpop.f32.mrb[29].mxu1 }
 0x5ae   :  { %v2044_v24 = vpop.f32.mrb[30].mxu1  ;;  %1923 = vadd.xlane.f32.xlu1 %v1922_v22 }
 0x5af   :  { %v2048_v18 = vmul.f32 %v2047_v45, %v2047_v45  ;;  %v2702_v39 = vpop.f32.mrb[31].mxu1 }
 0x5b0   :  { %1498 = vadd.xlane.f32.xlu0 %v1497_v48 }
 0x5b1   :  { %v2049_v14 = vsel %vm228_vm6, %v2048_v18, 0.0 }
 0x5b2   :  { %2050 = vadd.xlane.f32.xlu1 %v2049_v14 }
 0x5b6   :  { %1805 = vadd.xlane.f32.xlu1 %v1804_v57 }
 0x5ba   :  { %1400 = vadd.xlane.f32.xlu1 %v1399_v9 }
 0x5be   :  { %1931 = vadd.xlane.f32.xlu1 %v1930_v51 }
 0x5c2   :  { %1994 = vadd.xlane.f32.xlu1 %v1993_v36 }
 0x5c6   :  { %2058 = vadd.xlane.f32.xlu1 %v2057_v60  ;;  %1425 = vrot.lane.b32.xlu0 %v1424_v6, %s2816_s26 }
 0x5ca   :  { %1501 = vrot.lane.b32.xlu0 %v1500_v55, %s2818_s28 }
 0x5d7   :  { %1450 = vrot.lane.b32.xlu1 %v1449_v28, %s2815_s21 }
 0x5db   :  { %1475 = vrot.lane.b32.xlu1 %v1474_v59, %s2817_s27 }
 0x615   :  { %v1382_v47 = vpop.xlane.xlu0 %1381 }
 0x616   :  { %v1383_v62 = vsub.f32 0.0, %v1382_v47 }
 0x619   :  { %v1414_v21 = vpop.xlane.xlu0 %1413 }
 0x61a   :  { %v1415_v31 = vsub.f32 0.0, %v1414_v21 }
 0x61c   :  { %v1505_v17 = vmax.f32 %v1383_v62, %v1415_v31 }
 0x61d   :  { %v1440_v0 = vpop.xlane.xlu0 %1439 }
 0x61e   :  { %v1441_v5 = vsub.f32 0.0, %v1440_v0 }
 0x620   :  { %v1506_v23 = vmax.f32 %v1505_v17, %v1441_v5 }
 0x621   :  { %v1783_v56 = vpop.xlane.xlu0 %1782 }
 0x622   :  { %v4156_v22 = vsub.f32 0.0, %v1783_v56 }
 0x623   :  { %v1861_v30 = vpop.xlane.xlu1 %1860 }
 0x624   :  { %v4158_v48 = vsub.f32 0.0, %v1861_v30 }
 0x625   :  { %v1465_v20 = vpop.xlane.xlu0 %1464 }
 0x626   :  { %v1466_v29 = vsub.f32 0.0, %v1465_v20  ;;  %v2060_v14 = vmax.f32 %v4156_v22, %v4158_v48 }
 0x628   :  { %v1507_v49 = vmax.f32 %v1506_v23, %v1466_v29 }
 0x629   :  { %v1491_v19 = vpop.xlane.xlu0 %1490 }
 0x62a   :  { %v1492_v54 = vsub.f32 0.0, %v1491_v19 }
 0x62c   :  { %v1508_v4 = vmax.f32 %v1507_v49, %v1492_v54 }
 0x62d   :  { %v4149_v3 = vpop.xlane.xlu0 %1687 }
 0x62e   :  { %vm1509_vm12 = vcmp.ge.f32.partialorder %v1383_v62, %v1508_v4  ;;  %vm1513_vm14 = vcmp.ge.f32.partialorder %v1415_v31, %v1508_v4  ;;  %vm1519_vm7 = vcmp.ge.f32.partialorder %v1441_v5, %v1508_v4  ;;  %vm1525_vm5 = vcmp.ge.f32.partialorder %v1466_v29, %v1508_v4 }
 0x62f   :  { %v4141_v32 = vsel %vm1509_vm12, 1.0, %v2812_v1  ;;  %vm1531_vm8 = vcmp.ge.f32.partialorder %v1492_v54, %v1508_v4 }
 0x630   :  { %vm1514_vm13 = vcmp.lt.f32.partialorder %v4141_v32, 0.5  ;;  %v1536_v52 = vmul.f32 1e+30, %v4141_v32 }
 0x631   :  { %vm1515_vm10 = vmand %vm1513_vm14, %vm1514_vm13  ;;  %v4164_v39 = vpop.xlane.xlu0 %1868 }
 0x632   :  { %v4145_v33 = vsel %vm1515_vm10, 1.0, %v2812_v1  ;;  %v1537_v50 = vsub.f32 %v1383_v62, %v1536_v52 }
 0x633   :  { %v1517_v35 = vadd.f32 %v4145_v33, %v4141_v32  ;;  %v1987_v8 = vpop.xlane.xlu1 %1986  ;;  %v1538_v24 = vmul.f32 1e+30, %v4145_v33 }
 0x634   :  { %v4175_v25 = vsub.f32 0.0, %v1987_v8 }
 0x635   :  { %vm1520_vm11 = vcmp.lt.f32.partialorder %v1517_v35, 0.5  ;;  %v1539_v40 = vsub.f32 %v1415_v31, %v1538_v24  ;;  %v4178_v2 = vpop.xlane.xlu0 %1447 }
 0x636   :  { %vm1521_vm15 = vmand %vm1519_vm7, %vm1520_vm11 }
 0x637   :  { %v4152_v45 = vsel %vm1521_vm15, 1.0, %v2812_v1  ;;  %v4154_v42 = vpop.xlane.xlu1 %1421  ;;  %v1546_v38 = vmax.f32 %v1537_v50, %v1539_v40 }
 0x638   :  { %v1523_v11 = vadd.f32 %v4152_v45, %v1517_v35  ;;  %v1540_v18 = vmul.f32 1e+30, %v4152_v45 }
 0x639   :  { %v4199_v31 = vpop.xlane.xlu0 %1472 }
 0x63a   :  { %vm1526_vm9 = vcmp.lt.f32.partialorder %v1523_v11, 0.5  ;;  %v1541_v9 = vsub.f32 %v1441_v5, %v1540_v18 }
 0x63b   :  { %vm1527_vm0 = vmand %vm1525_vm5, %vm1526_vm9  ;;  %v1924_v58 = vpop.xlane.xlu1 %1923 }
 0x63c   :  { %v4169_v61 = vsel %vm1527_vm0, 1.0, %v2812_v1  ;;  %v4171_v57 = vsub.f32 0.0, %v1924_v58  ;;  %v1547_v55 = vmax.f32 %v1546_v38, %v1541_v9 }
 0x63d   :  { %v1529_v13 = vadd.f32 %v4169_v61, %v1523_v11  ;;  %v1542_v10 = vmul.f32 1e+30, %v4169_v61  ;;  %v1499_v23 = vpop.xlane.xlu0 %1498 }
 0x63e   :  { %v2061_v46 = vmax.f32 %v2060_v14, %v4171_v57 }
 0x63f   :  { %vm1532_vm12 = vcmp.lt.f32.partialorder %v1529_v13, 0.5  ;;  %v2051_v15 = vpop.xlane.xlu1 %2050  ;;  %v1543_v51 = vsub.f32 %v1466_v29, %v1542_v10 }
 0x640   :  { %vm1533_vm14 = vmand %vm1531_vm8, %vm1532_vm12  ;;  %v2062_v36 = vmax.f32 %v2061_v46, %v4175_v25  ;;  %v4181_v44 = vsub.f32 0.0, %v2051_v15 }
 0x641   :  { %v4184_v6 = vsel %vm1533_vm14, 1.0, %v2812_v1  ;;  %v1548_v21 = vmax.f32 %v1547_v55, %v1543_v51  ;;  %v1426_v58 = vpop.permute.xlu0 %1425 }
 0x642   :  { %v1544_v60 = vmul.f32 1e+30, %v4184_v6  ;;  %v2063_v28 = vmax.f32 %v2062_v36, %v4181_v44 }
 0x643   :  { %v4188_v59 = vpop.xlane.xlu1 %1805 }
 0x644   :  { %v4190_v47 = vsub.f32 %v1492_v54, %v1544_v60  ;;  %vm2064_vm13 = vcmp.ge.f32.partialorder %v4156_v22, %v2063_v28  ;;  %vm2068_vm10 = vcmp.ge.f32.partialorder %v4158_v48, %v2063_v28  ;;  %vm2074_vm0 = vcmp.ge.f32.partialorder %v4171_v57, %v2063_v28 }
 0x645   :  { %v4194_v0 = vsel %vm2064_vm13, 1.0, %v2812_v1  ;;  %v1502_v55 = vpop.permute.xlu0 %1501 }
 0x646   :  { %v4197_v56 = vmax.f32 %v1548_v21, %v4190_v47  ;;  %vm2069_vm7 = vcmp.lt.f32.partialorder %v4194_v0, 0.5  ;;  %v2091_v8 = vmul.f32 1e+30, %v4194_v0 }
 0x647   :  { %vm2070_vm11 = vmand %vm2068_vm10, %vm2069_vm7  ;;  %v1401_v62 = vpop.xlane.xlu1 %1400  ;;  %vm2080_vm7 = vcmp.ge.f32.partialorder %v4175_v25, %v2063_v28 }
 0x648   :  { %v4204_v5 = vsel %vm2070_vm11, 1.0, %v2812_v1  ;;  %vm1550_vm15 = vcmp.ge.f32.partialorder %v1537_v50, %v4197_v56  ;;  %vm1554_vm5 = vcmp.ge.f32.partialorder %v1539_v40, %v4197_v56  ;;  %vm1559_vm13 = vcmp.ge.f32.partialorder %v1541_v9, %v4197_v56 }
 0x649   :  { %v2072_v20 = vadd.f32 %v4204_v5, %v4194_v0  ;;  %v4210_v17 = vsel %vm1550_vm15, 1.0, %v2812_v1  ;;  %v2093_v30 = vmul.f32 1e+30, %v4204_v5  ;;  %v2092_v50 = vsub.f32 %v4156_v22, %v2091_v8 }
 0x64a   :  { %vm1555_vm9 = vcmp.lt.f32.partialorder %v4210_v17, 0.5 }
 0x64b   :  { %vm2075_vm8 = vcmp.lt.f32.partialorder %v2072_v20, 0.5  ;;  %vm1556_vm12 = vmand %vm1554_vm5, %vm1555_vm9  ;;  %v4215_v29 = vpop.xlane.xlu1 %1931  ;;  %v2094_v18 = vsub.f32 %v4158_v48, %v2093_v30  ;;  %vm1564_vm9 = vcmp.ge.f32.partialorder %v1543_v51, %v4197_v56  ;;  %v1428_v48 = vadd.f32 %v1426_v58, %v4154_v42 }
 0x64c   :  { %vm2076_vm14 = vmand %vm2074_vm0, %vm2075_vm8  ;;  %v4218_v19 = vsel %vm1556_vm12, 1.0, %v2812_v1  ;;  %vm2086_vm8 = vcmp.ge.f32.partialorder %v4181_v44, %v2063_v28  ;;  %v1402_v51 = vadd.f32 %v4127_v41, %v1401_v62 }
 0x64d   :  { %v4221_v49 = vsel %vm2076_vm14, 1.0, %v2812_v1  ;;  %v1558_v54 = vadd.f32 %v4218_v19, %v4210_v17  ;;  %v2101_v15 = vmax.f32 %v2092_v50, %v2094_v18  ;;  %v1576_v28 = vrot.slane %v1428_v48, 1 }
 0x64e   :  { %v2078_v4 = vadd.f32 %v4221_v49, %v2072_v20  ;;  %v2095_v11 = vmul.f32 1e+30, %v4221_v49  ;;  %v1573_v30 = vmul.f32 %v4141_v32, %v1402_v51 }
 0x64f   :  { %vm1560_vm10 = vcmp.lt.f32.partialorder %v1558_v54, 0.5  ;;  %v4228_v35 = vpop.xlane.xlu1 %1994  ;;  %v1597_v8 = vmul.f32 %v1576_v28, %v4218_v19 }
 0x650   :  { %vm2081_vm11 = vcmp.lt.f32.partialorder %v2078_v4, 0.5  ;;  %vm1561_vm15 = vmand %vm1559_vm13, %vm1560_vm10  ;;  %v4247_v9 = vsub.f32 %v4171_v57, %v2095_v11  ;;  %v1578_v11 = vmul.f32 %v1576_v28, %v4145_v33 }
 0x651   :  { %vm2082_vm5 = vmand %vm2080_vm7, %vm2081_vm11  ;;  %v4234_v24 = vsel %vm1561_vm15, 1.0, %v2812_v1  ;;  %vm1569_vm7 = vcmp.ge.f32.partialorder %v4190_v47, %v4197_v56 }
 0x652   :  { %v4237_v52 = vsel %vm2082_vm5, 1.0, %v2812_v1  ;;  %v1563_v14 = vadd.f32 %v4234_v24, %v1558_v54  ;;  %v2102_v42 = vmax.f32 %v2101_v15, %v4247_v9 }
 0x653   :  { %v2084_v40 = vadd.f32 %v4237_v52, %v2078_v4  ;;  %v2097_v13 = vmul.f32 1e+30, %v4237_v52  ;;  %v4243_v10 = vpop.xlane.xlu1 %2058  ;;  %v1504_v4 = vadd.f32 %v1502_v55, %v1499_v23  ;;  %v1595_v23 = vmul.f32 %v4210_v17, %v1402_v51 }
 0x654   :  { %vm1565_vm0 = vcmp.lt.f32.partialorder %v1563_v14, 0.5 }
 0x655   :  { %vm2087_vm12 = vcmp.lt.f32.partialorder %v2084_v40, 0.5  ;;  %vm1566_vm14 = vmand %vm1564_vm9, %vm1565_vm0  ;;  %v4253_v46 = vsub.f32 %v4175_v25, %v2097_v13  ;;  %v1591_v40 = vrot.slane %v1504_v4, 4  ;;  %v1579_v13 = vadd.f32 %v1578_v11, %v1573_v30 }
 0x656   :  { %vm2088_vm13 = vmand %vm2086_vm8, %vm2087_vm12  ;;  %v4256_v38 = vsel %vm1566_vm14, 1.0, %v2812_v1  ;;  %v1598_v47 = vadd.f32 %v1597_v8, %v1595_v23 }
 0x657   :  { %v4259_v22 = vsel %vm2088_vm13, 1.0, %v2812_v1  ;;  %v1568_v57 = vadd.f32 %v4256_v38, %v1563_v14  ;;  %v1451_v36 = vpop.permute.xlu1 %1450  ;;  %v2103_v20 = vmax.f32 %v2102_v42, %v4253_v46  ;;  %v2129_v42 = vmul.f32 %v4194_v0, %v4188_v59 }
 0x658   :  { %v2099_v60 = vmul.f32 1e+30, %v4259_v22  ;;  %v1453_v25 = vadd.f32 %v1451_v36, %v4178_v2  ;;  %v2807_v36 = vld [vmem:[#allocation2] ss:$0 sm:$0xff] }
 0x659   :  { %vm1570_vm10 = vcmp.lt.f32.partialorder %v1568_v57, 0.5 }
 0x65a   :  { %v4267_v21 = vsub.f32 %v4181_v44, %v2099_v60  ;;  %v1581_v54 = vrot.slane %v1453_v25, 2  ;;  %vm1571_vm15 = vmand %vm1569_vm7, %vm1570_vm10  ;;  %v2132_v60 = vrot.slane %v4164_v39, 1  ;;  %v1593_v25 = vmul.f32 %v1591_v40, %v4184_v6 }
 0x65b   :  { %v1476_v41 = vpop.permute.xlu1 %1475 }
 0x65c   :  { %v4272_v62 = vmax.f32 %v2103_v20, %v4267_v21  ;;  %v1583_v2 = vmul.f32 %v1581_v54, %v4152_v45  ;;  %v1478_v44 = vadd.f32 %v1476_v41, %v4199_v31  ;;  %v1599_v58 = vmul.f32 %v1581_v54, %v4234_v24 }
 0x65d   :  { %v4289_v31 = vsel %vm1571_vm15, 1.0, %v2812_v1  ;;  %v2134_v41 = vmul.f32 %v2132_v60, %v4204_v5 }
 0x65e   :  { %vm2105_vm11 = vcmp.ge.f32.partialorder %v2092_v50, %v4272_v62  ;;  %vm2109_vm5 = vcmp.ge.f32.partialorder %v2094_v18, %v4272_v62  ;;  %v1586_v56 = vrot.slane %v1478_v44, 3  ;;  %v1584_v50 = vadd.f32 %v1583_v2, %v1579_v13 }
 0x65f   :  { %v4284_v14 = vsel %vm2105_vm11, 1.0, %v2812_v1  ;;  %v1600_v15 = vadd.f32 %v1599_v58, %v1598_v47  ;;  %v2128_v18 = vadd.f32 %v2807_v36, %v4149_v3  ;;  %v1603_v28 = vmul.f32 %v1591_v40, %v4289_v31 }
 0x660   :  { %vm2110_vm9 = vcmp.lt.f32.partialorder %v4284_v14, 0.5  ;;  %v1588_v57 = vmul.f32 %v1586_v56, %v4169_v61  ;;  %v1601_v51 = vmul.f32 %v1586_v56, %v4256_v38  ;;  %v2152_v4 = vmul.f32 %v4284_v14, %v4188_v59 }
 0x661   :  { %vm2111_vm0 = vmand %vm2109_vm5, %vm2110_vm9  ;;  %vm2114_vm8 = vcmp.ge.f32.partialorder %v4247_v9, %v4272_v62  ;;  %v2137_v3 = vrot.slane %v4215_v29, 2  ;;  %v2130_v8 = vadd.f32 %v2129_v42, %v2128_v18  ;;  %v2142_v2 = vrot.slane %v4228_v35, 3 }
 0x662   :  { %v4292_v48 = vsel %vm2111_vm0, 1.0, %v2812_v1  ;;  %v1589_v20 = vadd.f32 %v1588_v57, %v1584_v50  ;;  %v1602_v54 = vadd.f32 %v1601_v51, %v1600_v15  ;;  %v2153_v23 = vadd.f32 %v2152_v4, %v2128_v18 }
 0x663   :  { %v2113_v55 = vadd.f32 %v4292_v48, %v4284_v14  ;;  %v2139_v9 = vmul.f32 %v2137_v3, %v4221_v49  ;;  %vm2119_vm13 = vcmp.ge.f32.partialorder %v4253_v46, %v4272_v62  ;;  %v2147_v29 = vrot.slane %v4243_v10, 4 }
 0x664   :  { %v1594_v39 = vadd.f32 %v1593_v25, %v1589_v20  ;;  %v1604_v30 = vadd.f32 %v1603_v28, %v1602_v54  ;;  %v2154_v58 = vmul.f32 %v2132_v60, %v4292_v48  ;;  %v2135_v47 = vadd.f32 %v2134_v41, %v2130_v8 }
 0x665   :  { %vm2115_vm12 = vcmp.lt.f32.partialorder %v2113_v55, 0.5  ;;  %v2144_v35 = vmul.f32 %v2142_v2, %v4237_v52  ;;  %v2149_v18 = vmul.f32 %v2147_v29, %v4259_v22  ;;  %vm2124_vm11 = vcmp.ge.f32.partialorder %v4267_v21, %v4272_v62 }
 0x666   :  { %vm2116_vm14 = vmand %vm2114_vm8, %vm2115_vm12  ;;  %v1605_v59 = vmax.f32 %v1594_v39, %v1604_v30  ;;  %v2140_v51 = vadd.f32 %v2139_v9, %v2135_v47  ;;  %v2155_v10 = vadd.f32 %v2154_v58, %v2153_v23 }
 0x667   :  { %v4311_v11 = vsel %vm2116_vm14, 1.0, %v2812_v1 }
 0x668   :  { %v2118_v44 = vadd.f32 %v4311_v11, %v2113_v55  ;;  %v1606_v40 = vsub.f32 %v1594_v39, %v1605_v59  ;;  %v1609_v13 = vsub.f32 %v1604_v30, %v1605_v59  ;;  %v2156_v56 = vmul.f32 %v2137_v3, %v4311_v11 }
 0x669   :  { %v2145_v42 = vadd.f32 %v2144_v35, %v2140_v51 }
 0x66a   :  { %vm2120_vm10 = vcmp.lt.f32.partialorder %v2118_v44, 0.5  ;;  %v1607_v15 = vmul.f32 1.442695, %v1606_v40  ;;  %v1610_v57 = vmul.f32 1.442695, %v1609_v13  ;;  %v2157_v60 = vadd.f32 %v2156_v56, %v2155_v10 }
 0x66b   :  { %vm2121_vm7 = vmand %vm2119_vm13, %vm2120_vm10  ;;  %v2150_v28 = vadd.f32 %v2149_v18, %v2145_v42 }
 0x66c   :  { %v4323_v50 = vsel %vm2121_vm7, 1.0, %v2812_v1  ;;  %2783 = vpow2.f32 %v1607_v15 }
 0x66d   :  { %v2123_v46 = vadd.f32 %v4323_v50, %v2118_v44  ;;  %v2158_v36 = vmul.f32 %v2142_v2, %v4323_v50  ;;  %2785 = vpow2.f32 %v1610_v57  ;;  %v2151_v4 = vmax.f32 %v2150_v28, 0.0 }
 0x66f   :  { %vm2125_vm15 = vcmp.lt.f32.partialorder %v2123_v46, 0.5  ;;  %v2159_v25 = vadd.f32 %v2158_v36, %v2157_v60 }
 0x670   :  { %vm2126_vm5 = vmand %vm2124_vm11, %vm2125_vm15 }
 0x671   :  { %v2127_v55 = vsel %vm2126_vm5, 1.0, %v2812_v1 }
 0x672   :  { %v2160_v20 = vmul.f32 %v2147_v29, %v2127_v55 }
 0x674   :  { %v2161_v54 = vadd.f32 %v2160_v20, %v2159_v25 }
 0x676   :  { %v2162_v3 = vmax.f32 %v2161_v54, 0.0  ;;  %v2784_v39 = vpop.eup %2783 }
 0x677   :  { %v2786_v41 = vpop.eup %2785 }
 0x678   :  { %v2163_v30 = vmax.f32 %v2151_v4, %v2162_v3  ;;  %v1612_v44 = vadd.f32 %v2786_v41, %v2784_v39 }
 0x67a   :  { %v2164_v8 = vsub.f32 %v2151_v4, %v2163_v30  ;;  %v2167_v2 = vsub.f32 %v2162_v3, %v2163_v30  ;;  %2787 = vrcp.f32 %v1612_v44  ;;  %v2187_v3 = vrot.slane %v4003_v16, 7 }
 0x67b   :  { %v2224_v30 = vrot.slane %v4003_v16, 1 }
 0x67c   :  { %v2165_v21 = vmul.f32 1.442695, %v2164_v8  ;;  %v2168_v62 = vmul.f32 1.442695, %v2167_v2  ;;  %v2189_v8 = vrot.slane %v4013_v53, 6 }
 0x67e   :  { %2789 = vpow2.f32 %v2165_v21  ;;  %v2188_v21 = vsel %vm217_vm1, %v2187_v3, %v4019_v7 }
 0x67f   :  { %2791 = vpow2.f32 %v2168_v62  ;;  %v2241_v62 = vrot.slane %v4019_v7, 3 }
 0x684   :  { %v2788_v59 = vpop.eup %2787 }
 0x685   :  { %v1614_v23 = vmul.f32 %v2788_v59, %v2784_v39  ;;  %v1615_v1 = vmul.f32 %v2788_v59, %v2786_v41  ;;  %v2223_v39 = vrot.slane %v4019_v7, 2  ;;  %v2207_v41 = vrot.slane %v4013_v53, 7 }
 0x686   :  { %v2242_v59 = vrot.slane %v4003_v16, 2 }
 0x687   :  { %v1627_v29 = vmul.f32 %v1614_v23, %v4145_v33  ;;  %v1629_v40 = vmul.f32 %v1615_v1, %v4218_v19  ;;  %v1616_v13 = vmul.f32 %v1614_v23, %v4141_v32  ;;  %v1618_v47 = vmul.f32 %v1615_v1, %v4210_v17 }
 0x688   :  { %v2790_v9 = vpop.eup %2789  ;;  %v1638_v57 = vmul.f32 %v1614_v23, %v4152_v45  ;;  %v1640_v51 = vmul.f32 %v1615_v1, %v4234_v24  ;;  %v1649_v25 = vmul.f32 %v1614_v23, %v4169_v61  ;;  %v1651_v28 = vmul.f32 %v1615_v1, %v4256_v38 }
 0x689   :  { %v2792_v58 = vpop.eup %2791  ;;  %v1630_v56 = vadd.f32 %v1629_v40, %v1627_v29  ;;  %v1619_v15 = vadd.f32 %v1618_v47, %v1616_v13  ;;  %v1662_v54 = vmul.f32 %v1615_v1, %v4289_v31  ;;  %v2209_v1 = vrot.slane %v4030_v37, 6 }
 0x68a   :  { %v2170_v35 = vadd.f32 %v2792_v58, %v2790_v9  ;;  %v1641_v46 = vadd.f32 %v1640_v51, %v1638_v57  ;;  %v2190_v40 = vsel %vm220_vm2, %v2189_v8, %v2188_v21  ;;  %v2244_v13 = vrot.slane %v4013_v53, 1  ;;  %v2811_v8 = vld [vmem:[#allocation3] ss:$0 sm:$0xff] }
 0x68b   :  { %1633 = vperm.xlu0 %2731, %v1630_v56   ;;  %1622 = vperm.xlu1 %2732, %v1619_v15   ;;  %v2243_v56 = vsel %vm217_vm1, %v2242_v59, %v2241_v62  ;;  %v2259_v15 = vrot.slane %v4019_v7, 4  ;;  %v2260_v57 = vrot.slane %v4003_v16, 3 }
 0x68c   :  { %2793 = vrcp.f32 %v2170_v35  ;;  %v2227_v35 = vrot.slane %v4030_v37, 7 }
 0x68f   :  { %1644 = vperm.xlu1 %2732, %v1641_v46  }
 0x696   :  { %v2794_v10 = vpop.eup %2793 }
 0x697   :  { %v2173_v33 = vmul.f32 %v2794_v10, %v2792_v58  ;;  %v2172_v36 = vmul.f32 %v2794_v10, %v2790_v9  ;;  %v2191_v9 = vrot.slane %v4030_v37, 5  ;;  %v2225_v58 = vsel %vm217_vm1, %v2224_v30, %v2223_v39 }
 0x698   :  { %v2226_v46 = vsel %vm220_vm2, %v4013_v53, %v2225_v58 }
 0x699   :  { %v2196_v19 = vmul.f32 %v2172_v36, %v4204_v5  ;;  %v2198_v32 = vmul.f32 %v2173_v33, %v4292_v48  ;;  %v2174_v17 = vmul.f32 %v2172_v36, %v4194_v0  ;;  %v2176_v18 = vmul.f32 %v2173_v33, %v4284_v14 }
 0x69a   :  { %v2214_v45 = vmul.f32 %v2172_v36, %v4221_v49  ;;  %v2216_v24 = vmul.f32 %v2173_v33, %v4311_v11  ;;  %v2232_v5 = vmul.f32 %v2172_v36, %v4237_v52  ;;  %v2234_v48 = vmul.f32 %v2173_v33, %v4323_v50  ;;  %v4353_v52 = vld [vmem:[%s4440_s23 + $0x4] sm:$0xf] }
 0x69b   :  { %v2199_v60 = vadd.f32 %v2198_v32, %v2196_v19  ;;  %v2177_v42 = vadd.f32 %v2176_v18, %v2174_v17  ;;  %v1652_v0 = vadd.f32 %v1651_v28, %v1649_v25  ;;  %v1660_v14 = vmul.f32 %v1614_v23, %v4184_v6  ;;  %v2809_v6 = vld [vmem:[%s4427_s11] ss:$0 sm:$0xff] }
 0x69c   :  { %v2217_v20 = vadd.f32 %v2216_v24, %v2214_v45  ;;  %v2252_v49 = vmul.f32 %v2173_v33, %v2127_v55  ;;  %v2235_v11 = vadd.f32 %v2234_v48, %v2232_v5  ;;  %v2250_v61 = vmul.f32 %v2172_v36, %v4259_v22 }
 0x69d   :  { %2202 = vperm.xlu0 %2731, %v2199_v60   ;;  %2180 = vperm.xlu1 %2732, %v2177_v42   ;;  %v1663_v4 = vadd.f32 %v1662_v54, %v1660_v14  ;;  %v2269_v31 = vmul.f32 %v2809_v6, %v4353_v52  ;;  %v2205_v55 = vrot.slane %v4019_v7, 1  ;;  %v2192_v19 = vsel %vm223_vm3, %v2191_v9, %v2190_v40 }
 0x69e   :  { %v2253_v38 = vadd.f32 %v2252_v49, %v2250_v61  ;;  %v2245_v32 = vsel %vm220_vm2, %v2244_v13, %v2243_v56  ;;  %v2262_v17 = vrot.slane %v4013_v53, 2  ;;  %v2261_v60 = vsel %vm217_vm1, %v2260_v57, %v2259_v15 }
 0x69f   :  { %v2270_v50 = vsel %vm228_vm6, %v2269_v31, 0.0  ;;  %v2206_v44 = vsel %vm217_vm1, %v4003_v16, %v2205_v55  ;;  %v2228_v16 = vsel %vm223_vm3, %v2227_v35, %v2226_v46  ;;  %v2246_v25 = vsel %vm223_vm3, %v4030_v37, %v2245_v32 }
 0x6a0   :  { %v2208_v29 = vsel %vm220_vm2, %v2207_v41, %v2206_v44  ;;  %v2264_v28 = vrot.slane %v4030_v37, 1  ;;  %v2263_v53 = vsel %vm220_vm2, %v2262_v17, %v2261_v60  ;;  %v2810_v37 = vld [vmem:[%s4429_s12] ss:$0 sm:$0xff]  ;;  %vm2362_vm1 = vcmask 3072  }
 0x6a1   :  { %2220 = vperm.xlu0 %2731, %v2217_v20   ;;  %1655 = vperm.xlu1 %2732, %v1652_v0   ;;  %v2210_v36 = vsel %vm223_vm3, %v2209_v1, %v2208_v29  ;;  %v2398_v17 = vld [vmem:[%s4431_s15] ss:$0 sm:$0xff] }
 0x6a5   :  { %2238 = vperm.xlu0 %2731, %v2235_v11   ;;  %1666 = vperm.xlu1 %2732, %v1663_v4   ;;  %v2265_v11 = vsel %vm223_vm3, %v2264_v28, %v2263_v53 }
 0x6a9   :  { %2256 = vperm.xlu0 %2731, %v2253_v38  }
 0x6c9   :  { %2271 = vadd.xlane.f32.xlu1 %v2270_v50 }
 0x70a   :  { %v1623_v22 = vpop.permute.xlu1 %1622  ;;  %v1634_v2 = vpop.permute.xlu0 %1633 }
 0x70b   :  { %v1636_v10 = vmul.f32 %v1634_v2, %v3972_v27  ;;  %v1625_v33 = vmul.f32 %v1623_v22, %v3969_v12 }
 0x70d   :  { %v1637_v42 = vadd.f32 %v1636_v10, %v1625_v33 }
 0x70e   :  { %v1645_v23 = vpop.permute.xlu1 %1644 }
 0x70f   :  { %v1647_v7 = vmul.f32 %v1645_v23, %v3989_v34 }
 0x711   :  { %v1648_v34 = vadd.f32 %v1647_v7, %v1637_v42  ;;  %v1304_v7 = vadd.f32 %v2398_v17, %v3961_v63 }
 0x71c   :  { %v2203_v47 = vpop.permute.xlu0 %2202  ;;  %v2181_v51 = vpop.permute.xlu1 %2180 }
 0x71d   :  { %v2212_v45 = vmul.f32 %v2210_v36, %v2203_v47  ;;  %v2194_v24 = vmul.f32 %v2192_v19, %v2181_v51 }
 0x71f   :  { %v2213_v48 = vadd.f32 %v2212_v45, %v2194_v24  ;;  %v1309_v24 = vmax.f32 %v1304_v7, 0.0 }
 0x720   :  { %v2221_v18 = vpop.permute.xlu0 %2220  ;;  %v1656_v27 = vpop.permute.xlu1 %1655 }
 0x721   :  { %v1658_v12 = vmul.f32 %v1656_v27, %v4007_v43  ;;  %v2230_v20 = vmul.f32 %v2228_v16, %v2221_v18 }
 0x723   :  { %v1659_v54 = vadd.f32 %v1658_v12, %v1648_v34  ;;  %v2231_v61 = vadd.f32 %v2230_v20, %v2213_v48 }
 0x724   :  { %v2239_v5 = vpop.permute.xlu0 %2238  ;;  %v1667_v14 = vpop.permute.xlu1 %1666 }
 0x725   :  { %v2248_v0 = vmul.f32 %v2246_v25, %v2239_v5  ;;  %v1669_v49 = vmul.f32 %v1667_v14, %v4022_v26 }
 0x727   :  { %v1670_v43 = vadd.f32 %v1669_v49, %v1659_v54  ;;  %v2249_v38 = vadd.f32 %v2248_v0, %v2231_v61 }
 0x728   :  { %v2257_v4 = vpop.permute.xlu0 %2256 }
 0x729   :  { %v2267_v6 = vmul.f32 %v2265_v11, %v2257_v4  ;;  %v2273_v31 = vmul.f32 %v2810_v37, %v1670_v43 }
 0x72b   :  { %v2268_v50 = vadd.f32 %v2267_v6, %v2249_v38  ;;  %v2274_v22 = vsel %vm228_vm6, %v2273_v31, 0.0 }
 0x72c   :  { %2275 = vadd.xlane.f32.xlu0 %v2274_v22 }
 0x72d   :  { %v2280_v55 = vmul.f32 %v2810_v37, %v2268_v50 }
 0x72f   :  { %v2281_v3 = vsel %vm228_vm6, %v2280_v55, 0.0 }
 0x730   :  { %2282 = vadd.xlane.f32.xlu0 %v2281_v3 }
 0x756   :  { %v2272_v26 = vpop.xlane.xlu1 %2271 }
 0x7b9   :  { %v2276_v39 = vpop.xlane.xlu0 %2275 }
 0x7ba   :  { %v2277_v30 = vadd.f32 %v2276_v39, %v2272_v26 }
 0x7bc   :  { %v2278_v2 = vadd.f32 %v2811_v8, %v2277_v30 }
 0x7bd   :  { %v2283_v41 = vpop.xlane.xlu0 %2282 }
 0x7be   :  { %v2284_v44 = vadd.f32 %v2283_v41, %v2272_v26  ;;  %v2279_v62 = vmax.f32 %v2278_v2, 0.0 }
 0x7c0   :  { %v2285_v21 = vadd.f32 %v2811_v8, %v2284_v44 }
 0x7c2   :  { %v2286_v59 = vmax.f32 %v2285_v21, 0.0 }
 0x7c4   :  { %v2287_v23 = vmax.f32 %v2279_v62, %v2286_v59 }
 0x7c6   :  { %v2288_v1 = vsub.f32 %v2279_v62, %v2287_v23  ;;  %v2291_v9 = vsub.f32 %v2286_v59, %v2287_v23 }
 0x7c8   :  { %v2289_v58 = vmul.f32 1.442695, %v2288_v1  ;;  %v2292_v29 = vmul.f32 1.442695, %v2291_v9 }
 0x7ca   :  { %2795 = vpow2.f32 %v2289_v58 }
 0x7cb   :  { %2797 = vpow2.f32 %v2292_v29 }
 0x7d4   :  { %v2796_v40 = vpop.eup %2795 }
 0x7d5   :  { %v2798_v13 = vpop.eup %2797 }
 0x7d6   :  { %v2294_v47 = vadd.f32 %v2798_v13, %v2796_v40 }
 0x7d8   :  { %2799 = vrcp.f32 %v2294_v47 }
 0x7e2   :  { %v2800_v35 = vpop.eup %2799 }
 0x7e3   :  { %v2297_v56 = vmul.f32 %v2800_v35, %v2798_v13  ;;  %v2296_v15 = vmul.f32 %v2800_v35, %v2796_v40 }
 0x7e5   :  { %2306 = vperm.xlu0 %2731, %v2297_v56   ;;  %2300 = vperm.xlu1 %2732, %v2296_v15  }
 0x864   :  { %v2307_v57 = vpop.permute.xlu0 %2306  ;;  %v2301_v51 = vpop.permute.xlu1 %2300 }
 0x865   :  { %v2309_v46 = vmul.f32 %v2307_v57, %v2268_v50  ;;  %v2303_v10 = vmul.f32 %v2301_v51, %v1670_v43 }
 0x867   :  { %v2310_v33 = vadd.f32 %v2309_v46, %v2303_v10 }
 0x869   :  { %2312 = vrot.lane.b32.xlu1 %v2310_v33, %s2814_s24 }
 0x8db   :  { %v2313_v36 = vpop.permute.xlu1 %2312 }
 0x8dc   :  { %v2315_v19 = vsel %vm106_vm4, %v4353_v52, %v2313_v36 }
 0x8dd   :  { %v2316_v32 = vpack.c.bf16 %v2315_v19, %v2315_v19 }
 0x8df   :  { %2720 = vmatmul.mubr.bf16.vlgmr.msra.gmra.mrb[20].mxu0 %v2316_v32 }
 0x9b2   :  { %v2351_v16 = vpop.f32.mrb[20].mxu0 }
 0x9b3   :  { %v2352_v18 = vadd.f32 %v2398_v17, %v2351_v16  ;;  %v2721_v60 = vpop.f32.mrb[21].mxu0 }
 0x9b4   :  { %v2354_v45 = vpop.f32.mrb[22].mxu0 }
 0x9b5   :  { %v2357_v27 = vmax.f32 %v2352_v18, 0.0  ;;  %v2722_v42 = vpop.f32.mrb[23].mxu0 }
 0x9b7   :  { %v2358_v12 = vmul.f32 %v2357_v27, %v1309_v24 }
 0x9b9   :  { %v2359_v25 = vsel %vm228_vm6, %v2358_v12, 0.0 }
 0x9ba   :  { %2360 = vadd.xlane.f32.xlu1 %v2359_v25 }
 0xa47   :  { %v2361_v52 = vpop.xlane.xlu1 %2360 }
 0xa48   :  { %2363 = vst.msk [vmem:[%s4432_s16] sm:$0xf] %vm2362_vm1, %v2361_v52 }

</bundles_post_ra>
